<compile_context>
chip_gen: v5e
topology: v5e:2x2
jax: 0.10.0
libtpu: 0.0.40
codegen_flags: <defaults>
</compile_context>

<pallas_src>
import functools

import jax
import jax.numpy as jnp
from jax import lax
from jax.experimental import pallas as pl
from jax.experimental.pallas import tpu as pltpu


_K_CHUNK = 512  # sub-tile width for the in-kernel fp8->bf16 cast


def _round_up(x, m):
    return ((x + m - 1) // m) * m


def _pick_tile(dim, cap, align):
    """Pick (tile, padded_dim): tile multiple of `align`, <= max(cap, align),
    padded_dim a multiple of tile, minimizing padding waste ("cap and pad")."""
    d = _round_up(dim, align)
    cap = max(align, (cap // align) * align)
    if d <= cap:
        return d, d
    best_key, best_t = None, align
    for t in range(cap, 0, -align):
        waste = _round_up(d, t) - d
        key = (waste, -t)
        if best_key is None or key < best_key:
            best_key, best_t = key, t
            if waste == 0:
                break
    return best_t, _round_up(d, best_t)


@functools.lru_cache(maxsize=None)
def _tpu_flavor():
    """(generation, physical_vmem_bytes, multi_tensorcore) with safe fallbacks."""
    gen = 5
    try:
        kind = jax.devices()[0].device_kind.lower()
    except Exception:  # pragma: no cover
        kind = ""
    for g in (7, 6, 5, 4, 3, 2):
        if str(g) in kind:
            gen = g
            break
    phys = {7: 64 << 20, 6: 128 << 20, 5: 128 << 20}.get(gen, 64 << 20)
    try:
        phys = int(getattr(pltpu.get_tpu_info(), "vmem_capacity_bytes", phys)) or phys
    except Exception:
        pass
    multi_core = gen in (3, 4, 7)
    return gen, phys, multi_core


@functools.lru_cache(maxsize=None)
def _native_fp8_dot_supported():
    """True iff this chip compiles/runs a bf16 x fp8_e4m3 MXU dot (v7x path)."""
    gen, _, _ = _tpu_flavor()
    if gen < 7 or not hasattr(jnp, "float8_e4m3fn"):
        return False

    def k(x_ref, w_ref, o_ref):
        o_ref[...] = lax.dot_general(
            x_ref[...], w_ref[...],
            dimension_numbers=(((1,), (0,)), ((), ())),
            preferred_element_type=jnp.float32,
        ).astype(o_ref.dtype)

    try:
        x = jnp.ones((16, 128), jnp.bfloat16)
        w = jnp.ones((128, 128), jnp.float8_e4m3fn)
        out = pl.pallas_call(
            k, out_shape=jax.ShapeDtypeStruct((16, 128), jnp.bfloat16))(x, w)
        jax.block_until_ready(out)
        return bool(jnp.isfinite(out).all())
    except Exception:
        return False


def _make_kernel(has_bias, native_fp8):
    """One (tm, tn) output tile, accumulating over the K grid axis (axis 2)."""

    def kernel(*refs):
        if has_bias:
            x_ref, w_ref, b_ref, o_ref, acc_ref = refs
        else:
            x_ref, w_ref, o_ref, acc_ref = refs
            b_ref = None
        k = pl.program_id(2)

        @pl.when(k == 0)
        def _init():
            if b_ref is not None:
                # f32 bias folded straight into the f32 accumulator (no rounding).
                acc_ref[...] = jnp.broadcast_to(
                    b_ref[...].astype(jnp.float32), acc_ref.shape)
            else:
                acc_ref[...] = jnp.zeros_like(acc_ref)

        tk = x_ref.shape[1]
        if native_fp8:
            # v7x: MXU consumes the fp8 weight tile directly -> no VPU up-cast,
            # half the weight VMEM->vreg bandwidth.
            acc_ref[...] += lax.dot_general(
                x_ref[...], w_ref[...],
                dimension_numbers=(((1,), (0,)), ((), ())),
                preferred_element_type=jnp.float32)
        else:
            # Cast the (small) weight sub-tile to the compute dtype inside the
            # kernel, in <=512-wide K chunks to bound any materialized temp.
            n_chunks = tk // _K_CHUNK if (tk % _K_CHUNK == 0 and tk > _K_CHUNK) else 1
            step = tk // n_chunks
            for c in range(n_chunks):
                lo = c * step
                acc_ref[...] += jnp.dot(
                    x_ref[:, lo:lo + step],
                    w_ref[lo:lo + step, :].astype(x_ref.dtype),
                    preferred_element_type=jnp.float32)

        @pl.when(k == pl.num_programs(2) - 1)
        def _store():
            o_ref[...] = acc_ref[...].astype(o_ref.dtype)

    return kernel


@functools.partial(
    jax.jit,
    static_argnames=("tm", "tn", "tk", "has_bias", "native_fp8", "vmem_limit"))
def _fp8_linear_2d(x2d, w_kn, bias2d, *, tm, tn, tk, has_bias, native_fp8,
                   vmem_limit):
    """x2d: (M, K) compute-dtype, w_kn: (K, N) fp8/bf16/f32, bias2d: (1, N) f32."""
    M, K = x2d.shape
    _, N = w_kn.shape
    # N leads so megacore (2-TC chips) splits the dominant weight stream.
    grid = (N // tn, M // tm, K // tk)

    x_bytes = x2d.dtype.itemsize
    w_bytes = w_kn.dtype.itemsize
    bytes_accessed = (
        M * K * x_bytes * (N // tn)       # activations re-streamed per N tile
        + K * N * w_bytes * (M // tm)     # weights re-streamed per M tile
        + M * N * x_bytes                 # output written once
    )

    in_specs = [
        pl.BlockSpec((tm, tk), lambda j, i, k: (i, k)),   # activations (bf16)
        pl.BlockSpec((tk, tn), lambda j, i, k: (k, j)),   # weight (K, N), fp8
    ]
    operands = [x2d, w_kn]
    if has_bias:
        in_specs.append(pl.BlockSpec((1, tn), lambda j, i, k: (0, j)))
        operands.append(bias2d)
        bytes_accessed += N * 4 * (M // tm)

    return pl.pallas_call(
        _make_kernel(has_bias, native_fp8),
        out_shape=jax.ShapeDtypeStruct((M, N), x2d.dtype),
        grid_spec=pltpu.PrefetchScalarGridSpec(
            num_scalar_prefetch=0,
            grid=grid,
            in_specs=in_specs,
            out_specs=pl.BlockSpec((tm, tn), lambda j, i, k: (i, j)),
            scratch_shapes=[pltpu.VMEM((tm, tn), jnp.float32)],
        ),
        compiler_params=pltpu.CompilerParams(
            dimension_semantics=("parallel", "parallel", "arbitrary"),
            vmem_limit_bytes=int(vmem_limit),
        ),
        cost_estimate=pl.CostEstimate(
            flops=int(2 * M * N * K),
            transcendentals=0,
            bytes_accessed=int(bytes_accessed),
        ),
    )(*operands)


class FP8Linear:
    """JAX/Pallas port of the PyTorch FP8Linear module (forward only)."""

    def __init__(self, in_features, out_features, bias=True,
                 compute_dtype=jnp.bfloat16, key=None, use_fp8_weight=True):
        self.in_features = in_features
        self.out_features = out_features
        self.compute_dtype = compute_dtype

        self._gen, self._vmem_phys, self._multi_core = _tpu_flavor()
        self._native_fp8 = _native_fp8_dot_supported()

        # ---- per-layer static tiling (cap-and-pad, roofline-aware) ----
        # tk capped at 1024 so the cast temp / weight tile stays modest.
        self._tk, self._k_pad = _pick_tile(in_features, 1024, 128)
        if self._gen >= 6:
            tn_cap, self._tm_large = 2048, 512   # ~680 FLOP/byte on v6e/v7x
        else:
            tn_cap, self._tm_large = 1024, 256   # v5e is MXU-bound already
        self._tn, self._n_pad = _pick_tile(out_features, tn_cap, 256)

        # ---- parameters ----
        if key is None:
            key = jax.random.PRNGKey(0)
        # kaiming_uniform_ with a = gain('linear') = 1:
        #   bound = gain * sqrt(3 / fan_in) = sqrt(3 / in_features)
        bound = (3.0 / in_features) ** 0.5
        w = jax.random.uniform(key, (out_features, in_features), jnp.float32,
                               minval=-bound, maxval=bound)
        if use_fp8_weight and hasattr(jnp, "float8_e4m3fn"):
            store_dtype = jnp.float8_e4m3fn
        else:
            store_dtype = jnp.float32
        self.weight = w.astype(store_dtype)          # stored via setter as _w_kn
        self.bias = (jnp.zeros((out_features,), jnp.float32) if bias else None)

    # -- torch-layout weight is reconstructed lazily; only _w_kn is stored ----
    @property
    def weight(self):
        return jnp.transpose(
            self._w_kn[: self.in_features, : self.out_features])

    @weight.setter
    def weight(self, value):
        w = jnp.asarray(value)
        w_kn = jnp.pad(
            w.astype(jnp.float32).T,
            ((0, self._k_pad - self.in_features),
             (0, self._n_pad - self.out_features)))
        self._w_kn = w_kn.astype(w.dtype)            # (K_pad, N_pad)

    # -- bias: padded (1, N_pad) f32 operand prepared once per assignment -----
    @property
    def bias(self):
        return self._bias

    @bias.setter
    def bias(self, value):
        self._bias = value
        if value is None:
            self._bias2d = None
        else:
            b = jnp.asarray(value, jnp.float32)
            self._bias2d = jnp.pad(
                b, (0, self._n_pad - self.out_features)).reshape(1, self._n_pad)

    # --------------------------------------------------------------------
    def __call__(self, x):
        x = x.astype(self.compute_dtype)
        lead_shape = x.shape[:-1]
        M = 1
        for d in lead_shape:
            M *= d
        K, N = self.in_features, self.out_features
        K_pad, N_pad = self._k_pad, self._n_pad
        tk, tn = self._tk, self._tn

        x2d = x.reshape(M, K)

        # M tiling: large tile for prefill/training, minimal padded tile for decode.
        tm = self._tm_large if M >= self._tm_large else max(16, _round_up(M, 16))

        native_fp8 = (self._native_fp8
                      and hasattr(jnp, "float8_e4m3fn")
                      and self._w_kn.dtype == jnp.float8_e4m3fn)
        x_bytes = jnp.dtype(self.compute_dtype).itemsize
        w_bytes = self._w_kn.dtype.itemsize

        def vmem_need(tm_, tn_):
            n = 2 * tm_ * tk * x_bytes          # activations, double-buffered
            n += 2 * tk * tn_ * w_bytes         # weight, double-buffered
            n += 2 * tm_ * tn_ * x_bytes        # output, double-buffered
            n += tm_ * tn_ * 4                  # f32 accumulator scratch
            if not native_fp8 and w_bytes < 2:
                n += min(tk, _K_CHUNK) * tn_ * 2   # possible cast temp
            n += 4 * tn_ * 4                    # bias (tiny)
            return n

        # Keep the working set inside the chip's VMEM (64 MiB v7x vs 128 v5e/v6e).
        budget = max(12 << 20, int(0.9 * self._vmem_phys) - (16 << 20))
        while vmem_need(tm, tn) > budget and tm > 64:
            tm = max(64, tm // 2)
        while vmem_need(tm, tn) > budget and tn > 256 and tn % 256 == 0:
            tn //= 2

        M_pad = _round_up(M, tm)

        # Keep both TensorCores busy on 2-TC chips only (no-op cost elsewhere).
        if (self._multi_core and M_pad // tm == 1 and N_pad // tn == 1
                and tn >= 512 and tn % 256 == 0):
            tn //= 2

        vmem_limit = int(min(int(0.92 * self._vmem_phys),
                             max(32 << 20, vmem_need(tm, tn) + (16 << 20))))

        if M_pad != M or K_pad != K:
            x2d = jnp.pad(x2d, ((0, M_pad - M), (0, K_pad - K)))

        out2d = _fp8_linear_2d(
            x2d, self._w_kn, self._bias2d,
            tm=tm, tn=tn, tk=tk,
            has_bias=self._bias2d is not None,
            native_fp8=native_fp8,
            vmem_limit=vmem_limit,
        )
        out2d = out2d[:M, :N]
        return out2d.reshape(*lead_shape, N)


if __name__ == "__main__":
    key = jax.random.PRNGKey(0)
    k_w, k_x, k_b = jax.random.split(key, 3)

    batch, seq = 2, 8
    in_features, out_features = 256, 512

    layer = FP8Linear(in_features, out_features, bias=True,
                      compute_dtype=jnp.bfloat16, key=k_w)
    # Non-trivial bias so the fused-bias accumulator-init path is exercised.
    layer.bias = jax.random.normal(k_b, (out_features,), jnp.float32) * 0.1

    x = jax.random.normal(k_x, (batch, seq, in_features), jnp.float32)

    out = jax.block_until_ready(layer(x))

    # Reference in plain JAX: same fp8-rounded weight, bf16 compute, f32 acc + f32 bias.
    w_bf16 = layer.weight.astype(jnp.bfloat16)
    ref = (jnp.dot(x.astype(jnp.bfloat16), w_bf16.T,
                   preferred_element_type=jnp.float32)
           + layer.bias.astype(jnp.float32)).astype(jnp.bfloat16)

    assert out.shape == (batch, seq, out_features), out.shape
    assert out.dtype == jnp.bfloat16, out.dtype
    err = jnp.max(jnp.abs(out.astype(jnp.float32) - ref.astype(jnp.float32)))
    assert jnp.allclose(out.astype(jnp.float32), ref.astype(jnp.float32),
                        atol=2e-2, rtol=2e-2), float(err)

    print("KERNEL_OK")
</pallas_src>

<mosaic_0001>
module attributes {stable_mosaic.version = 11 : i64} {
  func.func @kernel(%arg0: i32, %arg1: i32, %arg2: i32, %arg3: memref<16x256xbf16, #tpu.memory_space<vmem>>, %arg4: memref<256x512xf8E4M3FN, #tpu.memory_space<vmem>>, %arg5: memref<1x512xf32, #tpu.memory_space<vmem>>, %arg6: memref<16x512xbf16, #tpu.memory_space<vmem>>, %arg7: memref<16x512xf32, #tpu.memory_space<vmem>>) attributes {dimension_semantics = [#tpu.dimension_semantics<parallel>, #tpu.dimension_semantics<parallel>, #tpu.dimension_semantics<arbitrary>], iteration_bounds = array<i64: 1, 1, 1>, scalar_prefetch = 0 : i64, scratch_operands = 1 : i64, tpu.core_type = #tpu.core_type<tc>, window_params = [{transform_indices = @transform_0, window_bounds = array<i64: 16, 256>}, {transform_indices = @transform_1, window_bounds = array<i64: 256, 512>}, {transform_indices = @transform_2, window_bounds = array<i64: 1, 512>}, {transform_indices = @transform_3, window_bounds = array<i64: 16, 512>}]} {
    %c0_i32 = arith.constant 0 : i32
    %0 = arith.cmpi eq, %arg2, %c0_i32 : i32
    %1 = arith.extui %0 : i1 to i32
    %c0_i32_0 = arith.constant 0 : i32
    %2 = arith.cmpi ne, %1, %c0_i32_0 : i32
    scf.if %2 {
      %c0_10 = arith.constant 0 : index
      %c0_11 = arith.constant 0 : index
      %13 = vector.load %arg5[%c0_10, %c0_11] : memref<1x512xf32, #tpu.memory_space<vmem>>, vector<1x512xf32>
      %14 = vector.shape_cast %13 : vector<1x512xf32> to vector<1x512xf32>
      %15 = vector.broadcast %14 : vector<1x512xf32> to vector<16x512xf32>
      %c0_12 = arith.constant 0 : index
      %c0_13 = arith.constant 0 : index
      %16 = vector.load %arg7[%c0_12, %c0_13] : memref<16x512xf32, #tpu.memory_space<vmem>>, vector<16x512xf32>
      tpu.vector_store %arg7[%c0_12, %c0_13], %15 {strides = array<i32>} : memref<16x512xf32, #tpu.memory_space<vmem>>, vector<16x512xf32>,
    } else {
    }
    %c0 = arith.constant 0 : index
    %c0_1 = arith.constant 0 : index
    %3 = vector.load %arg7[%c0, %c0_1] : memref<16x512xf32, #tpu.memory_space<vmem>>, vector<16x512xf32>
    %c0_2 = arith.constant 0 : index
    %c0_3 = arith.constant 0 : index
    %4 = vector.load %arg3[%c0_2, %c0_3] : memref<16x256xbf16, #tpu.memory_space<vmem>>, vector<16x256xbf16>
    %c0_4 = arith.constant 0 : index
    %c0_5 = arith.constant 0 : index
    %5 = vector.load %arg4[%c0_4, %c0_5] : memref<256x512xf8E4M3FN, #tpu.memory_space<vmem>>, vector<256x512xf8E4M3FN>
    %6 = arith.extf %5 : vector<256x512xf8E4M3FN> to vector<256x512xbf16>
    %cst = arith.constant dense<0.000000e+00> : vector<16x512xf32>
    %7 = tpu.matmul %4, %6, %cst {dimension_numbers = #tpu.dot_dimension_numbers<[1], [0], [0], [1], [0, 0, 1, 1], [], []>} : vector<16x256xbf16>, vector<256x512xbf16>, vector<16x512xf32> -> vector<16x512xf32>
    %8 = arith.addf %3, %7 : vector<16x512xf32>
    %c0_6 = arith.constant 0 : index
    %c0_7 = arith.constant 0 : index
    %9 = vector.load %arg7[%c0_6, %c0_7] : memref<16x512xf32, #tpu.memory_space<vmem>>, vector<16x512xf32>
    tpu.vector_store %arg7[%c0_6, %c0_7], %8 {strides = array<i32>} : memref<16x512xf32, #tpu.memory_space<vmem>>, vector<16x512xf32>,
    %c0_i32_8 = arith.constant 0 : i32
    %10 = arith.cmpi eq, %arg2, %c0_i32_8 : i32
    %11 = arith.extui %10 : i1 to i32
    %c0_i32_9 = arith.constant 0 : i32
    %12 = arith.cmpi ne, %11, %c0_i32_9 : i32
    scf.if %12 {
      %c0_10 = arith.constant 0 : index
      %c0_11 = arith.constant 0 : index
      %13 = vector.load %arg7[%c0_10, %c0_11] : memref<16x512xf32, #tpu.memory_space<vmem>>, vector<16x512xf32>
      %14 = arith.truncf %13 : vector<16x512xf32> to vector<16x512xbf16>
      %c0_12 = arith.constant 0 : index
      %c0_13 = arith.constant 0 : index
      %15 = vector.load %arg6[%c0_12, %c0_13] : memref<16x512xbf16, #tpu.memory_space<vmem>>, vector<16x512xbf16>
      tpu.vector_store %arg6[%c0_12, %c0_13], %14 {strides = array<i32>} : memref<16x512xbf16, #tpu.memory_space<vmem>>, vector<16x512xbf16>,
    } else {
    }
    return
  }
  func.func @transform_0(%arg0: i32, %arg1: i32, %arg2: i32) -> (i32, i32) {
    %c0_i32 = arith.constant 0 : i32
    return %arg1, %arg2 : i32, i32
  }
  func.func @transform_1(%arg0: i32, %arg1: i32, %arg2: i32) -> (i32, i32) {
    %c0_i32 = arith.constant 0 : i32
    return %arg2, %arg0 : i32, i32
  }
  func.func @transform_2(%arg0: i32, %arg1: i32, %arg2: i32) -> (i32, i32) {
    %c0_i32 = arith.constant 0 : i32
    %c0_i32_0 = arith.constant 0 : i32
    return %c0_i32, %arg0 : i32, i32
  }
  func.func @transform_3(%arg0: i32, %arg1: i32, %arg2: i32) -> (i32, i32) {
    %c0_i32 = arith.constant 0 : i32
    return %arg1, %arg0 : i32, i32
  }
}

</mosaic_0001>

<bundles_post_ra>
// kernel: _fp8_linear_2d.1
= control target key start
LH: loop header
LB: loop body
LE: loop exit
PB: predicated region body
PF: predicated region fallthrough
CT: control target
= control target key end

     0   :  { %8 = vsyncpa [#allocation4], 0  ;;  %s6346_s0 = inlined_call_operand.hbm [shape: bf16[16,256], index: 0, kind: input, shape index: {}]   ;;  %s6347_s1 = inlined_call_operand.hbm [shape: f8e4m3fn[256,512], index: 1, kind: input, shape index: {}]   ;;  %s6348_s2 = inlined_call_operand.hbm [shape: f32[1,512], index: 2, kind: input, shape index: {}]   ;;  %s6349_s3 = inlined_call_operand.hbm [shape: bf16[16,512], index: 3, kind: output, shape index: {}]  }
   0x1   :  { %9 = vsyncpa [#allocation7], 0  ;;  %s28_s14 = sshll.u32 %s6347_s1, 4  ;;  %s29_s14 = int_to_ptr.hbm [resolvable:$true] %s28_s14 }
   0x2   :  { %10 = vsyncpa [#allocation5], 0  ;;  %s4423_s15 = smov [#allocation6]   ;;  %s15_s19 = sshll.u32 %s6346_s0, 4  ;;  %s16_s19 = int_to_ptr.hbm [resolvable:$true] %s15_s19 }
   0x3   :  { %s30_s16 = sshll.u32 %s4423_s15, 4  ;;  %s4424_s20 = smov 512   ;;  %s31_s16 = int_to_ptr.vmem [resolvable:$true] %s30_s16 }
   0x4   :  { %s4425_s21 = smov 32   ;;  %s4426_s22 = smov [#allocation3]  }
   0x5   :  { %36 = dma.hbm_to_vmem [thread:$0]  %s29_s14, 4096, %s31_s16, [#allocation7], %s4424_s20, %s4424_s20, %s4425_s21  }
   0x6   :  { %s17_s23 = sshll.u32 %s4426_s22, 4  ;;  %s4427_s24 = smov 128   ;;  %s18_s23 = int_to_ptr.vmem [resolvable:$true] %s17_s23 }
   0x7   :  { %s4428_s25 = smov 8   ;;  %s42_s27 = sshll.u32 %s6348_s2, 4  ;;  %s43_s27 = int_to_ptr.hbm [resolvable:$true] %s42_s27 }
   0x8   :  { %23 = dma.hbm_to_vmem [thread:$0]  %s16_s19, 256, %s18_s23, [#allocation4], %s4427_s24, %s4427_s24, %s4428_s25  }
   0x9   :  { %s4429_s28 = smov [#allocation8]  }
   0xa   :  { %s44_s29 = sshll.u32 %s4429_s28, 4  ;;  %s45_s29 = int_to_ptr.vmem [resolvable:$true] %s44_s29 }
   0xb   :  { %47 = dma.hbm_to_vmem [thread:$0]  %s43_s27, 64, %s45_s29, [#allocation7]  }
   0xc   :  { %4417 = dma.done.wait [#allocation4], 256  }
   0xd   :  { %4418 = vsyncadd [#allocation4], 4294967040 }
   0xe   :  { %4419 = dma.done.wait [#allocation7], 4160  }
   0xf   :  { %4420 = vsyncadd [#allocation7], 4294963136  ;;  %v4462_v0 = vld [vmem:[#allocation8] sm:$0xf]  ;;  %v4464_v1 = vld [vmem:[#allocation3 + $0x4] sm:$0xf] }
  0x10   :  { %6660 = vst [vmem:[#allocation141_spill] sm:$0xff] %v4462_v0  ;;  %v4466_v2 = vld [vmem:[#allocation3] sm:$0xf]  ;;  %v4472_v7 = vld [vmem:[#allocation3 + $0x8] sm:$0xf0]  ;;  %v4476_v9 = vld [vmem:[#allocation6] sm:$0xff] }
  0x11   :  { %6661 = vst [vmem:[#allocation142_spill] sm:$0xff] %v4464_v1  ;;  %v4474_v8 = vld [vmem:[#allocation3 + $0x4] sm:$0xf0]  ;;  %v4478_v10 = vld [vmem:[#allocation6 + $0x8] sm:$0xff]  ;;  %v4480_v11 = vld [vmem:[#allocation6 + $0x10] sm:$0xff] }
  0x12   :  { %6662 = vst [vmem:[#allocation143_spill] sm:$0xff] %v4466_v2  ;;  %v4482_v12 = vld [vmem:[#allocation6 + $0x18] sm:$0xff]  ;;  %v4484_v13 = vld [vmem:[#allocation6 + $0x20] sm:$0xff]  ;;  %v4486_v14 = vld [vmem:[#allocation6 + $0x28] sm:$0xff] }
  0x13   :  { %6663 = vst [vmem:[#allocation144_spill] sm:$0xff] %v4472_v7  ;;  %v4488_v15 = vld [vmem:[#allocation6 + $0x30] sm:$0xff]  ;;  %v4490_v16 = vld [vmem:[#allocation6 + $0x38] sm:$0xff]  ;;  %v4492_v17 = vld [vmem:[#allocation6 + $0x40] sm:$0xff] }
  0x14   :  { %6664 = vst [vmem:[#allocation145_spill] sm:$0xff] %v4474_v8  ;;  %v4494_v18 = vld [vmem:[#allocation6 + $0x48] sm:$0xff]  ;;  %v4496_v19 = vld [vmem:[#allocation6 + $0x50] sm:$0xff]  ;;  %v4498_v20 = vld [vmem:[#allocation6 + $0x58] sm:$0xff] }
  0x15   :  { %v4500_v21 = vld [vmem:[#allocation6 + $0x60] sm:$0xff]  ;;  %v4502_v22 = vld [vmem:[#allocation6 + $0x68] sm:$0xff]  ;;  %v4504_v23 = vld [vmem:[#allocation6 + $0x70] sm:$0xff] }
  0x16   :  { %v4506_v24 = vld [vmem:[#allocation6 + $0x78] sm:$0xff]  ;;  %v4508_v25 = vld [vmem:[#allocation6 + $0x80] sm:$0xff]  ;;  %v4510_v26 = vld [vmem:[#allocation6 + $0x88] sm:$0xff] }
  0x17   :  { %v4512_v27 = vld [vmem:[#allocation6 + $0x90] sm:$0xff]  ;;  %v4514_v28 = vld [vmem:[#allocation6 + $0x98] sm:$0xff]  ;;  %v4516_v29 = vld [vmem:[#allocation6 + $0xa0] sm:$0xff] }
  0x18   :  { %v4518_v30 = vld [vmem:[#allocation6 + $0xa8] sm:$0xff]  ;;  %v4520_v31 = vld [vmem:[#allocation6 + $0xb0] sm:$0xff]  ;;  %v4522_v32 = vld [vmem:[#allocation6 + $0xb8] sm:$0xff] }
  0x19   :  { %v4524_v33 = vld [vmem:[#allocation6 + $0xc0] sm:$0xff]  ;;  %v4526_v34 = vld [vmem:[#allocation6 + $0xc8] sm:$0xff]  ;;  %v4528_v35 = vld [vmem:[#allocation6 + $0xd0] sm:$0xff] }
  0x1a   :  { %v4530_v36 = vld [vmem:[#allocation6 + $0xd8] sm:$0xff]  ;;  %v4532_v37 = vld [vmem:[#allocation6 + $0xe0] sm:$0xff]  ;;  %v4534_v38 = vld [vmem:[#allocation6 + $0xe8] sm:$0xff] }
  0x1b   :  { %v4536_v39 = vld [vmem:[#allocation6 + $0xf0] sm:$0xff]  ;;  %v4538_v40 = vld [vmem:[#allocation6 + $0xf8] sm:$0xff] }
  0x1c   :  { %124 = vst [vmem:[#allocation10] sm:$0xff] %v4476_v9  ;;  %v6665_v45 = vmov 0 }
  0x23   :  { %v125_v41 = vld [vmem:[#allocation10] sm:$0x3] }
  0x24   :  { %v126_v42 = vunpack.c.0.f8e4m3b11 %v125_v41 }
  0x26   :  { %v130_v43 = vand.u32 2147483647, %v126_v42  ;;  %vm132_vm0 = vcmp.ne.f32.partialorder %v126_v42, %v126_v42  ;;  %v133_v44 = vmul.f32 16.0, %v126_v42 }
  0x28   :  { %vm4541_vm1 = vcmp.gt.f32.partialorder %v130_v43, 29.0  ;;  %v4545_v46 = vsel %vm132_vm0, -0.0, %v133_v44 }
  0x29   :  { %v6666_v45 = vsel %vm4541_vm1, 4294967295, %v6665_v45  ;;  %6668 = vst [vmem:[#allocation147_spill] sm:$0xff] %v4545_v46 }
  0x2a   :  { %6667 = vst [vmem:[#allocation146_spill] sm:$0xff] %v6666_v45 }
  0x2b   :  { %154 = vst [vmem:[#allocation11] sm:$0xff] %v4478_v10  ;;  %v6669_v52 = vmov 0 }
  0x32   :  { %v155_v48 = vld [vmem:[#allocation11] sm:$0x3] }
  0x33   :  { %v156_v49 = vunpack.c.0.f8e4m3b11 %v155_v48 }
  0x35   :  { %v160_v50 = vand.u32 2147483647, %v156_v49  ;;  %vm162_vm2 = vcmp.ne.f32.partialorder %v156_v49, %v156_v49  ;;  %v163_v51 = vmul.f32 16.0, %v156_v49 }
  0x37   :  { %vm4551_vm3 = vcmp.gt.f32.partialorder %v160_v50, 29.0  ;;  %v4555_v53 = vsel %vm162_vm2, -0.0, %v163_v51 }
  0x38   :  { %v6670_v52 = vsel %vm4551_vm3, 4294967295, %v6669_v52  ;;  %6672 = vst [vmem:[#allocation149_spill] sm:$0xff] %v4555_v53 }
  0x39   :  { %6671 = vst [vmem:[#allocation148_spill] sm:$0xff] %v6670_v52 }
  0x3a   :  { %184 = vst [vmem:[#allocation12] sm:$0xff] %v4480_v11  ;;  %v6673_v59 = vmov 0 }
  0x41   :  { %v185_v55 = vld [vmem:[#allocation12] sm:$0x3] }
  0x42   :  { %v186_v56 = vunpack.c.0.f8e4m3b11 %v185_v55 }
  0x44   :  { %v190_v57 = vand.u32 2147483647, %v186_v56  ;;  %vm192_vm4 = vcmp.ne.f32.partialorder %v186_v56, %v186_v56  ;;  %v193_v58 = vmul.f32 16.0, %v186_v56 }
  0x46   :  { %vm4561_vm5 = vcmp.gt.f32.partialorder %v190_v57, 29.0  ;;  %v4565_v60 = vsel %vm192_vm4, -0.0, %v193_v58 }
  0x47   :  { %v6674_v59 = vsel %vm4561_vm5, 4294967295, %v6673_v59  ;;  %6676 = vst [vmem:[#allocation151_spill] sm:$0xff] %v4565_v60 }
  0x48   :  { %6675 = vst [vmem:[#allocation150_spill] sm:$0xff] %v6674_v59 }
  0x49   :  { %214 = vst [vmem:[#allocation13] sm:$0xff] %v4482_v12  ;;  %v6677_v43 = vmov 0 }
  0x50   :  { %v215_v62 = vld [vmem:[#allocation13] sm:$0x3] }
  0x51   :  { %v216_v63 = vunpack.c.0.f8e4m3b11 %v215_v62 }
  0x53   :  { %v220_v41 = vand.u32 2147483647, %v216_v63  ;;  %vm222_vm6 = vcmp.ne.f32.partialorder %v216_v63, %v216_v63  ;;  %v223_v42 = vmul.f32 16.0, %v216_v63 }
  0x55   :  { %vm4571_vm7 = vcmp.gt.f32.partialorder %v220_v41, 29.0  ;;  %v4575_v44 = vsel %vm222_vm6, -0.0, %v223_v42 }
  0x56   :  { %v6678_v43 = vsel %vm4571_vm7, 4294967295, %v6677_v43  ;;  %6680 = vst [vmem:[#allocation153_spill] sm:$0xff] %v4575_v44 }
  0x57   :  { %6679 = vst [vmem:[#allocation152_spill] sm:$0xff] %v6678_v43 }
  0x58   :  { %244 = vst [vmem:[#allocation14] sm:$0xff] %v4476_v9  ;;  %v6681_v56 = vmov 0 }
  0x5f   :  { %v246_v49 = vld [vmem:[#allocation14 + $0x2] sm:$0x3] }
  0x60   :  { %v247_v50 = vunpack.c.0.f8e4m3b11 %v246_v49 }
  0x62   :  { %v251_v51 = vand.u32 2147483647, %v247_v50  ;;  %vm253_vm8 = vcmp.ne.f32.partialorder %v247_v50, %v247_v50  ;;  %v254_v55 = vmul.f32 16.0, %v247_v50 }
  0x64   :  { %vm4581_vm9 = vcmp.gt.f32.partialorder %v251_v51, 29.0  ;;  %v4585_v57 = vsel %vm253_vm8, -0.0, %v254_v55 }
  0x65   :  { %v6682_v56 = vsel %vm4581_vm9, 4294967295, %v6681_v56  ;;  %6684 = vst [vmem:[#allocation155_spill] sm:$0xff] %v4585_v57 }
  0x66   :  { %6683 = vst [vmem:[#allocation154_spill] sm:$0xff] %v6682_v56 }
  0x67   :  { %275 = vst [vmem:[#allocation15] sm:$0xff] %v4478_v10  ;;  %v6685_v49 = vmov 0 }
  0x6e   :  { %v277_v62 = vld [vmem:[#allocation15 + $0x2] sm:$0x3] }
  0x6f   :  { %v278_v63 = vunpack.c.0.f8e4m3b11 %v277_v62 }
  0x71   :  { %v282_v41 = vand.u32 2147483647, %v278_v63  ;;  %vm284_vm10 = vcmp.ne.f32.partialorder %v278_v63, %v278_v63  ;;  %v285_v42 = vmul.f32 16.0, %v278_v63 }
  0x73   :  { %vm4591_vm11 = vcmp.gt.f32.partialorder %v282_v41, 29.0  ;;  %v4595_v50 = vsel %vm284_vm10, -0.0, %v285_v42 }
  0x74   :  { %v6686_v49 = vsel %vm4591_vm11, 4294967295, %v6685_v49  ;;  %6688 = vst [vmem:[#allocation157_spill] sm:$0xff] %v4595_v50 }
  0x75   :  { %6687 = vst [vmem:[#allocation156_spill] sm:$0xff] %v6686_v49 }
  0x76   :  { %306 = vst [vmem:[#allocation16] sm:$0xff] %v4480_v11  ;;  %v6689_v4 = vmov 0 }
  0x7d   :  { %v308_v55 = vld [vmem:[#allocation16 + $0x2] sm:$0x3] }
  0x7e   :  { %v309_v6 = vunpack.c.0.f8e4m3b11 %v308_v55 }
  0x80   :  { %v313_v5 = vand.u32 2147483647, %v309_v6  ;;  %vm315_vm12 = vcmp.ne.f32.partialorder %v309_v6, %v309_v6  ;;  %v316_v62 = vmul.f32 16.0, %v309_v6 }
  0x82   :  { %vm4601_vm13 = vcmp.gt.f32.partialorder %v313_v5, 29.0  ;;  %v4605_v63 = vsel %vm315_vm12, -0.0, %v316_v62 }
  0x83   :  { %v6690_v4 = vsel %vm4601_vm13, 4294967295, %v6689_v4  ;;  %6692 = vst [vmem:[#allocation159_spill] sm:$0xff] %v4605_v63 }
  0x84   :  { %6691 = vst [vmem:[#allocation158_spill] sm:$0xff] %v6690_v4 }
  0x85   :  { %337 = vst [vmem:[#allocation17] sm:$0xff] %v4482_v12  ;;  %v6693_v61 = vmov 0 }
  0x8c   :  { %v339_v42 = vld [vmem:[#allocation17 + $0x2] sm:$0x3] }
  0x8d   :  { %v340_v3 = vunpack.c.0.f8e4m3b11 %v339_v42 }
  0x8f   :  { %v344_v48 = vand.u32 2147483647, %v340_v3  ;;  %vm346_vm14 = vcmp.ne.f32.partialorder %v340_v3, %v340_v3  ;;  %v347_v55 = vmul.f32 16.0, %v340_v3 }
  0x91   :  { %vm4611_vm15 = vcmp.gt.f32.partialorder %v344_v48, 29.0  ;;  %v4615_v5 = vsel %vm346_vm14, -0.0, %v347_v55 }
  0x92   :  { %v6694_v61 = vsel %vm4611_vm15, 4294967295, %v6693_v61  ;;  %6696 = vst [vmem:[#allocation161_spill] sm:$0xff] %v4615_v5 }
  0x93   :  { %6695 = vst [vmem:[#allocation160_spill] sm:$0xff] %v6694_v61 }
  0x94   :  { %368 = vst [vmem:[#allocation18] sm:$0xff] %v4476_v9  ;;  %v6697_v54 = vmov 0 }
  0x9b   :  { %v370_v62 = vld [vmem:[#allocation18 + $0x4] sm:$0x3] }
  0x9c   :  { %v371_v41 = vunpack.c.0.f8e4m3b11 %v370_v62 }
  0x9e   :  { %v375_v51 = vand.u32 2147483647, %v371_v41  ;;  %vm377_vm0 = vcmp.ne.f32.partialorder %v371_v41, %v371_v41  ;;  %v378_v42 = vmul.f32 16.0, %v371_v41 }
  0xa0   :  { %vm4621_vm2 = vcmp.gt.f32.partialorder %v375_v51, 29.0  ;;  %v4625_v3 = vsel %vm377_vm0, -0.0, %v378_v42 }
  0xa1   :  { %v6698_v54 = vsel %vm4621_vm2, 4294967295, %v6697_v54  ;;  %6700 = vst [vmem:[#allocation163_spill] sm:$0xff] %v4625_v3 }
  0xa2   :  { %6699 = vst [vmem:[#allocation162_spill] sm:$0xff] %v6698_v54 }
  0xa3   :  { %399 = vst [vmem:[#allocation19] sm:$0xff] %v4478_v10  ;;  %v6701_v47 = vmov 0 }
  0xaa   :  { %v401_v55 = vld [vmem:[#allocation19 + $0x4] sm:$0x3] }
  0xab   :  { %v402_v6 = vunpack.c.0.f8e4m3b11 %v401_v55 }
  0xad   :  { %v406_v58 = vand.u32 2147483647, %v402_v6  ;;  %vm408_vm4 = vcmp.ne.f32.partialorder %v402_v6, %v402_v6  ;;  %v409_v62 = vmul.f32 16.0, %v402_v6 }
  0xaf   :  { %vm4631_vm6 = vcmp.gt.f32.partialorder %v406_v58, 29.0  ;;  %v4635_v51 = vsel %vm408_vm4, -0.0, %v409_v62 }
  0xb0   :  { %v6702_v47 = vsel %vm4631_vm6, 4294967295, %v6701_v47  ;;  %6704 = vst [vmem:[#allocation165_spill] sm:$0xff] %v4635_v51 }
  0xb1   :  { %6703 = vst [vmem:[#allocation164_spill] sm:$0xff] %v6702_v47 }
  0xb2   :  { %430 = vst [vmem:[#allocation20] sm:$0xff] %v4480_v11  ;;  %v6705_v5 = vmov 0 }
  0xb9   :  { %v432_v42 = vld [vmem:[#allocation20 + $0x4] sm:$0x3] }
  0xba   :  { %v433_v48 = vunpack.c.0.f8e4m3b11 %v432_v42 }
  0xbc   :  { %v437_v0 = vand.u32 2147483647, %v433_v48  ;;  %vm439_vm8 = vcmp.ne.f32.partialorder %v433_v48, %v433_v48  ;;  %v440_v55 = vmul.f32 16.0, %v433_v48 }
  0xbe   :  { %vm4641_vm10 = vcmp.gt.f32.partialorder %v437_v0, 29.0  ;;  %v4645_v58 = vsel %vm439_vm8, -0.0, %v440_v55 }
  0xbf   :  { %v6706_v5 = vsel %vm4641_vm10, 4294967295, %v6705_v5  ;;  %6708 = vst [vmem:[#allocation167_spill] sm:$0xff] %v4645_v58 }
  0xc0   :  { %6707 = vst [vmem:[#allocation166_spill] sm:$0xff] %v6706_v5 }
  0xc1   :  { %461 = vst [vmem:[#allocation21] sm:$0xff] %v4482_v12  ;;  %v6709_v44 = vmov 0 }
  0xc8   :  { %v463_v62 = vld [vmem:[#allocation21 + $0x4] sm:$0x3] }
  0xc9   :  { %v464_v41 = vunpack.c.0.f8e4m3b11 %v463_v62 }
  0xcb   :  { %v468_v61 = vand.u32 2147483647, %v464_v41  ;;  %vm470_vm12 = vcmp.ne.f32.partialorder %v464_v41, %v464_v41  ;;  %v471_v42 = vmul.f32 16.0, %v464_v41 }
  0xcd   :  { %vm4651_vm14 = vcmp.gt.f32.partialorder %v468_v61, 29.0  ;;  %v4655_v0 = vsel %vm470_vm12, -0.0, %v471_v42 }
  0xce   :  { %v6710_v44 = vsel %vm4651_vm14, 4294967295, %v6709_v44  ;;  %6712 = vst [vmem:[#allocation169_spill] sm:$0xff] %v4655_v0 }
  0xcf   :  { %6711 = vst [vmem:[#allocation168_spill] sm:$0xff] %v6710_v44 }
  0xd0   :  { %492 = vst [vmem:[#allocation22] sm:$0xff] %v4476_v9  ;;  %v6713_v63 = vmov 0 }
  0xd7   :  { %v494_v55 = vld [vmem:[#allocation22 + $0x6] sm:$0x3] }
  0xd8   :  { %v495_v6 = vunpack.c.0.f8e4m3b11 %v494_v55 }
  0xda   :  { %v499_v43 = vand.u32 2147483647, %v495_v6  ;;  %vm501_vm0 = vcmp.ne.f32.partialorder %v495_v6, %v495_v6  ;;  %v502_v62 = vmul.f32 16.0, %v495_v6 }
  0xdc   :  { %vm4661_vm4 = vcmp.gt.f32.partialorder %v499_v43, 29.0  ;;  %v4665_v61 = vsel %vm501_vm0, -0.0, %v502_v62 }
  0xdd   :  { %v6714_v63 = vsel %vm4661_vm4, 4294967295, %v6713_v63  ;;  %6716 = vst [vmem:[#allocation171_spill] sm:$0xff] %v4665_v61 }
  0xde   :  { %6715 = vst [vmem:[#allocation170_spill] sm:$0xff] %v6714_v63 }
  0xdf   :  { %523 = vst [vmem:[#allocation23] sm:$0xff] %v4478_v10  ;;  %v6717_v4 = vmov 0 }
  0xe6   :  { %v525_v42 = vld [vmem:[#allocation23 + $0x6] sm:$0x3] }
  0xe7   :  { %v526_v48 = vunpack.c.0.f8e4m3b11 %v525_v42 }
  0xe9   :  { %v530_v9 = vand.u32 2147483647, %v526_v48  ;;  %vm532_vm8 = vcmp.ne.f32.partialorder %v526_v48, %v526_v48  ;;  %v533_v55 = vmul.f32 16.0, %v526_v48 }
  0xeb   :  { %vm4671_vm12 = vcmp.gt.f32.partialorder %v530_v9, 29.0  ;;  %v4675_v43 = vsel %vm532_vm8, -0.0, %v533_v55 }
  0xec   :  { %v6718_v4 = vsel %vm4671_vm12, 4294967295, %v6717_v4  ;;  %6720 = vst [vmem:[#allocation173_spill] sm:$0xff] %v4675_v43 }
  0xed   :  { %6719 = vst [vmem:[#allocation172_spill] sm:$0xff] %v6718_v4 }
  0xee   :  { %554 = vst [vmem:[#allocation24] sm:$0xff] %v4480_v11  ;;  %v6721_v60 = vmov 0 }
  0xf5   :  { %v556_v62 = vld [vmem:[#allocation24 + $0x6] sm:$0x3] }
  0xf6   :  { %v557_v41 = vunpack.c.0.f8e4m3b11 %v556_v62 }
  0xf8   :  { %v561_v10 = vand.u32 2147483647, %v557_v41  ;;  %vm563_vm0 = vcmp.ne.f32.partialorder %v557_v41, %v557_v41  ;;  %v564_v42 = vmul.f32 16.0, %v557_v41 }
  0xfa   :  { %vm4681_vm15 = vcmp.gt.f32.partialorder %v561_v10, 29.0  ;;  %v4685_v48 = vsel %vm563_vm0, -0.0, %v564_v42 }
  0xfb   :  { %v6722_v60 = vsel %vm4681_vm15, 4294967295, %v6721_v60  ;;  %6724 = vst [vmem:[#allocation175_spill] sm:$0xff] %v4685_v48 }
  0xfc   :  { %6723 = vst [vmem:[#allocation174_spill] sm:$0xff] %v6722_v60 }
  0xfd   :  { %585 = vst [vmem:[#allocation25] sm:$0xff] %v4482_v12  ;;  %v6725_v59 = vmov 0 }
 0x104   :  { %v587_v55 = vld [vmem:[#allocation25 + $0x6] sm:$0x3] }
 0x105   :  { %v588_v6 = vunpack.c.0.f8e4m3b11 %v587_v55 }
 0x107   :  { %v592_v11 = vand.u32 2147483647, %v588_v6  ;;  %vm594_vm8 = vcmp.ne.f32.partialorder %v588_v6, %v588_v6  ;;  %v595_v62 = vmul.f32 16.0, %v588_v6 }
 0x109   :  { %vm4691_vm7 = vcmp.gt.f32.partialorder %v592_v11, 29.0  ;;  %v4695_v41 = vsel %vm594_vm8, -0.0, %v595_v62 }
 0x10a   :  { %v6726_v59 = vsel %vm4691_vm7, 4294967295, %v6725_v59  ;;  %6728 = vst [vmem:[#allocation177_spill] sm:$0xff] %v4695_v41 }
 0x10b   :  { %6727 = vst [vmem:[#allocation176_spill] sm:$0xff] %v6726_v59 }
 0x10c   :  { %616 = vst [vmem:[#allocation26] sm:$0xff] %v4484_v13  ;;  %v6729_v0 = vmov 0 }
 0x113   :  { %v617_v42 = vld [vmem:[#allocation26] sm:$0x3] }
 0x114   :  { %v618_v9 = vunpack.c.0.f8e4m3b11 %v617_v42 }
 0x116   :  { %v622_v12 = vand.u32 2147483647, %v618_v9  ;;  %vm624_vm0 = vcmp.ne.f32.partialorder %v618_v9, %v618_v9  ;;  %v625_v55 = vmul.f32 16.0, %v618_v9 }
 0x118   :  { %vm4701_vm13 = vcmp.gt.f32.partialorder %v622_v12, 29.0  ;;  %v4705_v6 = vsel %vm624_vm0, -0.0, %v625_v55 }
 0x119   :  { %v6730_v0 = vsel %vm4701_vm13, 4294967295, %v6729_v0  ;;  %6732 = vst [vmem:[#allocation179_spill] sm:$0xff] %v4705_v6 }
 0x11a   :  { %6731 = vst [vmem:[#allocation178_spill] sm:$0xff] %v6730_v0 }
 0x11b   :  { %646 = vst [vmem:[#allocation27] sm:$0xff] %v4486_v14  ;;  %v6733_v59 = vmov 0 }
 0x122   :  { %v647_v62 = vld [vmem:[#allocation27] sm:$0x3] }
 0x123   :  { %v648_v10 = vunpack.c.0.f8e4m3b11 %v647_v62 }
 0x125   :  { %v652_v41 = vand.u32 2147483647, %v648_v10  ;;  %vm654_vm8 = vcmp.ne.f32.partialorder %v648_v10, %v648_v10  ;;  %v655_v42 = vmul.f32 16.0, %v648_v10 }
 0x127   :  { %vm4711_vm5 = vcmp.gt.f32.partialorder %v652_v41, 29.0  ;;  %v4715_v9 = vsel %vm654_vm8, -0.0, %v655_v42 }
 0x128   :  { %v6734_v59 = vsel %vm4711_vm5, 4294967295, %v6733_v59  ;;  %6736 = vst [vmem:[#allocation181_spill] sm:$0xff] %v4715_v9 }
 0x129   :  { %6735 = vst [vmem:[#allocation180_spill] sm:$0xff] %v6734_v59 }
 0x12a   :  { %676 = vst [vmem:[#allocation28] sm:$0xff] %v4488_v15  ;;  %v6737_v48 = vmov 0 }
 0x131   :  { %v677_v55 = vld [vmem:[#allocation28] sm:$0x3] }
 0x132   :  { %v678_v11 = vunpack.c.0.f8e4m3b11 %v677_v55 }
 0x134   :  { %v682_v44 = vand.u32 2147483647, %v678_v11  ;;  %vm684_vm0 = vcmp.ne.f32.partialorder %v678_v11, %v678_v11  ;;  %v685_v62 = vmul.f32 16.0, %v678_v11 }
 0x136   :  { %vm4721_vm7 = vcmp.gt.f32.partialorder %v682_v44, 29.0  ;;  %v4725_v41 = vsel %vm684_vm0, -0.0, %v685_v62 }
 0x137   :  { %v6738_v48 = vsel %vm4721_vm7, 4294967295, %v6737_v48  ;;  %6740 = vst [vmem:[#allocation183_spill] sm:$0xff] %v4725_v41 }
 0x138   :  { %6739 = vst [vmem:[#allocation182_spill] sm:$0xff] %v6738_v48 }
 0x139   :  { %706 = vst [vmem:[#allocation29] sm:$0xff] %v4490_v16  ;;  %v6741_v58 = vmov 0 }
 0x140   :  { %v707_v42 = vld [vmem:[#allocation29] sm:$0x3] }
 0x141   :  { %v708_v12 = vunpack.c.0.f8e4m3b11 %v707_v42 }
 0x143   :  { %v712_v60 = vand.u32 2147483647, %v708_v12  ;;  %vm714_vm8 = vcmp.ne.f32.partialorder %v708_v12, %v708_v12  ;;  %v715_v55 = vmul.f32 16.0, %v708_v12 }
 0x145   :  { %vm4731_vm14 = vcmp.gt.f32.partialorder %v712_v60, 29.0  ;;  %v4735_v44 = vsel %vm714_vm8, -0.0, %v715_v55 }
 0x146   :  { %v6742_v58 = vsel %vm4731_vm14, 4294967295, %v6741_v58  ;;  %6744 = vst [vmem:[#allocation185_spill] sm:$0xff] %v4735_v44 }
 0x147   :  { %6743 = vst [vmem:[#allocation184_spill] sm:$0xff] %v6742_v58 }
 0x148   :  { %736 = vst [vmem:[#allocation30] sm:$0xff] %v4484_v13  ;;  %v6745_v41 = vmov 0 }
 0x14f   :  { %v738_v62 = vld [vmem:[#allocation30 + $0x2] sm:$0x3] }
 0x150   :  { %v739_v10 = vunpack.c.0.f8e4m3b11 %v738_v62 }
 0x152   :  { %v743_v5 = vand.u32 2147483647, %v739_v10  ;;  %vm745_vm0 = vcmp.ne.f32.partialorder %v739_v10, %v739_v10  ;;  %v746_v42 = vmul.f32 16.0, %v739_v10 }
 0x154   :  { %vm4741_vm15 = vcmp.gt.f32.partialorder %v743_v5, 29.0  ;;  %v4745_v60 = vsel %vm745_vm0, -0.0, %v746_v42 }
 0x155   :  { %v6746_v41 = vsel %vm4741_vm15, 4294967295, %v6745_v41  ;;  %6748 = vst [vmem:[#allocation187_spill] sm:$0xff] %v4745_v60 }
 0x156   :  { %6747 = vst [vmem:[#allocation186_spill] sm:$0xff] %v6746_v41 }
 0x157   :  { %767 = vst [vmem:[#allocation31] sm:$0xff] %v4486_v14  ;;  %v6749_v58 = vmov 0 }
 0x15e   :  { %v769_v55 = vld [vmem:[#allocation31 + $0x2] sm:$0x3] }
 0x15f   :  { %v770_v11 = vunpack.c.0.f8e4m3b11 %v769_v55 }
 0x161   :  { %v774_v44 = vand.u32 2147483647, %v770_v11  ;;  %vm776_vm8 = vcmp.ne.f32.partialorder %v770_v11, %v770_v11  ;;  %v777_v62 = vmul.f32 16.0, %v770_v11 }
 0x163   :  { %vm4751_vm10 = vcmp.gt.f32.partialorder %v774_v44, 29.0  ;;  %v4755_v5 = vsel %vm776_vm8, -0.0, %v777_v62 }
 0x164   :  { %v6750_v58 = vsel %vm4751_vm10, 4294967295, %v6749_v58  ;;  %6752 = vst [vmem:[#allocation189_spill] sm:$0xff] %v4755_v5 }
 0x165   :  { %6751 = vst [vmem:[#allocation188_spill] sm:$0xff] %v6750_v58 }
 0x166   :  { %798 = vst [vmem:[#allocation32] sm:$0xff] %v4488_v15  ;;  %v6753_v1 = vmov 0 }
 0x16d   :  { %v800_v42 = vld [vmem:[#allocation32 + $0x2] sm:$0x3] }
 0x16e   :  { %v801_v12 = vunpack.c.0.f8e4m3b11 %v800_v42 }
 0x170   :  { %v805_v48 = vand.u32 2147483647, %v801_v12  ;;  %vm807_vm0 = vcmp.ne.f32.partialorder %v801_v12, %v801_v12  ;;  %v808_v55 = vmul.f32 16.0, %v801_v12 }
 0x172   :  { %vm4761_vm14 = vcmp.gt.f32.partialorder %v805_v48, 29.0  ;;  %v4765_v44 = vsel %vm807_vm0, -0.0, %v808_v55 }
 0x173   :  { %v6754_v1 = vsel %vm4761_vm14, 4294967295, %v6753_v1  ;;  %6756 = vst [vmem:[#allocation191_spill] sm:$0xff] %v4765_v44 }
 0x174   :  { %6755 = vst [vmem:[#allocation190_spill] sm:$0xff] %v6754_v1 }
 0x175   :  { %829 = vst [vmem:[#allocation33] sm:$0xff] %v4490_v16  ;;  %v6757_v8 = vmov 0 }
 0x17c   :  { %v831_v62 = vld [vmem:[#allocation33 + $0x2] sm:$0x3] }
 0x17d   :  { %v832_v10 = vunpack.c.0.f8e4m3b11 %v831_v62 }
 0x17f   :  { %v836_v7 = vand.u32 2147483647, %v832_v10  ;;  %vm838_vm8 = vcmp.ne.f32.partialorder %v832_v10, %v832_v10  ;;  %v839_v42 = vmul.f32 16.0, %v832_v10 }
 0x181   :  { %vm4771_vm7 = vcmp.gt.f32.partialorder %v836_v7, 29.0  ;;  %v4775_v48 = vsel %vm838_vm8, -0.0, %v839_v42 }
 0x182   :  { %v6758_v8 = vsel %vm4771_vm7, 4294967295, %v6757_v8  ;;  %6760 = vst [vmem:[#allocation193_spill] sm:$0xff] %v4775_v48 }
 0x183   :  { %6759 = vst [vmem:[#allocation192_spill] sm:$0xff] %v6758_v8 }
 0x184   :  { %860 = vst [vmem:[#allocation34] sm:$0xff] %v4484_v13  ;;  %v6761_v1 = vmov 0 }
 0x18b   :  { %v862_v55 = vld [vmem:[#allocation34 + $0x4] sm:$0x3] }
 0x18c   :  { %v863_v11 = vunpack.c.0.f8e4m3b11 %v862_v55 }
 0x18e   :  { %v867_v44 = vand.u32 2147483647, %v863_v11  ;;  %vm869_vm0 = vcmp.ne.f32.partialorder %v863_v11, %v863_v11  ;;  %v870_v62 = vmul.f32 16.0, %v863_v11 }
 0x190   :  { %vm4781_vm14 = vcmp.gt.f32.partialorder %v867_v44, 29.0  ;;  %v4785_v7 = vsel %vm869_vm0, -0.0, %v870_v62 }
 0x191   :  { %v6762_v1 = vsel %vm4781_vm14, 4294967295, %v6761_v1  ;;  %6764 = vst [vmem:[#allocation195_spill] sm:$0xff] %v4785_v7 }
 0x192   :  { %6763 = vst [vmem:[#allocation194_spill] sm:$0xff] %v6762_v1 }
 0x193   :  { %891 = vst [vmem:[#allocation35] sm:$0xff] %v4486_v14  ;;  %v6765_v8 = vmov 0 }
 0x19a   :  { %v893_v42 = vld [vmem:[#allocation35 + $0x4] sm:$0x3] }
 0x19b   :  { %v894_v12 = vunpack.c.0.f8e4m3b11 %v893_v42 }
 0x19d   :  { %v898_v48 = vand.u32 2147483647, %v894_v12  ;;  %vm900_vm8 = vcmp.ne.f32.partialorder %v894_v12, %v894_v12  ;;  %v901_v55 = vmul.f32 16.0, %v894_v12 }
 0x19f   :  { %vm4791_vm7 = vcmp.gt.f32.partialorder %v898_v48, 29.0  ;;  %v4795_v44 = vsel %vm900_vm8, -0.0, %v901_v55 }
 0x1a0   :  { %v6766_v8 = vsel %vm4791_vm7, 4294967295, %v6765_v8  ;;  %6768 = vst [vmem:[#allocation197_spill] sm:$0xff] %v4795_v44 }
 0x1a1   :  { %6767 = vst [vmem:[#allocation196_spill] sm:$0xff] %v6766_v8 }
 0x1a2   :  { %922 = vst [vmem:[#allocation36] sm:$0xff] %v4488_v15  ;;  %v6769_v50 = vmov 0 }
 0x1a9   :  { %v924_v62 = vld [vmem:[#allocation36 + $0x4] sm:$0x3] }
 0x1aa   :  { %v925_v10 = vunpack.c.0.f8e4m3b11 %v924_v62 }
 0x1ac   :  { %v929_v2 = vand.u32 2147483647, %v925_v10  ;;  %vm931_vm0 = vcmp.ne.f32.partialorder %v925_v10, %v925_v10  ;;  %v932_v42 = vmul.f32 16.0, %v925_v10 }
 0x1ae   :  { %vm4801_vm11 = vcmp.gt.f32.partialorder %v929_v2, 29.0  ;;  %v4805_v48 = vsel %vm931_vm0, -0.0, %v932_v42 }
 0x1af   :  { %v6770_v50 = vsel %vm4801_vm11, 4294967295, %v6769_v50  ;;  %6772 = vst [vmem:[#allocation199_spill] sm:$0xff] %v4805_v48 }
 0x1b0   :  { %6771 = vst [vmem:[#allocation198_spill] sm:$0xff] %v6770_v50 }
 0x1b1   :  { %953 = vst [vmem:[#allocation37] sm:$0xff] %v4490_v16  ;;  %v6773_v53 = vmov 0 }
 0x1b8   :  { %v955_v55 = vld [vmem:[#allocation37 + $0x4] sm:$0x3] }
 0x1b9   :  { %v956_v11 = vunpack.c.0.f8e4m3b11 %v955_v55 }
 0x1bb   :  { %v960_v49 = vand.u32 2147483647, %v956_v11  ;;  %vm962_vm8 = vcmp.ne.f32.partialorder %v956_v11, %v956_v11  ;;  %v963_v62 = vmul.f32 16.0, %v956_v11 }
 0x1bd   :  { %vm4811_vm3 = vcmp.gt.f32.partialorder %v960_v49, 29.0  ;;  %v4815_v2 = vsel %vm962_vm8, -0.0, %v963_v62 }
 0x1be   :  { %v6774_v53 = vsel %vm4811_vm3, 4294967295, %v6773_v53  ;;  %6776 = vst [vmem:[#allocation201_spill] sm:$0xff] %v4815_v2 }
 0x1bf   :  { %6775 = vst [vmem:[#allocation200_spill] sm:$0xff] %v6774_v53 }
 0x1c0   :  { %984 = vst [vmem:[#allocation38] sm:$0xff] %v4484_v13  ;;  %v6777_v50 = vmov 0 }
 0x1c7   :  { %v986_v42 = vld [vmem:[#allocation38 + $0x6] sm:$0x3] }
 0x1c8   :  { %v987_v12 = vunpack.c.0.f8e4m3b11 %v986_v42 }
 0x1ca   :  { %v991_v48 = vand.u32 2147483647, %v987_v12  ;;  %vm993_vm0 = vcmp.ne.f32.partialorder %v987_v12, %v987_v12  ;;  %v994_v55 = vmul.f32 16.0, %v987_v12 }
 0x1cc   :  { %vm4821_vm11 = vcmp.gt.f32.partialorder %v991_v48, 29.0  ;;  %v4825_v49 = vsel %vm993_vm0, -0.0, %v994_v55 }
 0x1cd   :  { %v6778_v50 = vsel %vm4821_vm11, 4294967295, %v6777_v50  ;;  %6780 = vst [vmem:[#allocation203_spill] sm:$0xff] %v4825_v49 }
 0x1ce   :  { %6779 = vst [vmem:[#allocation202_spill] sm:$0xff] %v6778_v50 }
 0x1cf   :  { %1015 = vst [vmem:[#allocation39] sm:$0xff] %v4486_v14  ;;  %v6781_v2 = vmov 0 }
 0x1d6   :  { %v1017_v62 = vld [vmem:[#allocation39 + $0x6] sm:$0x3] }
 0x1d7   :  { %v1018_v10 = vunpack.c.0.f8e4m3b11 %v1017_v62 }
 0x1d9   :  { %v1022_v13 = vand.u32 2147483647, %v1018_v10  ;;  %vm1024_vm8 = vcmp.ne.f32.partialorder %v1018_v10, %v1018_v10  ;;  %v1025_v42 = vmul.f32 16.0, %v1018_v10 }
 0x1db   :  { %vm4831_vm3 = vcmp.gt.f32.partialorder %v1022_v13, 29.0  ;;  %v4835_v48 = vsel %vm1024_vm8, -0.0, %v1025_v42 }
 0x1dc   :  { %v6782_v2 = vsel %vm4831_vm3, 4294967295, %v6781_v2  ;;  %6784 = vst [vmem:[#allocation205_spill] sm:$0xff] %v4835_v48 }
 0x1dd   :  { %6783 = vst [vmem:[#allocation204_spill] sm:$0xff] %v6782_v2 }
 0x1de   :  { %1046 = vst [vmem:[#allocation40] sm:$0xff] %v4488_v15  ;;  %v6785_v53 = vmov 0 }
 0x1e5   :  { %v1048_v55 = vld [vmem:[#allocation40 + $0x6] sm:$0x3] }
 0x1e6   :  { %v1049_v11 = vunpack.c.0.f8e4m3b11 %v1048_v55 }
 0x1e8   :  { %v1053_v14 = vand.u32 2147483647, %v1049_v11  ;;  %vm1055_vm0 = vcmp.ne.f32.partialorder %v1049_v11, %v1049_v11  ;;  %v1056_v62 = vmul.f32 16.0, %v1049_v11 }
 0x1ea   :  { %vm4841_vm9 = vcmp.gt.f32.partialorder %v1053_v14, 29.0  ;;  %v4845_v10 = vsel %vm1055_vm0, -0.0, %v1056_v62 }
 0x1eb   :  { %v6786_v53 = vsel %vm4841_vm9, 4294967295, %v6785_v53  ;;  %6788 = vst [vmem:[#allocation207_spill] sm:$0xff] %v4845_v10 }
 0x1ec   :  { %6787 = vst [vmem:[#allocation206_spill] sm:$0xff] %v6786_v53 }
 0x1ed   :  { %1077 = vst [vmem:[#allocation41] sm:$0xff] %v4490_v16  ;;  %v6789_v52 = vmov 0 }
 0x1f4   :  { %v1079_v42 = vld [vmem:[#allocation41 + $0x6] sm:$0x3] }
 0x1f5   :  { %v1080_v12 = vunpack.c.0.f8e4m3b11 %v1079_v42 }
 0x1f7   :  { %v1084_v15 = vand.u32 2147483647, %v1080_v12  ;;  %vm1086_vm8 = vcmp.ne.f32.partialorder %v1080_v12, %v1080_v12  ;;  %v1087_v55 = vmul.f32 16.0, %v1080_v12 }
 0x1f9   :  { %vm4851_vm1 = vcmp.gt.f32.partialorder %v1084_v15, 29.0  ;;  %v4855_v11 = vsel %vm1086_vm8, -0.0, %v1087_v55 }
 0x1fa   :  { %v6790_v52 = vsel %vm4851_vm1, 4294967295, %v6789_v52  ;;  %6792 = vst [vmem:[#allocation209_spill] sm:$0xff] %v4855_v11 }
 0x1fb   :  { %6791 = vst [vmem:[#allocation208_spill] sm:$0xff] %v6790_v52 }
 0x1fc   :  { %1108 = vst [vmem:[#allocation42] sm:$0xff] %v4492_v17  ;;  %v6793_v10 = vmov 0 }
 0x203   :  { %v1109_v62 = vld [vmem:[#allocation42] sm:$0x3] }
 0x204   :  { %v1110_v13 = vunpack.c.0.f8e4m3b11 %v1109_v62 }
 0x206   :  { %v1114_v16 = vand.u32 2147483647, %v1110_v13  ;;  %vm1116_vm0 = vcmp.ne.f32.partialorder %v1110_v13, %v1110_v13  ;;  %v1117_v42 = vmul.f32 16.0, %v1110_v13 }
 0x208   :  { %vm4861_vm9 = vcmp.gt.f32.partialorder %v1114_v16, 29.0  ;;  %v4865_v12 = vsel %vm1116_vm0, -0.0, %v1117_v42 }
 0x209   :  { %v6794_v10 = vsel %vm4861_vm9, 4294967295, %v6793_v10 }
 0x20a   :  { %1138 = vst [vmem:[#allocation43] sm:$0xff] %v4494_v18  ;;  %v6795_v52 = vmov 0 }
 0x211   :  { %v1139_v55 = vld [vmem:[#allocation43] sm:$0x3] }
 0x212   :  { %v1140_v14 = vunpack.c.0.f8e4m3b11 %v1139_v55 }
 0x214   :  { %v1144_v11 = vand.u32 2147483647, %v1140_v14  ;;  %vm1146_vm8 = vcmp.ne.f32.partialorder %v1140_v14, %v1140_v14  ;;  %v1147_v62 = vmul.f32 16.0, %v1140_v14 }
 0x216   :  { %vm4871_vm1 = vcmp.gt.f32.partialorder %v1144_v11, 29.0  ;;  %v4875_v13 = vsel %vm1146_vm8, -0.0, %v1147_v62 }
 0x217   :  { %v6796_v52 = vsel %vm4871_vm1, 4294967295, %v6795_v52  ;;  %6798 = vst [vmem:[#allocation211_spill] sm:$0xff] %v4875_v13 }
 0x218   :  { %6797 = vst [vmem:[#allocation210_spill] sm:$0xff] %v6796_v52 }
 0x219   :  { %1168 = vst [vmem:[#allocation44] sm:$0xff] %v4496_v19  ;;  %v6799_v57 = vmov 0 }
 0x220   :  { %v1169_v42 = vld [vmem:[#allocation44] sm:$0x3] }
 0x221   :  { %v1170_v15 = vunpack.c.0.f8e4m3b11 %v1169_v42 }
 0x223   :  { %v1174_v53 = vand.u32 2147483647, %v1170_v15  ;;  %vm1176_vm0 = vcmp.ne.f32.partialorder %v1170_v15, %v1170_v15  ;;  %v1177_v55 = vmul.f32 16.0, %v1170_v15 }
 0x225   :  { %vm4881_vm12 = vcmp.gt.f32.partialorder %v1174_v53, 29.0  ;;  %v4885_v11 = vsel %vm1176_vm0, -0.0, %v1177_v55 }
 0x226   :  { %v6800_v57 = vsel %vm4881_vm12, 4294967295, %v6799_v57  ;;  %6802 = vst [vmem:[#allocation213_spill] sm:$0xff] %v4885_v11 }
 0x227   :  { %6801 = vst [vmem:[#allocation212_spill] sm:$0xff] %v6800_v57 }
 0x228   :  { %1198 = vst [vmem:[#allocation45] sm:$0xff] %v4498_v20  ;;  %v6803_v46 = vmov 0 }
 0x22f   :  { %v1199_v62 = vld [vmem:[#allocation45] sm:$0x3] }
 0x230   :  { %v1200_v16 = vunpack.c.0.f8e4m3b11 %v1199_v62 }
 0x232   :  { %v1204_v56 = vand.u32 2147483647, %v1200_v16  ;;  %vm1206_vm8 = vcmp.ne.f32.partialorder %v1200_v16, %v1200_v16  ;;  %v1207_v42 = vmul.f32 16.0, %v1200_v16 }
 0x234   :  { %vm4891_vm6 = vcmp.gt.f32.partialorder %v1204_v56, 29.0  ;;  %v4895_v53 = vsel %vm1206_vm8, -0.0, %v1207_v42 }
 0x235   :  { %v6804_v46 = vsel %vm4891_vm6, 4294967295, %v6803_v46  ;;  %6806 = vst [vmem:[#allocation215_spill] sm:$0xff] %v4895_v53 }
 0x236   :  { %6805 = vst [vmem:[#allocation214_spill] sm:$0xff] %v6804_v46 }
 0x237   :  { %1228 = vst [vmem:[#allocation46] sm:$0xff] %v4492_v17  ;;  %v6807_v57 = vmov 0 }
 0x23e   :  { %v1230_v55 = vld [vmem:[#allocation46 + $0x2] sm:$0x3] }
 0x23f   :  { %v1231_v14 = vunpack.c.0.f8e4m3b11 %v1230_v55 }
 0x241   :  { %v1235_v11 = vand.u32 2147483647, %v1231_v14  ;;  %vm1237_vm0 = vcmp.ne.f32.partialorder %v1231_v14, %v1231_v14  ;;  %v1238_v62 = vmul.f32 16.0, %v1231_v14 }
 0x243   :  { %vm4901_vm12 = vcmp.gt.f32.partialorder %v1235_v11, 29.0  ;;  %v4905_v56 = vsel %vm1237_vm0, -0.0, %v1238_v62 }
 0x244   :  { %v6808_v57 = vsel %vm4901_vm12, 4294967295, %v6807_v57 }
 0x245   :  { %1259 = vst [vmem:[#allocation47] sm:$0xff] %v4494_v18  ;;  %v6809_v46 = vmov 0 }
 0x24c   :  { %v1261_v42 = vld [vmem:[#allocation47 + $0x2] sm:$0x3] }
 0x24d   :  { %v1262_v15 = vunpack.c.0.f8e4m3b11 %v1261_v42 }
 0x24f   :  { %v1266_v53 = vand.u32 2147483647, %v1262_v15  ;;  %vm1268_vm8 = vcmp.ne.f32.partialorder %v1262_v15, %v1262_v15  ;;  %v1269_v55 = vmul.f32 16.0, %v1262_v15 }
 0x251   :  { %vm4911_vm6 = vcmp.gt.f32.partialorder %v1266_v53, 29.0  ;;  %v4915_v11 = vsel %vm1268_vm8, -0.0, %v1269_v55 }
 0x252   :  { %v6810_v46 = vsel %vm4911_vm6, 4294967295, %v6809_v46  ;;  %6812 = vst [vmem:[#allocation217_spill] sm:$0xff] %v4915_v11 }
 0x253   :  { %6811 = vst [vmem:[#allocation216_spill] sm:$0xff] %v6810_v46 }
 0x254   :  { %1290 = vst [vmem:[#allocation48] sm:$0xff] %v4496_v19  ;;  %v6813_v43 = vmov 0 }
 0x25b   :  { %v1292_v62 = vld [vmem:[#allocation48 + $0x2] sm:$0x3] }
 0x25c   :  { %v1293_v16 = vunpack.c.0.f8e4m3b11 %v1292_v62 }
 0x25e   :  { %v1297_v45 = vand.u32 2147483647, %v1293_v16  ;;  %vm1299_vm0 = vcmp.ne.f32.partialorder %v1293_v16, %v1293_v16  ;;  %v1300_v42 = vmul.f32 16.0, %v1293_v16 }
 0x260   :  { %vm4921_vm4 = vcmp.gt.f32.partialorder %v1297_v45, 29.0  ;;  %v4925_v53 = vsel %vm1299_vm0, -0.0, %v1300_v42 }
 0x261   :  { %v6814_v43 = vsel %vm4921_vm4, 4294967295, %v6813_v43  ;;  %6816 = vst [vmem:[#allocation219_spill] sm:$0xff] %v4925_v53 }
 0x262   :  { %6815 = vst [vmem:[#allocation218_spill] sm:$0xff] %v6814_v43 }
 0x263   :  { %1321 = vst [vmem:[#allocation49] sm:$0xff] %v4498_v20  ;;  %v6817_v51 = vmov 0 }
 0x26a   :  { %v1323_v55 = vld [vmem:[#allocation49 + $0x2] sm:$0x3] }
 0x26b   :  { %v1324_v14 = vunpack.c.0.f8e4m3b11 %v1323_v55 }
 0x26d   :  { %v1328_v4 = vand.u32 2147483647, %v1324_v14  ;;  %vm1330_vm8 = vcmp.ne.f32.partialorder %v1324_v14, %v1324_v14  ;;  %v1331_v62 = vmul.f32 16.0, %v1324_v14 }
 0x26f   :  { %vm4931_vm2 = vcmp.gt.f32.partialorder %v1328_v4, 29.0  ;;  %v4935_v45 = vsel %vm1330_vm8, -0.0, %v1331_v62 }
 0x270   :  { %v6818_v51 = vsel %vm4931_vm2, 4294967295, %v6817_v51  ;;  %6820 = vst [vmem:[#allocation221_spill] sm:$0xff] %v4935_v45 }
 0x271   :  { %6819 = vst [vmem:[#allocation220_spill] sm:$0xff] %v6818_v51 }
 0x272   :  { %1352 = vst [vmem:[#allocation50] sm:$0xff] %v4492_v17  ;;  %v6821_v43 = vmov 0 }
 0x279   :  { %v1354_v42 = vld [vmem:[#allocation50 + $0x4] sm:$0x3] }
 0x27a   :  { %v1355_v15 = vunpack.c.0.f8e4m3b11 %v1354_v42 }
 0x27c   :  { %v1359_v53 = vand.u32 2147483647, %v1355_v15  ;;  %vm1361_vm0 = vcmp.ne.f32.partialorder %v1355_v15, %v1355_v15  ;;  %v1362_v55 = vmul.f32 16.0, %v1355_v15 }
 0x27e   :  { %vm4941_vm4 = vcmp.gt.f32.partialorder %v1359_v53, 29.0  ;;  %v4945_v4 = vsel %vm1361_vm0, -0.0, %v1362_v55 }
 0x27f   :  { %v6822_v43 = vsel %vm4941_vm4, 4294967295, %v6821_v43 }
 0x280   :  { %1383 = vst [vmem:[#allocation51] sm:$0xff] %v4494_v18  ;;  %v6823_v51 = vmov 0 }
 0x287   :  { %v1385_v62 = vld [vmem:[#allocation51 + $0x4] sm:$0x3] }
 0x288   :  { %v1386_v16 = vunpack.c.0.f8e4m3b11 %v1385_v62 }
 0x28a   :  { %v1390_v45 = vand.u32 2147483647, %v1386_v16  ;;  %vm1392_vm8 = vcmp.ne.f32.partialorder %v1386_v16, %v1386_v16  ;;  %v1393_v42 = vmul.f32 16.0, %v1386_v16 }
 0x28c   :  { %vm4951_vm2 = vcmp.gt.f32.partialorder %v1390_v45, 29.0  ;;  %v4955_v53 = vsel %vm1392_vm8, -0.0, %v1393_v42 }
 0x28d   :  { %v6824_v51 = vsel %vm4951_vm2, 4294967295, %v6823_v51 }
 0x28e   :  { %1414 = vst [vmem:[#allocation52] sm:$0xff] %v4496_v19  ;;  %v6825_v61 = vmov 0 }
 0x295   :  { %v1416_v55 = vld [vmem:[#allocation52 + $0x4] sm:$0x3] }
 0x296   :  { %v1417_v14 = vunpack.c.0.f8e4m3b11 %v1416_v55 }
 0x298   :  { %v1421_v47 = vand.u32 2147483647, %v1417_v14  ;;  %vm1423_vm0 = vcmp.ne.f32.partialorder %v1417_v14, %v1417_v14  ;;  %v1424_v62 = vmul.f32 16.0, %v1417_v14 }
 0x29a   :  { %vm4961_vm10 = vcmp.gt.f32.partialorder %v1421_v47, 29.0  ;;  %v4965_v45 = vsel %vm1423_vm0, -0.0, %v1424_v62 }
 0x29b   :  { %v6826_v61 = vsel %vm4961_vm10, 4294967295, %v6825_v61  ;;  %6828 = vst [vmem:[#allocation223_spill] sm:$0xff] %v4965_v45 }
 0x29c   :  { %6827 = vst [vmem:[#allocation222_spill] sm:$0xff] %v6826_v61 }
 0x29d   :  { %1445 = vst [vmem:[#allocation53] sm:$0xff] %v4498_v20  ;;  %v6829_v3 = vmov 0 }
 0x2a4   :  { %v1447_v42 = vld [vmem:[#allocation53 + $0x4] sm:$0x3] }
 0x2a5   :  { %v1448_v15 = vunpack.c.0.f8e4m3b11 %v1447_v42 }
 0x2a7   :  { %v1452_v63 = vand.u32 2147483647, %v1448_v15  ;;  %vm1454_vm8 = vcmp.ne.f32.partialorder %v1448_v15, %v1448_v15  ;;  %v1455_v55 = vmul.f32 16.0, %v1448_v15 }
 0x2a9   :  { %vm4971_vm5 = vcmp.gt.f32.partialorder %v1452_v63, 29.0  ;;  %v4975_v47 = vsel %vm1454_vm8, -0.0, %v1455_v55 }
 0x2aa   :  { %v6830_v3 = vsel %vm4971_vm5, 4294967295, %v6829_v3  ;;  %6832 = vst [vmem:[#allocation225_spill] sm:$0xff] %v4975_v47 }
 0x2ab   :  { %6831 = vst [vmem:[#allocation224_spill] sm:$0xff] %v6830_v3 }
 0x2ac   :  { %1476 = vst [vmem:[#allocation54] sm:$0xff] %v4492_v17  ;;  %v6833_v61 = vmov 0 }
 0x2b3   :  { %v1478_v62 = vld [vmem:[#allocation54 + $0x6] sm:$0x3] }
 0x2b4   :  { %v1479_v16 = vunpack.c.0.f8e4m3b11 %v1478_v62 }
 0x2b6   :  { %v1483_v45 = vand.u32 2147483647, %v1479_v16  ;;  %vm1485_vm0 = vcmp.ne.f32.partialorder %v1479_v16, %v1479_v16  ;;  %v1486_v42 = vmul.f32 16.0, %v1479_v16 }
 0x2b8   :  { %vm4981_vm10 = vcmp.gt.f32.partialorder %v1483_v45, 29.0  ;;  %v4985_v63 = vsel %vm1485_vm0, -0.0, %v1486_v42 }
 0x2b9   :  { %v6834_v61 = vsel %vm4981_vm10, 4294967295, %v6833_v61 }
 0x2ba   :  { %1507 = vst [vmem:[#allocation55] sm:$0xff] %v4494_v18  ;;  %v6835_v47 = vmov 0 }
 0x2c1   :  { %v1509_v55 = vld [vmem:[#allocation55 + $0x6] sm:$0x3] }
 0x2c2   :  { %v1510_v14 = vunpack.c.0.f8e4m3b11 %v1509_v55 }
 0x2c4   :  { %v1514_v17 = vand.u32 2147483647, %v1510_v14  ;;  %vm1516_vm8 = vcmp.ne.f32.partialorder %v1510_v14, %v1510_v14  ;;  %v1517_v62 = vmul.f32 16.0, %v1510_v14 }
 0x2c6   :  { %vm4991_vm5 = vcmp.gt.f32.partialorder %v1514_v17, 29.0  ;;  %v4995_v45 = vsel %vm1516_vm8, -0.0, %v1517_v62 }
 0x2c7   :  { %v6836_v47 = vsel %vm4991_vm5, 4294967295, %v6835_v47 }
 0x2c8   :  { %1538 = vst [vmem:[#allocation56] sm:$0xff] %v4496_v19  ;;  %v6837_v3 = vmov 0 }
 0x2cf   :  { %v1540_v42 = vld [vmem:[#allocation56 + $0x6] sm:$0x3] }
 0x2d0   :  { %v1541_v15 = vunpack.c.0.f8e4m3b11 %v1540_v42 }
 0x2d2   :  { %v1545_v18 = vand.u32 2147483647, %v1541_v15  ;;  %vm1547_vm0 = vcmp.ne.f32.partialorder %v1541_v15, %v1541_v15  ;;  %v1548_v55 = vmul.f32 16.0, %v1541_v15 }
 0x2d4   :  { %vm5001_vm15 = vcmp.gt.f32.partialorder %v1545_v18, 29.0  ;;  %v5005_v14 = vsel %vm1547_vm0, -0.0, %v1548_v55 }
 0x2d5   :  { %v6838_v3 = vsel %vm5001_vm15, 4294967295, %v6837_v3  ;;  %6840 = vst [vmem:[#allocation227_spill] sm:$0xff] %v5005_v14 }
 0x2d6   :  { %6839 = vst [vmem:[#allocation226_spill] sm:$0xff] %v6838_v3 }
 0x2d7   :  { %1569 = vst [vmem:[#allocation57] sm:$0xff] %v4498_v20  ;;  %v6841_v54 = vmov 0 }
 0x2de   :  { %v1571_v62 = vld [vmem:[#allocation57 + $0x6] sm:$0x3] }
 0x2df   :  { %v1572_v16 = vunpack.c.0.f8e4m3b11 %v1571_v62 }
 0x2e1   :  { %v1576_v19 = vand.u32 2147483647, %v1572_v16  ;;  %vm1578_vm8 = vcmp.ne.f32.partialorder %v1572_v16, %v1572_v16  ;;  %v1579_v42 = vmul.f32 16.0, %v1572_v16 }
 0x2e3   :  { %vm5011_vm13 = vcmp.gt.f32.partialorder %v1576_v19, 29.0  ;;  %v5015_v15 = vsel %vm1578_vm8, -0.0, %v1579_v42 }
 0x2e4   :  { %v6842_v54 = vsel %vm5011_vm13, 4294967295, %v6841_v54  ;;  %6844 = vst [vmem:[#allocation229_spill] sm:$0xff] %v5015_v15 }
 0x2e5   :  { %6843 = vst [vmem:[#allocation228_spill] sm:$0xff] %v6842_v54 }
 0x2e6   :  { %1600 = vst [vmem:[#allocation58] sm:$0xff] %v4500_v21 }
 0x2ed   :  { %v1601_v55 = vld [vmem:[#allocation58] sm:$0x3] }
 0x2ee   :  { %v1602_v17 = vunpack.c.0.f8e4m3b11 %v1601_v55 }
 0x2f0   :  { %v1606_v20 = vand.u32 2147483647, %v1602_v17  ;;  %vm1608_vm0 = vcmp.ne.f32.partialorder %v1602_v17, %v1602_v17  ;;  %v1609_v62 = vmul.f32 16.0, %v1602_v17 }
 0x2f2   :  { %vm5021_vm15 = vcmp.gt.f32.partialorder %v1606_v20, 29.0  ;;  %v5025_v16 = vsel %vm1608_vm0, -0.0, %v1609_v62 }
 0x2f3   :  { %1630 = vst [vmem:[#allocation59] sm:$0xff] %v4502_v22 }
 0x2fa   :  { %v1631_v42 = vld [vmem:[#allocation59] sm:$0x3] }
 0x2fb   :  { %v1632_v18 = vunpack.c.0.f8e4m3b11 %v1631_v42 }
 0x2fd   :  { %v1636_v15 = vand.u32 2147483647, %v1632_v18  ;;  %vm1638_vm8 = vcmp.ne.f32.partialorder %v1632_v18, %v1632_v18  ;;  %v1639_v55 = vmul.f32 16.0, %v1632_v18 }
 0x2ff   :  { %vm5031_vm13 = vcmp.gt.f32.partialorder %v1636_v15, 29.0  ;;  %v5035_v17 = vsel %vm1638_vm8, -0.0, %v1639_v55 }
 0x300   :  { %1660 = vst [vmem:[#allocation60] sm:$0xff] %v4504_v23  ;;  %v6849_v5 = vmov 0 }
 0x307   :  { %v1661_v62 = vld [vmem:[#allocation60] sm:$0x3] }
 0x308   :  { %v1662_v19 = vunpack.c.0.f8e4m3b11 %v1661_v62 }
 0x30a   :  { %v1666_v3 = vand.u32 2147483647, %v1662_v19  ;;  %vm1668_vm0 = vcmp.ne.f32.partialorder %v1662_v19, %v1662_v19  ;;  %v1669_v42 = vmul.f32 16.0, %v1662_v19 }
 0x30c   :  { %vm5041_vm3 = vcmp.gt.f32.partialorder %v1666_v3, 29.0  ;;  %v5045_v15 = vsel %vm1668_vm0, -0.0, %v1669_v42 }
 0x30d   :  { %v6850_v5 = vsel %vm5041_vm3, 4294967295, %v6849_v5  ;;  %6852 = vst [vmem:[#allocation231_spill] sm:$0xff] %v5045_v15 }
 0x30e   :  { %6851 = vst [vmem:[#allocation230_spill] sm:$0xff] %v6850_v5 }
 0x30f   :  { %1690 = vst [vmem:[#allocation61] sm:$0xff] %v4506_v24  ;;  %v6853_v9 = vmov 0 }
 0x316   :  { %v1691_v55 = vld [vmem:[#allocation61] sm:$0x3] }
 0x317   :  { %v1692_v20 = vunpack.c.0.f8e4m3b11 %v1691_v55 }
 0x319   :  { %v1696_v58 = vand.u32 2147483647, %v1692_v20  ;;  %vm1698_vm8 = vcmp.ne.f32.partialorder %v1692_v20, %v1692_v20  ;;  %v1699_v62 = vmul.f32 16.0, %v1692_v20 }
 0x31b   :  { %vm5051_vm7 = vcmp.gt.f32.partialorder %v1696_v58, 29.0  ;;  %v5055_v3 = vsel %vm1698_vm8, -0.0, %v1699_v62 }
 0x31c   :  { %v6854_v9 = vsel %vm5051_vm7, 4294967295, %v6853_v9  ;;  %6856 = vst [vmem:[#allocation233_spill] sm:$0xff] %v5055_v3 }
 0x31d   :  { %6855 = vst [vmem:[#allocation232_spill] sm:$0xff] %v6854_v9 }
 0x31e   :  { %1720 = vst [vmem:[#allocation62] sm:$0xff] %v4500_v21 }
 0x325   :  { %v1722_v42 = vld [vmem:[#allocation62 + $0x2] sm:$0x3] }
 0x326   :  { %v1723_v18 = vunpack.c.0.f8e4m3b11 %v1722_v42 }
 0x328   :  { %v1727_v15 = vand.u32 2147483647, %v1723_v18  ;;  %vm1729_vm0 = vcmp.ne.f32.partialorder %v1723_v18, %v1723_v18  ;;  %v1730_v55 = vmul.f32 16.0, %v1723_v18 }
 0x32a   :  { %vm5061_vm3 = vcmp.gt.f32.partialorder %v1727_v15, 29.0  ;;  %v5065_v58 = vsel %vm1729_vm0, -0.0, %v1730_v55 }
 0x32b   :  { %1751 = vst [vmem:[#allocation63] sm:$0xff] %v4502_v22 }
 0x332   :  { %v1753_v62 = vld [vmem:[#allocation63 + $0x2] sm:$0x3] }
 0x333   :  { %v1754_v19 = vunpack.c.0.f8e4m3b11 %v1753_v62 }
 0x335   :  { %v1758_v3 = vand.u32 2147483647, %v1754_v19  ;;  %vm1760_vm8 = vcmp.ne.f32.partialorder %v1754_v19, %v1754_v19  ;;  %v1761_v42 = vmul.f32 16.0, %v1754_v19 }
 0x337   :  { %vm5071_vm7 = vcmp.gt.f32.partialorder %v1758_v3, 29.0  ;;  %v5075_v15 = vsel %vm1760_vm8, -0.0, %v1761_v42 }
 0x338   :  { %1782 = vst [vmem:[#allocation64] sm:$0xff] %v4504_v23  ;;  %v6861_v60 = vmov 0 }
 0x33f   :  { %v1784_v55 = vld [vmem:[#allocation64 + $0x2] sm:$0x3] }
 0x340   :  { %v1785_v20 = vunpack.c.0.f8e4m3b11 %v1784_v55 }
 0x342   :  { %v1789_v59 = vand.u32 2147483647, %v1785_v20  ;;  %vm1791_vm0 = vcmp.ne.f32.partialorder %v1785_v20, %v1785_v20  ;;  %v1792_v62 = vmul.f32 16.0, %v1785_v20 }
 0x344   :  { %vm5081_vm11 = vcmp.gt.f32.partialorder %v1789_v59, 29.0  ;;  %v5085_v3 = vsel %vm1791_vm0, -0.0, %v1792_v62 }
 0x345   :  { %v6862_v60 = vsel %vm5081_vm11, 4294967295, %v6861_v60  ;;  %6864 = vst [vmem:[#allocation235_spill] sm:$0xff] %v5085_v3 }
 0x346   :  { %6863 = vst [vmem:[#allocation234_spill] sm:$0xff] %v6862_v60 }
 0x347   :  { %1813 = vst [vmem:[#allocation65] sm:$0xff] %v4506_v24  ;;  %v6865_v6 = vmov 0 }
 0x34e   :  { %v1815_v42 = vld [vmem:[#allocation65 + $0x2] sm:$0x3] }
 0x34f   :  { %v1816_v18 = vunpack.c.0.f8e4m3b11 %v1815_v42 }
 0x351   :  { %v1820_v41 = vand.u32 2147483647, %v1816_v18  ;;  %vm1822_vm8 = vcmp.ne.f32.partialorder %v1816_v18, %v1816_v18  ;;  %v1823_v55 = vmul.f32 16.0, %v1816_v18 }
 0x353   :  { %vm5091_vm14 = vcmp.gt.f32.partialorder %v1820_v41, 29.0  ;;  %v5095_v59 = vsel %vm1822_vm8, -0.0, %v1823_v55 }
 0x354   :  { %v6866_v6 = vsel %vm5091_vm14, 4294967295, %v6865_v6  ;;  %6868 = vst [vmem:[#allocation237_spill] sm:$0xff] %v5095_v59 }
 0x355   :  { %6867 = vst [vmem:[#allocation236_spill] sm:$0xff] %v6866_v6 }
 0x356   :  { %1844 = vst [vmem:[#allocation66] sm:$0xff] %v4500_v21 }
 0x35d   :  { %v1846_v62 = vld [vmem:[#allocation66 + $0x4] sm:$0x3] }
 0x35e   :  { %v1847_v19 = vunpack.c.0.f8e4m3b11 %v1846_v62 }
 0x360   :  { %v1851_v3 = vand.u32 2147483647, %v1847_v19  ;;  %vm1853_vm0 = vcmp.ne.f32.partialorder %v1847_v19, %v1847_v19  ;;  %v1854_v42 = vmul.f32 16.0, %v1847_v19 }
 0x362   :  { %vm5101_vm11 = vcmp.gt.f32.partialorder %v1851_v3, 29.0  ;;  %v5105_v41 = vsel %vm1853_vm0, -0.0, %v1854_v42 }
 0x363   :  { %1875 = vst [vmem:[#allocation67] sm:$0xff] %v4502_v22 }
 0x36a   :  { %v1877_v55 = vld [vmem:[#allocation67 + $0x4] sm:$0x3] }
 0x36b   :  { %v1878_v20 = vunpack.c.0.f8e4m3b11 %v1877_v55 }
 0x36d   :  { %v1882_v59 = vand.u32 2147483647, %v1878_v20  ;;  %vm1884_vm8 = vcmp.ne.f32.partialorder %v1878_v20, %v1878_v20  ;;  %v1885_v62 = vmul.f32 16.0, %v1878_v20 }
 0x36f   :  { %vm5111_vm14 = vcmp.gt.f32.partialorder %v1882_v59, 29.0  ;;  %v5115_v3 = vsel %vm1884_vm8, -0.0, %v1885_v62 }
 0x370   :  { %1906 = vst [vmem:[#allocation68] sm:$0xff] %v4504_v23  ;;  %v6873_v48 = vmov 0 }
 0x377   :  { %v1908_v42 = vld [vmem:[#allocation68 + $0x4] sm:$0x3] }
 0x378   :  { %v1909_v18 = vunpack.c.0.f8e4m3b11 %v1908_v42 }
 0x37a   :  { %v1913_v0 = vand.u32 2147483647, %v1909_v18  ;;  %vm1915_vm0 = vcmp.ne.f32.partialorder %v1909_v18, %v1909_v18  ;;  %v1916_v55 = vmul.f32 16.0, %v1909_v18 }
 0x37c   :  { %vm5121_vm6 = vcmp.gt.f32.partialorder %v1913_v0, 29.0  ;;  %v5125_v59 = vsel %vm1915_vm0, -0.0, %v1916_v55 }
 0x37d   :  { %v6874_v48 = vsel %vm5121_vm6, 4294967295, %v6873_v48  ;;  %6876 = vst [vmem:[#allocation239_spill] sm:$0xff] %v5125_v59 }
 0x37e   :  { %6875 = vst [vmem:[#allocation238_spill] sm:$0xff] %v6874_v48 }
 0x37f   :  { %1937 = vst [vmem:[#allocation69] sm:$0xff] %v4506_v24  ;;  %v6877_v44 = vmov 0 }
 0x386   :  { %v1939_v62 = vld [vmem:[#allocation69 + $0x4] sm:$0x3] }
 0x387   :  { %v1940_v19 = vunpack.c.0.f8e4m3b11 %v1939_v62 }
 0x389   :  { %v1944_v2 = vand.u32 2147483647, %v1940_v19  ;;  %vm1946_vm8 = vcmp.ne.f32.partialorder %v1940_v19, %v1940_v19  ;;  %v1947_v42 = vmul.f32 16.0, %v1940_v19 }
 0x38b   :  { %vm5131_vm1 = vcmp.gt.f32.partialorder %v1944_v2, 29.0  ;;  %v5135_v0 = vsel %vm1946_vm8, -0.0, %v1947_v42 }
 0x38c   :  { %v6878_v44 = vsel %vm5131_vm1, 4294967295, %v6877_v44  ;;  %6880 = vst [vmem:[#allocation241_spill] sm:$0xff] %v5135_v0 }
 0x38d   :  { %6879 = vst [vmem:[#allocation240_spill] sm:$0xff] %v6878_v44 }
 0x38e   :  { %1968 = vst [vmem:[#allocation70] sm:$0xff] %v4500_v21 }
 0x395   :  { %v1970_v55 = vld [vmem:[#allocation70 + $0x6] sm:$0x3] }
 0x396   :  { %v1971_v20 = vunpack.c.0.f8e4m3b11 %v1970_v55 }
 0x398   :  { %v1975_v59 = vand.u32 2147483647, %v1971_v20  ;;  %vm1977_vm0 = vcmp.ne.f32.partialorder %v1971_v20, %v1971_v20  ;;  %v1978_v62 = vmul.f32 16.0, %v1971_v20 }
 0x39a   :  { %vm5141_vm6 = vcmp.gt.f32.partialorder %v1975_v59, 29.0  ;;  %v5145_v2 = vsel %vm1977_vm0, -0.0, %v1978_v62 }
 0x39b   :  { %1999 = vst [vmem:[#allocation71] sm:$0xff] %v4502_v22 }
 0x3a2   :  { %v2001_v42 = vld [vmem:[#allocation71 + $0x6] sm:$0x3] }
 0x3a3   :  { %v2002_v18 = vunpack.c.0.f8e4m3b11 %v2001_v42 }
 0x3a5   :  { %v2006_v21 = vand.u32 2147483647, %v2002_v18  ;;  %vm2008_vm8 = vcmp.ne.f32.partialorder %v2002_v18, %v2002_v18  ;;  %v2009_v55 = vmul.f32 16.0, %v2002_v18 }
 0x3a7   :  { %vm5151_vm1 = vcmp.gt.f32.partialorder %v2006_v21, 29.0  ;;  %v5155_v59 = vsel %vm2008_vm8, -0.0, %v2009_v55 }
 0x3a8   :  { %2030 = vst [vmem:[#allocation72] sm:$0xff] %v4504_v23  ;;  %v6885_v44 = vmov 0 }
 0x3af   :  { %v2032_v62 = vld [vmem:[#allocation72 + $0x6] sm:$0x3] }
 0x3b0   :  { %v2033_v19 = vunpack.c.0.f8e4m3b11 %v2032_v62 }
 0x3b2   :  { %v2037_v22 = vand.u32 2147483647, %v2033_v19  ;;  %vm2039_vm0 = vcmp.ne.f32.partialorder %v2033_v19, %v2033_v19  ;;  %v2040_v42 = vmul.f32 16.0, %v2033_v19 }
 0x3b4   :  { %vm5161_vm12 = vcmp.gt.f32.partialorder %v2037_v22, 29.0  ;;  %v5165_v18 = vsel %vm2039_vm0, -0.0, %v2040_v42 }
 0x3b5   :  { %v6886_v44 = vsel %vm5161_vm12, 4294967295, %v6885_v44  ;;  %6888 = vst [vmem:[#allocation243_spill] sm:$0xff] %v5165_v18 }
 0x3b6   :  { %6887 = vst [vmem:[#allocation242_spill] sm:$0xff] %v6886_v44 }
 0x3b7   :  { %2061 = vst [vmem:[#allocation73] sm:$0xff] %v4506_v24  ;;  %v6889_v8 = vmov 0 }
 0x3be   :  { %v2063_v55 = vld [vmem:[#allocation73 + $0x6] sm:$0x3] }
 0x3bf   :  { %v2064_v20 = vunpack.c.0.f8e4m3b11 %v2063_v55 }
 0x3c1   :  { %v2068_v23 = vand.u32 2147483647, %v2064_v20  ;;  %vm2070_vm8 = vcmp.ne.f32.partialorder %v2064_v20, %v2064_v20  ;;  %v2071_v62 = vmul.f32 16.0, %v2064_v20 }
 0x3c3   :  { %vm5171_vm9 = vcmp.gt.f32.partialorder %v2068_v23, 29.0  ;;  %v5175_v19 = vsel %vm2070_vm8, -0.0, %v2071_v62 }
 0x3c4   :  { %v6890_v8 = vsel %vm5171_vm9, 4294967295, %v6889_v8  ;;  %6892 = vst [vmem:[#allocation245_spill] sm:$0xff] %v5175_v19 }
 0x3c5   :  { %6891 = vst [vmem:[#allocation244_spill] sm:$0xff] %v6890_v8 }
 0x3c6   :  { %2092 = vst [vmem:[#allocation74] sm:$0xff] %v4508_v25  ;;  %v6893_v18 = vmov 0 }
 0x3cd   :  { %v2093_v42 = vld [vmem:[#allocation74] sm:$0x3] }
 0x3ce   :  { %v2094_v21 = vunpack.c.0.f8e4m3b11 %v2093_v42 }
 0x3d0   :  { %v2098_v24 = vand.u32 2147483647, %v2094_v21  ;;  %vm2100_vm0 = vcmp.ne.f32.partialorder %v2094_v21, %v2094_v21  ;;  %v2101_v55 = vmul.f32 16.0, %v2094_v21 }
 0x3d2   :  { %vm5181_vm12 = vcmp.gt.f32.partialorder %v2098_v24, 29.0  ;;  %v5185_v20 = vsel %vm2100_vm0, -0.0, %v2101_v55 }
 0x3d3   :  { %v6894_v18 = vsel %vm5181_vm12, 4294967295, %v6893_v18  ;;  %6896 = vst [vmem:[#allocation247_spill] sm:$0xff] %v5185_v20 }
 0x3d4   :  { %6895 = vst [vmem:[#allocation246_spill] sm:$0xff] %v6894_v18 }
 0x3d5   :  { %2122 = vst [vmem:[#allocation75] sm:$0xff] %v4510_v26  ;;  %v6897_v8 = vmov 0 }
 0x3dc   :  { %v2123_v62 = vld [vmem:[#allocation75] sm:$0x3] }
 0x3dd   :  { %v2124_v22 = vunpack.c.0.f8e4m3b11 %v2123_v62 }
 0x3df   :  { %v2128_v19 = vand.u32 2147483647, %v2124_v22  ;;  %vm2130_vm8 = vcmp.ne.f32.partialorder %v2124_v22, %v2124_v22  ;;  %v2131_v42 = vmul.f32 16.0, %v2124_v22 }
 0x3e1   :  { %vm5191_vm9 = vcmp.gt.f32.partialorder %v2128_v19, 29.0  ;;  %v5195_v21 = vsel %vm2130_vm8, -0.0, %v2131_v42 }
 0x3e2   :  { %v6898_v8 = vsel %vm5191_vm9, 4294967295, %v6897_v8  ;;  %6900 = vst [vmem:[#allocation249_spill] sm:$0xff] %v5195_v21 }
 0x3e3   :  { %6899 = vst [vmem:[#allocation248_spill] sm:$0xff] %v6898_v8 }
 0x3e4   :  { %2152 = vst [vmem:[#allocation76] sm:$0xff] %v4512_v27  ;;  %v6901_v20 = vmov 0 }
 0x3eb   :  { %v2153_v55 = vld [vmem:[#allocation76] sm:$0x3] }
 0x3ec   :  { %v2154_v23 = vunpack.c.0.f8e4m3b11 %v2153_v55 }
 0x3ee   :  { %v2158_v44 = vand.u32 2147483647, %v2154_v23  ;;  %vm2160_vm0 = vcmp.ne.f32.partialorder %v2154_v23, %v2154_v23  ;;  %v2161_v62 = vmul.f32 16.0, %v2154_v23 }
 0x3f0   :  { %vm5201_vm12 = vcmp.gt.f32.partialorder %v2158_v44, 29.0  ;;  %v5205_v19 = vsel %vm2160_vm0, -0.0, %v2161_v62 }
 0x3f1   :  { %v6902_v20 = vsel %vm5201_vm12, 4294967295, %v6901_v20  ;;  %6904 = vst [vmem:[#allocation251_spill] sm:$0xff] %v5205_v19 }
 0x3f2   :  { %6903 = vst [vmem:[#allocation250_spill] sm:$0xff] %v6902_v20 }
 0x3f3   :  { %2182 = vst [vmem:[#allocation77] sm:$0xff] %v4514_v28  ;;  %v6905_v8 = vmov 0 }
 0x3fa   :  { %v2183_v42 = vld [vmem:[#allocation77] sm:$0x3] }
 0x3fb   :  { %v2184_v24 = vunpack.c.0.f8e4m3b11 %v2183_v42 }
 0x3fd   :  { %v2188_v21 = vand.u32 2147483647, %v2184_v24  ;;  %vm2190_vm8 = vcmp.ne.f32.partialorder %v2184_v24, %v2184_v24  ;;  %v2191_v55 = vmul.f32 16.0, %v2184_v24 }
 0x3ff   :  { %vm5211_vm9 = vcmp.gt.f32.partialorder %v2188_v21, 29.0  ;;  %v5215_v44 = vsel %vm2190_vm8, -0.0, %v2191_v55 }
 0x400   :  { %v6906_v8 = vsel %vm5211_vm9, 4294967295, %v6905_v8  ;;  %6908 = vst [vmem:[#allocation253_spill] sm:$0xff] %v5215_v44 }
 0x401   :  { %6907 = vst [vmem:[#allocation252_spill] sm:$0xff] %v6906_v8 }
 0x402   :  { %2212 = vst [vmem:[#allocation78] sm:$0xff] %v4508_v25  ;;  %v6909_v20 = vmov 0 }
 0x409   :  { %v2214_v62 = vld [vmem:[#allocation78 + $0x2] sm:$0x3] }
 0x40a   :  { %v2215_v22 = vunpack.c.0.f8e4m3b11 %v2214_v62 }
 0x40c   :  { %v2219_v19 = vand.u32 2147483647, %v2215_v22  ;;  %vm2221_vm0 = vcmp.ne.f32.partialorder %v2215_v22, %v2215_v22  ;;  %v2222_v42 = vmul.f32 16.0, %v2215_v22 }
 0x40e   :  { %vm5221_vm12 = vcmp.gt.f32.partialorder %v2219_v19, 29.0  ;;  %v5225_v21 = vsel %vm2221_vm0, -0.0, %v2222_v42 }
 0x40f   :  { %v6910_v20 = vsel %vm5221_vm12, 4294967295, %v6909_v20  ;;  %6912 = vst [vmem:[#allocation255_spill] sm:$0xff] %v5225_v21 }
 0x410   :  { %6911 = vst [vmem:[#allocation254_spill] sm:$0xff] %v6910_v20 }
 0x411   :  { %2243 = vst [vmem:[#allocation79] sm:$0xff] %v4510_v26  ;;  %v6913_v8 = vmov 0 }
 0x418   :  { %v2245_v55 = vld [vmem:[#allocation79 + $0x2] sm:$0x3] }
 0x419   :  { %v2246_v23 = vunpack.c.0.f8e4m3b11 %v2245_v55 }
 0x41b   :  { %v2250_v44 = vand.u32 2147483647, %v2246_v23  ;;  %vm2252_vm8 = vcmp.ne.f32.partialorder %v2246_v23, %v2246_v23  ;;  %v2253_v62 = vmul.f32 16.0, %v2246_v23 }
 0x41d   :  { %vm5231_vm9 = vcmp.gt.f32.partialorder %v2250_v44, 29.0  ;;  %v5235_v19 = vsel %vm2252_vm8, -0.0, %v2253_v62 }
 0x41e   :  { %v6914_v8 = vsel %vm5231_vm9, 4294967295, %v6913_v8  ;;  %6916 = vst [vmem:[#allocation257_spill] sm:$0xff] %v5235_v19 }
 0x41f   :  { %6915 = vst [vmem:[#allocation256_spill] sm:$0xff] %v6914_v8 }
 0x420   :  { %2274 = vst [vmem:[#allocation80] sm:$0xff] %v4512_v27  ;;  %v6917_v20 = vmov 0 }
 0x427   :  { %v2276_v42 = vld [vmem:[#allocation80 + $0x2] sm:$0x3] }
 0x428   :  { %v2277_v24 = vunpack.c.0.f8e4m3b11 %v2276_v42 }
 0x42a   :  { %v2281_v21 = vand.u32 2147483647, %v2277_v24  ;;  %vm2283_vm0 = vcmp.ne.f32.partialorder %v2277_v24, %v2277_v24  ;;  %v2284_v55 = vmul.f32 16.0, %v2277_v24 }
 0x42c   :  { %vm5241_vm12 = vcmp.gt.f32.partialorder %v2281_v21, 29.0  ;;  %v5245_v44 = vsel %vm2283_vm0, -0.0, %v2284_v55 }
 0x42d   :  { %v6918_v20 = vsel %vm5241_vm12, 4294967295, %v6917_v20  ;;  %6920 = vst [vmem:[#allocation259_spill] sm:$0xff] %v5245_v44 }
 0x42e   :  { %6919 = vst [vmem:[#allocation258_spill] sm:$0xff] %v6918_v20 }
 0x42f   :  { %2305 = vst [vmem:[#allocation81] sm:$0xff] %v4514_v28  ;;  %v6921_v8 = vmov 0 }
 0x436   :  { %v2307_v62 = vld [vmem:[#allocation81 + $0x2] sm:$0x3] }
 0x437   :  { %v2308_v22 = vunpack.c.0.f8e4m3b11 %v2307_v62 }
 0x439   :  { %v2312_v19 = vand.u32 2147483647, %v2308_v22  ;;  %vm2314_vm8 = vcmp.ne.f32.partialorder %v2308_v22, %v2308_v22  ;;  %v2315_v42 = vmul.f32 16.0, %v2308_v22 }
 0x43b   :  { %vm5251_vm9 = vcmp.gt.f32.partialorder %v2312_v19, 29.0  ;;  %v5255_v21 = vsel %vm2314_vm8, -0.0, %v2315_v42 }
 0x43c   :  { %v6922_v8 = vsel %vm5251_vm9, 4294967295, %v6921_v8  ;;  %6924 = vst [vmem:[#allocation261_spill] sm:$0xff] %v5255_v21 }
 0x43d   :  { %6923 = vst [vmem:[#allocation260_spill] sm:$0xff] %v6922_v8 }
 0x43e   :  { %2336 = vst [vmem:[#allocation82] sm:$0xff] %v4508_v25  ;;  %v6925_v20 = vmov 0 }
 0x445   :  { %v2338_v55 = vld [vmem:[#allocation82 + $0x4] sm:$0x3] }
 0x446   :  { %v2339_v23 = vunpack.c.0.f8e4m3b11 %v2338_v55 }
 0x448   :  { %v2343_v44 = vand.u32 2147483647, %v2339_v23  ;;  %vm2345_vm0 = vcmp.ne.f32.partialorder %v2339_v23, %v2339_v23  ;;  %v2346_v62 = vmul.f32 16.0, %v2339_v23 }
 0x44a   :  { %vm5261_vm12 = vcmp.gt.f32.partialorder %v2343_v44, 29.0  ;;  %v5265_v19 = vsel %vm2345_vm0, -0.0, %v2346_v62 }
 0x44b   :  { %v6926_v20 = vsel %vm5261_vm12, 4294967295, %v6925_v20  ;;  %6928 = vst [vmem:[#allocation263_spill] sm:$0xff] %v5265_v19 }
 0x44c   :  { %6927 = vst [vmem:[#allocation262_spill] sm:$0xff] %v6926_v20 }
 0x44d   :  { %2367 = vst [vmem:[#allocation83] sm:$0xff] %v4510_v26  ;;  %v6929_v8 = vmov 0 }
 0x454   :  { %v2369_v42 = vld [vmem:[#allocation83 + $0x4] sm:$0x3] }
 0x455   :  { %v2370_v24 = vunpack.c.0.f8e4m3b11 %v2369_v42 }
 0x457   :  { %v2374_v21 = vand.u32 2147483647, %v2370_v24  ;;  %vm2376_vm8 = vcmp.ne.f32.partialorder %v2370_v24, %v2370_v24  ;;  %v2377_v55 = vmul.f32 16.0, %v2370_v24 }
 0x459   :  { %vm5271_vm9 = vcmp.gt.f32.partialorder %v2374_v21, 29.0  ;;  %v5275_v44 = vsel %vm2376_vm8, -0.0, %v2377_v55 }
 0x45a   :  { %v6930_v8 = vsel %vm5271_vm9, 4294967295, %v6929_v8  ;;  %6932 = vst [vmem:[#allocation265_spill] sm:$0xff] %v5275_v44 }
 0x45b   :  { %6931 = vst [vmem:[#allocation264_spill] sm:$0xff] %v6930_v8 }
 0x45c   :  { %2398 = vst [vmem:[#allocation84] sm:$0xff] %v4512_v27  ;;  %v6933_v19 = vmov 0 }
 0x463   :  { %v2400_v62 = vld [vmem:[#allocation84 + $0x4] sm:$0x3] }
 0x464   :  { %v2401_v22 = vunpack.c.0.f8e4m3b11 %v2400_v62 }
 0x466   :  { %v2405_v18 = vand.u32 2147483647, %v2401_v22  ;;  %vm2407_vm0 = vcmp.ne.f32.partialorder %v2401_v22, %v2401_v22  ;;  %v2408_v42 = vmul.f32 16.0, %v2401_v22 }
 0x468   :  { %vm5281_vm12 = vcmp.gt.f32.partialorder %v2405_v18, 29.0  ;;  %v5285_v21 = vsel %vm2407_vm0, -0.0, %v2408_v42 }
 0x469   :  { %v6934_v19 = vsel %vm5281_vm12, 4294967295, %v6933_v19  ;;  %6936 = vst [vmem:[#allocation267_spill] sm:$0xff] %v5285_v21 }
 0x46a   :  { %6935 = vst [vmem:[#allocation266_spill] sm:$0xff] %v6934_v19 }
 0x46b   :  { %2429 = vst [vmem:[#allocation85] sm:$0xff] %v4514_v28  ;;  %v6937_v8 = vmov 0 }
 0x472   :  { %v2431_v55 = vld [vmem:[#allocation85 + $0x4] sm:$0x3] }
 0x473   :  { %v2432_v23 = vunpack.c.0.f8e4m3b11 %v2431_v55 }
 0x475   :  { %v2436_v44 = vand.u32 2147483647, %v2432_v23  ;;  %vm2438_vm8 = vcmp.ne.f32.partialorder %v2432_v23, %v2432_v23  ;;  %v2439_v62 = vmul.f32 16.0, %v2432_v23 }
 0x477   :  { %vm5291_vm9 = vcmp.gt.f32.partialorder %v2436_v44, 29.0  ;;  %v5295_v18 = vsel %vm2438_vm8, -0.0, %v2439_v62 }
 0x478   :  { %v6938_v8 = vsel %vm5291_vm9, 4294967295, %v6937_v8  ;;  %6940 = vst [vmem:[#allocation269_spill] sm:$0xff] %v5295_v18 }
 0x479   :  { %6939 = vst [vmem:[#allocation268_spill] sm:$0xff] %v6938_v8 }
 0x47a   :  { %2460 = vst [vmem:[#allocation86] sm:$0xff] %v4508_v25  ;;  %v6941_v19 = vmov 0 }
 0x481   :  { %v2462_v42 = vld [vmem:[#allocation86 + $0x6] sm:$0x3] }
 0x482   :  { %v2463_v24 = vunpack.c.0.f8e4m3b11 %v2462_v42 }
 0x484   :  { %v2467_v21 = vand.u32 2147483647, %v2463_v24  ;;  %vm2469_vm0 = vcmp.ne.f32.partialorder %v2463_v24, %v2463_v24  ;;  %v2470_v55 = vmul.f32 16.0, %v2463_v24 }
 0x486   :  { %vm5301_vm12 = vcmp.gt.f32.partialorder %v2467_v21, 29.0  ;;  %v5305_v44 = vsel %vm2469_vm0, -0.0, %v2470_v55 }
 0x487   :  { %v6942_v19 = vsel %vm5301_vm12, 4294967295, %v6941_v19  ;;  %6944 = vst [vmem:[#allocation271_spill] sm:$0xff] %v5305_v44 }
 0x488   :  { %6943 = vst [vmem:[#allocation270_spill] sm:$0xff] %v6942_v19 }
 0x489   :  { %2491 = vst [vmem:[#allocation87] sm:$0xff] %v4510_v26  ;;  %v6945_v18 = vmov 0 }
 0x490   :  { %v2493_v62 = vld [vmem:[#allocation87 + $0x6] sm:$0x3] }
 0x491   :  { %v2494_v22 = vunpack.c.0.f8e4m3b11 %v2493_v62 }
 0x493   :  { %v2498_v25 = vand.u32 2147483647, %v2494_v22  ;;  %vm2500_vm8 = vcmp.ne.f32.partialorder %v2494_v22, %v2494_v22  ;;  %v2501_v42 = vmul.f32 16.0, %v2494_v22 }
 0x495   :  { %vm5311_vm9 = vcmp.gt.f32.partialorder %v2498_v25, 29.0  ;;  %v5315_v21 = vsel %vm2500_vm8, -0.0, %v2501_v42 }
 0x496   :  { %v6946_v18 = vsel %vm5311_vm9, 4294967295, %v6945_v18  ;;  %6948 = vst [vmem:[#allocation273_spill] sm:$0xff] %v5315_v21 }
 0x497   :  { %6947 = vst [vmem:[#allocation272_spill] sm:$0xff] %v6946_v18 }
 0x498   :  { %2522 = vst [vmem:[#allocation88] sm:$0xff] %v4512_v27  ;;  %v6949_v8 = vmov 0 }
 0x49f   :  { %v2524_v55 = vld [vmem:[#allocation88 + $0x6] sm:$0x3] }
 0x4a0   :  { %v2525_v23 = vunpack.c.0.f8e4m3b11 %v2524_v55 }
 0x4a2   :  { %v2529_v26 = vand.u32 2147483647, %v2525_v23  ;;  %vm2531_vm0 = vcmp.ne.f32.partialorder %v2525_v23, %v2525_v23  ;;  %v2532_v62 = vmul.f32 16.0, %v2525_v23 }
 0x4a4   :  { %vm5321_vm12 = vcmp.gt.f32.partialorder %v2529_v26, 29.0  ;;  %v5325_v22 = vsel %vm2531_vm0, -0.0, %v2532_v62 }
 0x4a5   :  { %v6950_v8 = vsel %vm5321_vm12, 4294967295, %v6949_v8  ;;  %6952 = vst [vmem:[#allocation275_spill] sm:$0xff] %v5325_v22 }
 0x4a6   :  { %6951 = vst [vmem:[#allocation274_spill] sm:$0xff] %v6950_v8 }
 0x4a7   :  { %2553 = vst [vmem:[#allocation89] sm:$0xff] %v4514_v28  ;;  %v6953_v21 = vmov 0 }
 0x4ae   :  { %v2555_v42 = vld [vmem:[#allocation89 + $0x6] sm:$0x3] }
 0x4af   :  { %v2556_v24 = vunpack.c.0.f8e4m3b11 %v2555_v42 }
 0x4b1   :  { %v2560_v27 = vand.u32 2147483647, %v2556_v24  ;;  %vm2562_vm8 = vcmp.ne.f32.partialorder %v2556_v24, %v2556_v24  ;;  %v2563_v55 = vmul.f32 16.0, %v2556_v24 }
 0x4b3   :  { %vm5331_vm9 = vcmp.gt.f32.partialorder %v2560_v27, 29.0  ;;  %v5335_v23 = vsel %vm2562_vm8, -0.0, %v2563_v55 }
 0x4b4   :  { %v6954_v21 = vsel %vm5331_vm9, 4294967295, %v6953_v21  ;;  %6956 = vst [vmem:[#allocation277_spill] sm:$0xff] %v5335_v23 }
 0x4b5   :  { %6955 = vst [vmem:[#allocation276_spill] sm:$0xff] %v6954_v21 }
 0x4b6   :  { %2584 = vst [vmem:[#allocation90] sm:$0xff] %v4516_v29  ;;  %v6957_v22 = vmov 0 }
 0x4bd   :  { %v2585_v62 = vld [vmem:[#allocation90] sm:$0x3] }
 0x4be   :  { %v2586_v25 = vunpack.c.0.f8e4m3b11 %v2585_v62 }
 0x4c0   :  { %v2590_v28 = vand.u32 2147483647, %v2586_v25  ;;  %vm2592_vm0 = vcmp.ne.f32.partialorder %v2586_v25, %v2586_v25  ;;  %v2593_v42 = vmul.f32 16.0, %v2586_v25 }
 0x4c2   :  { %vm5341_vm12 = vcmp.gt.f32.partialorder %v2590_v28, 29.0  ;;  %v5345_v24 = vsel %vm2592_vm0, -0.0, %v2593_v42 }
 0x4c3   :  { %v6958_v22 = vsel %vm5341_vm12, 4294967295, %v6957_v22  ;;  %6960 = vst [vmem:[#allocation279_spill] sm:$0xff] %v5345_v24 }
 0x4c4   :  { %6959 = vst [vmem:[#allocation278_spill] sm:$0xff] %v6958_v22 }
 0x4c5   :  { %2614 = vst [vmem:[#allocation91] sm:$0xff] %v4518_v30  ;;  %v6961_v21 = vmov 0 }
 0x4cc   :  { %v2615_v55 = vld [vmem:[#allocation91] sm:$0x3] }
 0x4cd   :  { %v2616_v26 = vunpack.c.0.f8e4m3b11 %v2615_v55 }
 0x4cf   :  { %v2620_v23 = vand.u32 2147483647, %v2616_v26  ;;  %vm2622_vm8 = vcmp.ne.f32.partialorder %v2616_v26, %v2616_v26  ;;  %v2623_v62 = vmul.f32 16.0, %v2616_v26 }
 0x4d1   :  { %vm5351_vm9 = vcmp.gt.f32.partialorder %v2620_v23, 29.0  ;;  %v5355_v25 = vsel %vm2622_vm8, -0.0, %v2623_v62 }
 0x4d2   :  { %v6962_v21 = vsel %vm5351_vm9, 4294967295, %v6961_v21  ;;  %6964 = vst [vmem:[#allocation281_spill] sm:$0xff] %v5355_v25 }
 0x4d3   :  { %6963 = vst [vmem:[#allocation280_spill] sm:$0xff] %v6962_v21 }
 0x4d4   :  { %2644 = vst [vmem:[#allocation92] sm:$0xff] %v4520_v31  ;;  %v6965_v18 = vmov 0 }
 0x4db   :  { %v2645_v42 = vld [vmem:[#allocation92] sm:$0x3] }
 0x4dc   :  { %v2646_v27 = vunpack.c.0.f8e4m3b11 %v2645_v42 }
 0x4de   :  { %v2650_v8 = vand.u32 2147483647, %v2646_v27  ;;  %vm2652_vm0 = vcmp.ne.f32.partialorder %v2646_v27, %v2646_v27  ;;  %v2653_v55 = vmul.f32 16.0, %v2646_v27 }
 0x4e0   :  { %vm5361_vm12 = vcmp.gt.f32.partialorder %v2650_v8, 29.0  ;;  %v5365_v23 = vsel %vm2652_vm0, -0.0, %v2653_v55 }
 0x4e1   :  { %v6966_v18 = vsel %vm5361_vm12, 4294967295, %v6965_v18  ;;  %6968 = vst [vmem:[#allocation283_spill] sm:$0xff] %v5365_v23 }
 0x4e2   :  { %6967 = vst [vmem:[#allocation282_spill] sm:$0xff] %v6966_v18 }
 0x4e3   :  { %2674 = vst [vmem:[#allocation93] sm:$0xff] %v4522_v32  ;;  %v6969_v19 = vmov 0 }
 0x4ea   :  { %v2675_v62 = vld [vmem:[#allocation93] sm:$0x3] }
 0x4eb   :  { %v2676_v28 = vunpack.c.0.f8e4m3b11 %v2675_v62 }
 0x4ed   :  { %v2680_v44 = vand.u32 2147483647, %v2676_v28  ;;  %vm2682_vm8 = vcmp.ne.f32.partialorder %v2676_v28, %v2676_v28  ;;  %v2683_v42 = vmul.f32 16.0, %v2676_v28 }
 0x4ef   :  { %vm5371_vm9 = vcmp.gt.f32.partialorder %v2680_v44, 29.0  ;;  %v5375_v8 = vsel %vm2682_vm8, -0.0, %v2683_v42 }
 0x4f0   :  { %v6970_v19 = vsel %vm5371_vm9, 4294967295, %v6969_v19  ;;  %6972 = vst [vmem:[#allocation285_spill] sm:$0xff] %v5375_v8 }
 0x4f1   :  { %6971 = vst [vmem:[#allocation284_spill] sm:$0xff] %v6970_v19 }
 0x4f2   :  { %2704 = vst [vmem:[#allocation94] sm:$0xff] %v4516_v29  ;;  %v6973_v18 = vmov 0 }
 0x4f9   :  { %v2706_v55 = vld [vmem:[#allocation94 + $0x2] sm:$0x3] }
 0x4fa   :  { %v2707_v26 = vunpack.c.0.f8e4m3b11 %v2706_v55 }
 0x4fc   :  { %v2711_v23 = vand.u32 2147483647, %v2707_v26  ;;  %vm2713_vm0 = vcmp.ne.f32.partialorder %v2707_v26, %v2707_v26  ;;  %v2714_v62 = vmul.f32 16.0, %v2707_v26 }
 0x4fe   :  { %vm5381_vm12 = vcmp.gt.f32.partialorder %v2711_v23, 29.0  ;;  %v5385_v44 = vsel %vm2713_vm0, -0.0, %v2714_v62 }
 0x4ff   :  { %v6974_v18 = vsel %vm5381_vm12, 4294967295, %v6973_v18  ;;  %6976 = vst [vmem:[#allocation287_spill] sm:$0xff] %v5385_v44 }
 0x500   :  { %6975 = vst [vmem:[#allocation286_spill] sm:$0xff] %v6974_v18 }
 0x501   :  { %2735 = vst [vmem:[#allocation95] sm:$0xff] %v4518_v30  ;;  %v6977_v19 = vmov 0 }
 0x508   :  { %v2737_v42 = vld [vmem:[#allocation95 + $0x2] sm:$0x3] }
 0x509   :  { %v2738_v27 = vunpack.c.0.f8e4m3b11 %v2737_v42 }
 0x50b   :  { %v2742_v8 = vand.u32 2147483647, %v2738_v27  ;;  %vm2744_vm8 = vcmp.ne.f32.partialorder %v2738_v27, %v2738_v27  ;;  %v2745_v55 = vmul.f32 16.0, %v2738_v27 }
 0x50d   :  { %vm5391_vm9 = vcmp.gt.f32.partialorder %v2742_v8, 29.0  ;;  %v5395_v23 = vsel %vm2744_vm8, -0.0, %v2745_v55 }
 0x50e   :  { %v6978_v19 = vsel %vm5391_vm9, 4294967295, %v6977_v19  ;;  %6980 = vst [vmem:[#allocation289_spill] sm:$0xff] %v5395_v23 }
 0x50f   :  { %6979 = vst [vmem:[#allocation288_spill] sm:$0xff] %v6978_v19 }
 0x510   :  { %2766 = vst [vmem:[#allocation96] sm:$0xff] %v4520_v31  ;;  %v6981_v25 = vmov 0 }
 0x517   :  { %v2768_v62 = vld [vmem:[#allocation96 + $0x2] sm:$0x3] }
 0x518   :  { %v2769_v28 = vunpack.c.0.f8e4m3b11 %v2768_v62 }
 0x51a   :  { %v2773_v20 = vand.u32 2147483647, %v2769_v28  ;;  %vm2775_vm0 = vcmp.ne.f32.partialorder %v2769_v28, %v2769_v28  ;;  %v2776_v42 = vmul.f32 16.0, %v2769_v28 }
 0x51c   :  { %vm5401_vm12 = vcmp.gt.f32.partialorder %v2773_v20, 29.0  ;;  %v5405_v8 = vsel %vm2775_vm0, -0.0, %v2776_v42 }
 0x51d   :  { %v6982_v25 = vsel %vm5401_vm12, 4294967295, %v6981_v25  ;;  %6984 = vst [vmem:[#allocation291_spill] sm:$0xff] %v5405_v8 }
 0x51e   :  { %6983 = vst [vmem:[#allocation290_spill] sm:$0xff] %v6982_v25 }
 0x51f   :  { %2797 = vst [vmem:[#allocation97] sm:$0xff] %v4522_v32  ;;  %v6985_v19 = vmov 0 }
 0x526   :  { %v2799_v55 = vld [vmem:[#allocation97 + $0x2] sm:$0x3] }
 0x527   :  { %v2800_v26 = vunpack.c.0.f8e4m3b11 %v2799_v55 }
 0x529   :  { %v2804_v23 = vand.u32 2147483647, %v2800_v26  ;;  %vm2806_vm8 = vcmp.ne.f32.partialorder %v2800_v26, %v2800_v26  ;;  %v2807_v62 = vmul.f32 16.0, %v2800_v26 }
 0x52b   :  { %vm5411_vm9 = vcmp.gt.f32.partialorder %v2804_v23, 29.0  ;;  %v5415_v20 = vsel %vm2806_vm8, -0.0, %v2807_v62 }
 0x52c   :  { %v6986_v19 = vsel %vm5411_vm9, 4294967295, %v6985_v19  ;;  %6988 = vst [vmem:[#allocation293_spill] sm:$0xff] %v5415_v20 }
 0x52d   :  { %6987 = vst [vmem:[#allocation292_spill] sm:$0xff] %v6986_v19 }
 0x52e   :  { %2828 = vst [vmem:[#allocation98] sm:$0xff] %v4516_v29  ;;  %v6989_v25 = vmov 0 }
 0x535   :  { %v2830_v42 = vld [vmem:[#allocation98 + $0x4] sm:$0x3] }
 0x536   :  { %v2831_v27 = vunpack.c.0.f8e4m3b11 %v2830_v42 }
 0x538   :  { %v2835_v8 = vand.u32 2147483647, %v2831_v27  ;;  %vm2837_vm0 = vcmp.ne.f32.partialorder %v2831_v27, %v2831_v27  ;;  %v2838_v55 = vmul.f32 16.0, %v2831_v27 }
 0x53a   :  { %vm5421_vm12 = vcmp.gt.f32.partialorder %v2835_v8, 29.0  ;;  %v5425_v23 = vsel %vm2837_vm0, -0.0, %v2838_v55 }
 0x53b   :  { %v6990_v25 = vsel %vm5421_vm12, 4294967295, %v6989_v25  ;;  %6992 = vst [vmem:[#allocation295_spill] sm:$0xff] %v5425_v23 }
 0x53c   :  { %6991 = vst [vmem:[#allocation294_spill] sm:$0xff] %v6990_v25 }
 0x53d   :  { %2859 = vst [vmem:[#allocation99] sm:$0xff] %v4518_v30  ;;  %v6993_v19 = vmov 0 }
 0x544   :  { %v2861_v62 = vld [vmem:[#allocation99 + $0x4] sm:$0x3] }
 0x545   :  { %v2862_v28 = vunpack.c.0.f8e4m3b11 %v2861_v62 }
 0x547   :  { %v2866_v20 = vand.u32 2147483647, %v2862_v28  ;;  %vm2868_vm8 = vcmp.ne.f32.partialorder %v2862_v28, %v2862_v28  ;;  %v2869_v42 = vmul.f32 16.0, %v2862_v28 }
 0x549   :  { %vm5431_vm9 = vcmp.gt.f32.partialorder %v2866_v20, 29.0  ;;  %v5435_v8 = vsel %vm2868_vm8, -0.0, %v2869_v42 }
 0x54a   :  { %v6994_v19 = vsel %vm5431_vm9, 4294967295, %v6993_v19  ;;  %6996 = vst [vmem:[#allocation297_spill] sm:$0xff] %v5435_v8 }
 0x54b   :  { %6995 = vst [vmem:[#allocation296_spill] sm:$0xff] %v6994_v19 }
 0x54c   :  { %2890 = vst [vmem:[#allocation100] sm:$0xff] %v4520_v31  ;;  %v6997_v44 = vmov 0 }
 0x553   :  { %v2892_v55 = vld [vmem:[#allocation100 + $0x4] sm:$0x3] }
 0x554   :  { %v2893_v26 = vunpack.c.0.f8e4m3b11 %v2892_v55 }
 0x556   :  { %v2897_v21 = vand.u32 2147483647, %v2893_v26  ;;  %vm2899_vm0 = vcmp.ne.f32.partialorder %v2893_v26, %v2893_v26  ;;  %v2900_v62 = vmul.f32 16.0, %v2893_v26 }
 0x558   :  { %vm5441_vm12 = vcmp.gt.f32.partialorder %v2897_v21, 29.0  ;;  %v5445_v20 = vsel %vm2899_vm0, -0.0, %v2900_v62 }
 0x559   :  { %v6998_v44 = vsel %vm5441_vm12, 4294967295, %v6997_v44  ;;  %7000 = vst [vmem:[#allocation299_spill] sm:$0xff] %v5445_v20 }
 0x55a   :  { %6999 = vst [vmem:[#allocation298_spill] sm:$0xff] %v6998_v44 }
 0x55b   :  { %2921 = vst [vmem:[#allocation101] sm:$0xff] %v4522_v32  ;;  %v7001_v24 = vmov 0 }
 0x562   :  { %v2923_v42 = vld [vmem:[#allocation101 + $0x4] sm:$0x3] }
 0x563   :  { %v2924_v27 = vunpack.c.0.f8e4m3b11 %v2923_v42 }
 0x565   :  { %v2928_v18 = vand.u32 2147483647, %v2924_v27  ;;  %vm2930_vm8 = vcmp.ne.f32.partialorder %v2924_v27, %v2924_v27  ;;  %v2931_v55 = vmul.f32 16.0, %v2924_v27 }
 0x567   :  { %vm5451_vm9 = vcmp.gt.f32.partialorder %v2928_v18, 29.0  ;;  %v5455_v21 = vsel %vm2930_vm8, -0.0, %v2931_v55 }
 0x568   :  { %v7002_v24 = vsel %vm5451_vm9, 4294967295, %v7001_v24  ;;  %7004 = vst [vmem:[#allocation301_spill] sm:$0xff] %v5455_v21 }
 0x569   :  { %7003 = vst [vmem:[#allocation300_spill] sm:$0xff] %v7002_v24 }
 0x56a   :  { %2952 = vst [vmem:[#allocation102] sm:$0xff] %v4516_v29  ;;  %v7005_v44 = vmov 0 }
 0x571   :  { %v2954_v62 = vld [vmem:[#allocation102 + $0x6] sm:$0x3] }
 0x572   :  { %v2955_v28 = vunpack.c.0.f8e4m3b11 %v2954_v62 }
 0x574   :  { %v2959_v20 = vand.u32 2147483647, %v2955_v28  ;;  %vm2961_vm0 = vcmp.ne.f32.partialorder %v2955_v28, %v2955_v28  ;;  %v2962_v42 = vmul.f32 16.0, %v2955_v28 }
 0x576   :  { %vm5461_vm12 = vcmp.gt.f32.partialorder %v2959_v20, 29.0  ;;  %v5465_v18 = vsel %vm2961_vm0, -0.0, %v2962_v42 }
 0x577   :  { %v7006_v44 = vsel %vm5461_vm12, 4294967295, %v7005_v44  ;;  %7008 = vst [vmem:[#allocation303_spill] sm:$0xff] %v5465_v18 }
 0x578   :  { %7007 = vst [vmem:[#allocation302_spill] sm:$0xff] %v7006_v44 }
 0x579   :  { %2983 = vst [vmem:[#allocation103] sm:$0xff] %v4518_v30  ;;  %v7009_v21 = vmov 0 }
 0x580   :  { %v2985_v55 = vld [vmem:[#allocation103 + $0x6] sm:$0x3] }
 0x581   :  { %v2986_v26 = vunpack.c.0.f8e4m3b11 %v2985_v55 }
 0x583   :  { %v2990_v29 = vand.u32 2147483647, %v2986_v26  ;;  %vm2992_vm8 = vcmp.ne.f32.partialorder %v2986_v26, %v2986_v26  ;;  %v2993_v62 = vmul.f32 16.0, %v2986_v26 }
 0x585   :  { %vm5471_vm9 = vcmp.gt.f32.partialorder %v2990_v29, 29.0  ;;  %v5475_v20 = vsel %vm2992_vm8, -0.0, %v2993_v62 }
 0x586   :  { %v7010_v21 = vsel %vm5471_vm9, 4294967295, %v7009_v21  ;;  %7012 = vst [vmem:[#allocation305_spill] sm:$0xff] %v5475_v20 }
 0x587   :  { %7011 = vst [vmem:[#allocation304_spill] sm:$0xff] %v7010_v21 }
 0x588   :  { %3014 = vst [vmem:[#allocation104] sm:$0xff] %v4520_v31  ;;  %v7013_v24 = vmov 0 }
 0x58f   :  { %v3016_v42 = vld [vmem:[#allocation104 + $0x6] sm:$0x3] }
 0x590   :  { %v3017_v27 = vunpack.c.0.f8e4m3b11 %v3016_v42 }
 0x592   :  { %v3021_v30 = vand.u32 2147483647, %v3017_v27  ;;  %vm3023_vm0 = vcmp.ne.f32.partialorder %v3017_v27, %v3017_v27  ;;  %v3024_v55 = vmul.f32 16.0, %v3017_v27 }
 0x594   :  { %vm5481_vm12 = vcmp.gt.f32.partialorder %v3021_v30, 29.0  ;;  %v5485_v26 = vsel %vm3023_vm0, -0.0, %v3024_v55 }
 0x595   :  { %v7014_v24 = vsel %vm5481_vm12, 4294967295, %v7013_v24  ;;  %7016 = vst [vmem:[#allocation307_spill] sm:$0xff] %v5485_v26 }
 0x596   :  { %7015 = vst [vmem:[#allocation306_spill] sm:$0xff] %v7014_v24 }
 0x597   :  { %3045 = vst [vmem:[#allocation105] sm:$0xff] %v4522_v32  ;;  %v7017_v22 = vmov 0 }
 0x59e   :  { %v3047_v62 = vld [vmem:[#allocation105 + $0x6] sm:$0x3] }
 0x59f   :  { %v3048_v28 = vunpack.c.0.f8e4m3b11 %v3047_v62 }
 0x5a1   :  { %v3052_v31 = vand.u32 2147483647, %v3048_v28  ;;  %vm3054_vm8 = vcmp.ne.f32.partialorder %v3048_v28, %v3048_v28  ;;  %v3055_v42 = vmul.f32 16.0, %v3048_v28 }
 0x5a3   :  { %vm5491_vm9 = vcmp.gt.f32.partialorder %v3052_v31, 29.0  ;;  %v5495_v27 = vsel %vm3054_vm8, -0.0, %v3055_v42 }
 0x5a4   :  { %v7018_v22 = vsel %vm5491_vm9, 4294967295, %v7017_v22  ;;  %7020 = vst [vmem:[#allocation309_spill] sm:$0xff] %v5495_v27 }
 0x5a5   :  { %7019 = vst [vmem:[#allocation308_spill] sm:$0xff] %v7018_v22 }
 0x5a6   :  { %3076 = vst [vmem:[#allocation106] sm:$0xff] %v4524_v33  ;;  %v7021_v26 = vmov 0 }
 0x5ad   :  { %v3077_v55 = vld [vmem:[#allocation106] sm:$0x3] }
 0x5ae   :  { %v3078_v29 = vunpack.c.0.f8e4m3b11 %v3077_v55 }
 0x5b0   :  { %v3082_v32 = vand.u32 2147483647, %v3078_v29  ;;  %vm3084_vm0 = vcmp.ne.f32.partialorder %v3078_v29, %v3078_v29  ;;  %v3085_v62 = vmul.f32 16.0, %v3078_v29 }
 0x5b2   :  { %vm5501_vm12 = vcmp.gt.f32.partialorder %v3082_v32, 29.0  ;;  %v5505_v28 = vsel %vm3084_vm0, -0.0, %v3085_v62 }
 0x5b3   :  { %v7022_v26 = vsel %vm5501_vm12, 4294967295, %v7021_v26 }
 0x5b4   :  { %3106 = vst [vmem:[#allocation107] sm:$0xff] %v4526_v34  ;;  %v7023_v22 = vmov 0 }
 0x5bb   :  { %v3107_v42 = vld [vmem:[#allocation107] sm:$0x3] }
 0x5bc   :  { %v3108_v30 = vunpack.c.0.f8e4m3b11 %v3107_v42 }
 0x5be   :  { %v3112_v27 = vand.u32 2147483647, %v3108_v30  ;;  %vm3114_vm8 = vcmp.ne.f32.partialorder %v3108_v30, %v3108_v30  ;;  %v3115_v55 = vmul.f32 16.0, %v3108_v30 }
 0x5c0   :  { %vm5511_vm9 = vcmp.gt.f32.partialorder %v3112_v27, 29.0  ;;  %v5515_v29 = vsel %vm3114_vm8, -0.0, %v3115_v55 }
 0x5c1   :  { %v7024_v22 = vsel %vm5511_vm9, 4294967295, %v7023_v22  ;;  %7026 = vst [vmem:[#allocation311_spill] sm:$0xff] %v5515_v29 }
 0x5c2   :  { %7025 = vst [vmem:[#allocation310_spill] sm:$0xff] %v7024_v22 }
 0x5c3   :  { %3136 = vst [vmem:[#allocation108] sm:$0xff] %v4528_v35  ;;  %v7027_v20 = vmov 0 }
 0x5ca   :  { %v3137_v62 = vld [vmem:[#allocation108] sm:$0x3] }
 0x5cb   :  { %v3138_v31 = vunpack.c.0.f8e4m3b11 %v3137_v62 }
 0x5cd   :  { %v3142_v24 = vand.u32 2147483647, %v3138_v31  ;;  %vm3144_vm0 = vcmp.ne.f32.partialorder %v3138_v31, %v3138_v31  ;;  %v3145_v42 = vmul.f32 16.0, %v3138_v31 }
 0x5cf   :  { %vm5521_vm12 = vcmp.gt.f32.partialorder %v3142_v24, 29.0  ;;  %v5525_v27 = vsel %vm3144_vm0, -0.0, %v3145_v42 }
 0x5d0   :  { %v7028_v20 = vsel %vm5521_vm12, 4294967295, %v7027_v20  ;;  %7030 = vst [vmem:[#allocation313_spill] sm:$0xff] %v5525_v27 }
 0x5d1   :  { %7029 = vst [vmem:[#allocation312_spill] sm:$0xff] %v7028_v20 }
 0x5d2   :  { %3166 = vst [vmem:[#allocation109] sm:$0xff] %v4530_v36  ;;  %v7031_v8 = vmov 0 }
 0x5d9   :  { %v3167_v55 = vld [vmem:[#allocation109] sm:$0x3] }
 0x5da   :  { %v3168_v32 = vunpack.c.0.f8e4m3b11 %v3167_v55 }
 0x5dc   :  { %v3172_v21 = vand.u32 2147483647, %v3168_v32  ;;  %vm3174_vm8 = vcmp.ne.f32.partialorder %v3168_v32, %v3168_v32  ;;  %v3175_v62 = vmul.f32 16.0, %v3168_v32 }
 0x5de   :  { %vm5531_vm9 = vcmp.gt.f32.partialorder %v3172_v21, 29.0  ;;  %v5535_v24 = vsel %vm3174_vm8, -0.0, %v3175_v62 }
 0x5df   :  { %v7032_v8 = vsel %vm5531_vm9, 4294967295, %v7031_v8  ;;  %7034 = vst [vmem:[#allocation315_spill] sm:$0xff] %v5535_v24 }
 0x5e0   :  { %7033 = vst [vmem:[#allocation314_spill] sm:$0xff] %v7032_v8 }
 0x5e1   :  { %3196 = vst [vmem:[#allocation110] sm:$0xff] %v4524_v33  ;;  %v7035_v20 = vmov 0 }
 0x5e8   :  { %v3198_v42 = vld [vmem:[#allocation110 + $0x2] sm:$0x3] }
 0x5e9   :  { %v3199_v30 = vunpack.c.0.f8e4m3b11 %v3198_v42 }
 0x5eb   :  { %v3203_v27 = vand.u32 2147483647, %v3199_v30  ;;  %vm3205_vm0 = vcmp.ne.f32.partialorder %v3199_v30, %v3199_v30  ;;  %v3206_v55 = vmul.f32 16.0, %v3199_v30 }
 0x5ed   :  { %vm5541_vm12 = vcmp.gt.f32.partialorder %v3203_v27, 29.0  ;;  %v5545_v21 = vsel %vm3205_vm0, -0.0, %v3206_v55 }
 0x5ee   :  { %v7036_v20 = vsel %vm5541_vm12, 4294967295, %v7035_v20  ;;  %7038 = vst [vmem:[#allocation317_spill] sm:$0xff] %v5545_v21 }
 0x5ef   :  { %7037 = vst [vmem:[#allocation316_spill] sm:$0xff] %v7036_v20 }
 0x5f0   :  { %3227 = vst [vmem:[#allocation111] sm:$0xff] %v4526_v34  ;;  %v7039_v8 = vmov 0 }
 0x5f7   :  { %v3229_v62 = vld [vmem:[#allocation111 + $0x2] sm:$0x3] }
 0x5f8   :  { %v3230_v31 = vunpack.c.0.f8e4m3b11 %v3229_v62 }
 0x5fa   :  { %v3234_v24 = vand.u32 2147483647, %v3230_v31  ;;  %vm3236_vm8 = vcmp.ne.f32.partialorder %v3230_v31, %v3230_v31  ;;  %v3237_v42 = vmul.f32 16.0, %v3230_v31 }
 0x5fc   :  { %vm5551_vm9 = vcmp.gt.f32.partialorder %v3234_v24, 29.0  ;;  %v5555_v27 = vsel %vm3236_vm8, -0.0, %v3237_v42 }
 0x5fd   :  { %v7040_v8 = vsel %vm5551_vm9, 4294967295, %v7039_v8  ;;  %7042 = vst [vmem:[#allocation319_spill] sm:$0xff] %v5555_v27 }
 0x5fe   :  { %7041 = vst [vmem:[#allocation318_spill] sm:$0xff] %v7040_v8 }
 0x5ff   :  { %3258 = vst [vmem:[#allocation112] sm:$0xff] %v4528_v35  ;;  %v7043_v18 = vmov 0 }
 0x606   :  { %v3260_v55 = vld [vmem:[#allocation112 + $0x2] sm:$0x3] }
 0x607   :  { %v3261_v32 = vunpack.c.0.f8e4m3b11 %v3260_v55 }
 0x609   :  { %v3265_v19 = vand.u32 2147483647, %v3261_v32  ;;  %vm3267_vm0 = vcmp.ne.f32.partialorder %v3261_v32, %v3261_v32  ;;  %v3268_v62 = vmul.f32 16.0, %v3261_v32 }
 0x60b   :  { %vm5561_vm12 = vcmp.gt.f32.partialorder %v3265_v19, 29.0  ;;  %v5565_v24 = vsel %vm3267_vm0, -0.0, %v3268_v62 }
 0x60c   :  { %v7044_v18 = vsel %vm5561_vm12, 4294967295, %v7043_v18  ;;  %7046 = vst [vmem:[#allocation321_spill] sm:$0xff] %v5565_v24 }
 0x60d   :  { %7045 = vst [vmem:[#allocation320_spill] sm:$0xff] %v7044_v18 }
 0x60e   :  { %3289 = vst [vmem:[#allocation113] sm:$0xff] %v4530_v36  ;;  %v7047_v23 = vmov 0 }
 0x615   :  { %v3291_v42 = vld [vmem:[#allocation113 + $0x2] sm:$0x3] }
 0x616   :  { %v3292_v30 = vunpack.c.0.f8e4m3b11 %v3291_v42 }
 0x618   :  { %v3296_v44 = vand.u32 2147483647, %v3292_v30  ;;  %vm3298_vm8 = vcmp.ne.f32.partialorder %v3292_v30, %v3292_v30  ;;  %v3299_v55 = vmul.f32 16.0, %v3292_v30 }
 0x61a   :  { %vm5571_vm9 = vcmp.gt.f32.partialorder %v3296_v44, 29.0  ;;  %v5575_v19 = vsel %vm3298_vm8, -0.0, %v3299_v55 }
 0x61b   :  { %v7048_v23 = vsel %vm5571_vm9, 4294967295, %v7047_v23  ;;  %7050 = vst [vmem:[#allocation323_spill] sm:$0xff] %v5575_v19 }
 0x61c   :  { %7049 = vst [vmem:[#allocation322_spill] sm:$0xff] %v7048_v23 }
 0x61d   :  { %3320 = vst [vmem:[#allocation114] sm:$0xff] %v4524_v33  ;;  %v7051_v18 = vmov 0 }
 0x624   :  { %v3322_v62 = vld [vmem:[#allocation114 + $0x4] sm:$0x3] }
 0x625   :  { %v3323_v31 = vunpack.c.0.f8e4m3b11 %v3322_v62 }
 0x627   :  { %v3327_v24 = vand.u32 2147483647, %v3323_v31  ;;  %vm3329_vm0 = vcmp.ne.f32.partialorder %v3323_v31, %v3323_v31  ;;  %v3330_v42 = vmul.f32 16.0, %v3323_v31 }
 0x629   :  { %vm5581_vm12 = vcmp.gt.f32.partialorder %v3327_v24, 29.0  ;;  %v5585_v44 = vsel %vm3329_vm0, -0.0, %v3330_v42 }
 0x62a   :  { %v7052_v18 = vsel %vm5581_vm12, 4294967295, %v7051_v18 }
 0x62b   :  { %3351 = vst [vmem:[#allocation115] sm:$0xff] %v4526_v34  ;;  %v7053_v23 = vmov 0 }
 0x632   :  { %v3353_v55 = vld [vmem:[#allocation115 + $0x4] sm:$0x3] }
 0x633   :  { %v3354_v32 = vunpack.c.0.f8e4m3b11 %v3353_v55 }
 0x635   :  { %v3358_v19 = vand.u32 2147483647, %v3354_v32  ;;  %vm3360_vm8 = vcmp.ne.f32.partialorder %v3354_v32, %v3354_v32  ;;  %v3361_v62 = vmul.f32 16.0, %v3354_v32 }
 0x637   :  { %vm5591_vm9 = vcmp.gt.f32.partialorder %v3358_v19, 29.0  ;;  %v5595_v24 = vsel %vm3360_vm8, -0.0, %v3361_v62 }
 0x638   :  { %v7054_v23 = vsel %vm5591_vm9, 4294967295, %v7053_v23 }
 0x639   :  { %3382 = vst [vmem:[#allocation116] sm:$0xff] %v4528_v35  ;;  %v7055_v49 = vmov 0 }
 0x640   :  { %v3384_v42 = vld [vmem:[#allocation116 + $0x4] sm:$0x3] }
 0x641   :  { %v3385_v30 = vunpack.c.0.f8e4m3b11 %v3384_v42 }
 0x643   :  { %v3389_v25 = vand.u32 2147483647, %v3385_v30  ;;  %vm3391_vm0 = vcmp.ne.f32.partialorder %v3385_v30, %v3385_v30  ;;  %v3392_v55 = vmul.f32 16.0, %v3385_v30 }
 0x645   :  { %vm5601_vm5 = vcmp.gt.f32.partialorder %v3389_v25, 29.0  ;;  %v5605_v19 = vsel %vm3391_vm0, -0.0, %v3392_v55 }
 0x646   :  { %v7056_v49 = vsel %vm5601_vm5, 4294967295, %v7055_v49  ;;  %7058 = vst [vmem:[#allocation325_spill] sm:$0xff] %v5605_v19 }
 0x647   :  { %7057 = vst [vmem:[#allocation324_spill] sm:$0xff] %v7056_v49 }
 0x648   :  { %3413 = vst [vmem:[#allocation117] sm:$0xff] %v4530_v36  ;;  %v7059_v7 = vmov 0 }
 0x64f   :  { %v3415_v62 = vld [vmem:[#allocation117 + $0x4] sm:$0x3] }
 0x650   :  { %v3416_v31 = vunpack.c.0.f8e4m3b11 %v3415_v62 }
 0x652   :  { %v3420_v50 = vand.u32 2147483647, %v3416_v31  ;;  %vm3422_vm8 = vcmp.ne.f32.partialorder %v3416_v31, %v3416_v31  ;;  %v3423_v42 = vmul.f32 16.0, %v3416_v31 }
 0x654   :  { %vm5611_vm9 = vcmp.gt.f32.partialorder %v3420_v50, 29.0  ;;  %v5615_v25 = vsel %vm3422_vm8, -0.0, %v3423_v42 }
 0x655   :  { %v7060_v7 = vsel %vm5611_vm9, 4294967295, %v7059_v7  ;;  %7062 = vst [vmem:[#allocation327_spill] sm:$0xff] %v5615_v25 }
 0x656   :  { %7061 = vst [vmem:[#allocation326_spill] sm:$0xff] %v7060_v7 }
 0x657   :  { %3444 = vst [vmem:[#allocation118] sm:$0xff] %v4524_v33  ;;  %v7063_v49 = vmov 0 }
 0x65e   :  { %v3446_v55 = vld [vmem:[#allocation118 + $0x6] sm:$0x3] }
 0x65f   :  { %v3447_v32 = vunpack.c.0.f8e4m3b11 %v3446_v55 }
 0x661   :  { %v3451_v19 = vand.u32 2147483647, %v3447_v32  ;;  %vm3453_vm0 = vcmp.ne.f32.partialorder %v3447_v32, %v3447_v32  ;;  %v3454_v62 = vmul.f32 16.0, %v3447_v32 }
 0x663   :  { %vm5621_vm5 = vcmp.gt.f32.partialorder %v3451_v19, 29.0  ;;  %v5625_v50 = vsel %vm3453_vm0, -0.0, %v3454_v62 }
 0x664   :  { %v7064_v49 = vsel %vm5621_vm5, 4294967295, %v7063_v49 }
 0x665   :  { %3475 = vst [vmem:[#allocation119] sm:$0xff] %v4526_v34  ;;  %v7065_v25 = vmov 0 }
 0x66c   :  { %v3477_v42 = vld [vmem:[#allocation119 + $0x6] sm:$0x3] }
 0x66d   :  { %v3478_v30 = vunpack.c.0.f8e4m3b11 %v3477_v42 }
 0x66f   :  { %v3482_v33 = vand.u32 2147483647, %v3478_v30  ;;  %vm3484_vm8 = vcmp.ne.f32.partialorder %v3478_v30, %v3478_v30  ;;  %v3485_v55 = vmul.f32 16.0, %v3478_v30 }
 0x671   :  { %vm5631_vm9 = vcmp.gt.f32.partialorder %v3482_v33, 29.0  ;;  %v5635_v19 = vsel %vm3484_vm8, -0.0, %v3485_v55 }
 0x672   :  { %v7066_v25 = vsel %vm5631_vm9, 4294967295, %v7065_v25 }
 0x673   :  { %3506 = vst [vmem:[#allocation120] sm:$0xff] %v4528_v35  ;;  %v7067_v7 = vmov 0 }
 0x67a   :  { %v3508_v62 = vld [vmem:[#allocation120 + $0x6] sm:$0x3] }
 0x67b   :  { %v3509_v31 = vunpack.c.0.f8e4m3b11 %v3508_v62 }
 0x67d   :  { %v3513_v34 = vand.u32 2147483647, %v3509_v31  ;;  %vm3515_vm0 = vcmp.ne.f32.partialorder %v3509_v31, %v3509_v31  ;;  %v3516_v42 = vmul.f32 16.0, %v3509_v31 }
 0x67f   :  { %vm5641_vm2 = vcmp.gt.f32.partialorder %v3513_v34, 29.0  ;;  %v5645_v30 = vsel %vm3515_vm0, -0.0, %v3516_v42 }
 0x680   :  { %v7068_v7 = vsel %vm5641_vm2, 4294967295, %v7067_v7  ;;  %7070 = vst [vmem:[#allocation329_spill] sm:$0xff] %v5645_v30 }
 0x681   :  { %7069 = vst [vmem:[#allocation328_spill] sm:$0xff] %v7068_v7 }
 0x682   :  { %3537 = vst [vmem:[#allocation121] sm:$0xff] %v4530_v36  ;;  %v7071_v1 = vmov 0 }
 0x689   :  { %v3539_v55 = vld [vmem:[#allocation121 + $0x6] sm:$0x3] }
 0x68a   :  { %v3540_v32 = vunpack.c.0.f8e4m3b11 %v3539_v55 }
 0x68c   :  { %v3544_v35 = vand.u32 2147483647, %v3540_v32  ;;  %vm3546_vm8 = vcmp.ne.f32.partialorder %v3540_v32, %v3540_v32  ;;  %v3547_v62 = vmul.f32 16.0, %v3540_v32 }
 0x68e   :  { %vm5651_vm9 = vcmp.gt.f32.partialorder %v3544_v35, 29.0  ;;  %v5655_v31 = vsel %vm3546_vm8, -0.0, %v3547_v62 }
 0x68f   :  { %v7072_v1 = vsel %vm5651_vm9, 4294967295, %v7071_v1  ;;  %7074 = vst [vmem:[#allocation331_spill] sm:$0xff] %v5655_v31 }
 0x690   :  { %7073 = vst [vmem:[#allocation330_spill] sm:$0xff] %v7072_v1 }
 0x691   :  { %3568 = vst [vmem:[#allocation122] sm:$0xff] %v4532_v37 }
 0x698   :  { %v3569_v42 = vld [vmem:[#allocation122] sm:$0x3] }
 0x699   :  { %v3570_v33 = vunpack.c.0.f8e4m3b11 %v3569_v42 }
 0x69b   :  { %v3574_v36 = vand.u32 2147483647, %v3570_v33  ;;  %vm3576_vm0 = vcmp.ne.f32.partialorder %v3570_v33, %v3570_v33  ;;  %v3577_v55 = vmul.f32 16.0, %v3570_v33 }
 0x69d   :  { %vm5661_vm2 = vcmp.gt.f32.partialorder %v3574_v36, 29.0  ;;  %v5665_v32 = vsel %vm3576_vm0, -0.0, %v3577_v55 }
 0x69e   :  { %3598 = vst [vmem:[#allocation123] sm:$0xff] %v4534_v38 }
 0x6a5   :  { %v3599_v62 = vld [vmem:[#allocation123] sm:$0x3] }
 0x6a6   :  { %v3600_v34 = vunpack.c.0.f8e4m3b11 %v3599_v62 }
 0x6a8   :  { %v3604_v31 = vand.u32 2147483647, %v3600_v34  ;;  %vm3606_vm8 = vcmp.ne.f32.partialorder %v3600_v34, %v3600_v34  ;;  %v3607_v42 = vmul.f32 16.0, %v3600_v34 }
 0x6aa   :  { %vm5671_vm9 = vcmp.gt.f32.partialorder %v3604_v31, 29.0  ;;  %v5675_v33 = vsel %vm3606_vm8, -0.0, %v3607_v42 }
 0x6ab   :  { %3628 = vst [vmem:[#allocation124] sm:$0xff] %v4536_v39  ;;  %v7079_v27 = vmov 0 }
 0x6b2   :  { %v3629_v55 = vld [vmem:[#allocation124] sm:$0x3] }
 0x6b3   :  { %v3630_v35 = vunpack.c.0.f8e4m3b11 %v3629_v55 }
 0x6b5   :  { %v3634_v7 = vand.u32 2147483647, %v3630_v35  ;;  %vm3636_vm0 = vcmp.ne.f32.partialorder %v3630_v35, %v3630_v35  ;;  %v3637_v62 = vmul.f32 16.0, %v3630_v35 }
 0x6b7   :  { %vm5681_vm5 = vcmp.gt.f32.partialorder %v3634_v7, 29.0  ;;  %v5685_v31 = vsel %vm3636_vm0, -0.0, %v3637_v62 }
 0x6b8   :  { %v7080_v27 = vsel %vm5681_vm5, 4294967295, %v7079_v27  ;;  %7082 = vst [vmem:[#allocation333_spill] sm:$0xff] %v5685_v31 }
 0x6b9   :  { %7081 = vst [vmem:[#allocation332_spill] sm:$0xff] %v7080_v27 }
 0x6ba   :  { %3658 = vst [vmem:[#allocation125] sm:$0xff] %v4538_v40  ;;  %v7083_v29 = vmov 0 }
 0x6c1   :  { %v3659_v42 = vld [vmem:[#allocation125] sm:$0x3] }
 0x6c2   :  { %v3660_v36 = vunpack.c.0.f8e4m3b11 %v3659_v42 }
 0x6c4   :  { %v3664_v8 = vand.u32 2147483647, %v3660_v36  ;;  %vm3666_vm8 = vcmp.ne.f32.partialorder %v3660_v36, %v3660_v36  ;;  %v3667_v55 = vmul.f32 16.0, %v3660_v36 }
 0x6c6   :  { %vm5691_vm12 = vcmp.gt.f32.partialorder %v3664_v8, 29.0  ;;  %v5695_v7 = vsel %vm3666_vm8, -0.0, %v3667_v55 }
 0x6c7   :  { %v7084_v29 = vsel %vm5691_vm12, 4294967295, %v7083_v29  ;;  %7086 = vst [vmem:[#allocation335_spill] sm:$0xff] %v5695_v7 }
 0x6c8   :  { %7085 = vst [vmem:[#allocation334_spill] sm:$0xff] %v7084_v29 }
 0x6c9   :  { %3688 = vst [vmem:[#allocation126] sm:$0xff] %v4532_v37 }
 0x6d0   :  { %v3690_v62 = vld [vmem:[#allocation126 + $0x2] sm:$0x3] }
 0x6d1   :  { %v3691_v34 = vunpack.c.0.f8e4m3b11 %v3690_v62 }
 0x6d3   :  { %v3695_v31 = vand.u32 2147483647, %v3691_v34  ;;  %vm3697_vm0 = vcmp.ne.f32.partialorder %v3691_v34, %v3691_v34  ;;  %v3698_v42 = vmul.f32 16.0, %v3691_v34 }
 0x6d5   :  { %vm5701_vm5 = vcmp.gt.f32.partialorder %v3695_v31, 29.0  ;;  %v5705_v8 = vsel %vm3697_vm0, -0.0, %v3698_v42 }
 0x6d6   :  { %3719 = vst [vmem:[#allocation127] sm:$0xff] %v4534_v38  ;;  %v7089_v29 = vmov 0 }
 0x6dd   :  { %v3721_v55 = vld [vmem:[#allocation127 + $0x2] sm:$0x3] }
 0x6de   :  { %v3722_v35 = vunpack.c.0.f8e4m3b11 %v3721_v55 }
 0x6e0   :  { %v3726_v7 = vand.u32 2147483647, %v3722_v35  ;;  %vm3728_vm8 = vcmp.ne.f32.partialorder %v3722_v35, %v3722_v35  ;;  %v3729_v62 = vmul.f32 16.0, %v3722_v35 }
 0x6e2   :  { %vm5711_vm12 = vcmp.gt.f32.partialorder %v3726_v7, 29.0  ;;  %v5715_v31 = vsel %vm3728_vm8, -0.0, %v3729_v62 }
 0x6e3   :  { %v7090_v29 = vsel %vm5711_vm12, 4294967295, %v7089_v29 }
 0x6e4   :  { %3750 = vst [vmem:[#allocation128] sm:$0xff] %v4536_v39  ;;  %v7091_v11 = vmov 0 }
 0x6eb   :  { %v3752_v42 = vld [vmem:[#allocation128 + $0x2] sm:$0x3] }
 0x6ec   :  { %v3753_v36 = vunpack.c.0.f8e4m3b11 %v3752_v42 }
 0x6ee   :  { %v3757_v22 = vand.u32 2147483647, %v3753_v36  ;;  %vm3759_vm0 = vcmp.ne.f32.partialorder %v3753_v36, %v3753_v36  ;;  %v3760_v55 = vmul.f32 16.0, %v3753_v36 }
 0x6f0   :  { %vm5721_vm10 = vcmp.gt.f32.partialorder %v3757_v22, 29.0  ;;  %v5725_v7 = vsel %vm3759_vm0, -0.0, %v3760_v55 }
 0x6f1   :  { %v7092_v11 = vsel %vm5721_vm10, 4294967295, %v7091_v11  ;;  %7094 = vst [vmem:[#allocation337_spill] sm:$0xff] %v5725_v7 }
 0x6f2   :  { %7093 = vst [vmem:[#allocation336_spill] sm:$0xff] %v7092_v11 }
 0x6f3   :  { %3781 = vst [vmem:[#allocation129] sm:$0xff] %v4538_v40  ;;  %v7095_v13 = vmov 0 }
 0x6fa   :  { %v3783_v62 = vld [vmem:[#allocation129 + $0x2] sm:$0x3] }
 0x6fb   :  { %v3784_v34 = vunpack.c.0.f8e4m3b11 %v3783_v62 }
 0x6fd   :  { %v3788_v46 = vand.u32 2147483647, %v3784_v34  ;;  %vm3790_vm8 = vcmp.ne.f32.partialorder %v3784_v34, %v3784_v34  ;;  %v3791_v42 = vmul.f32 16.0, %v3784_v34 }
 0x6ff   :  { %vm5731_vm4 = vcmp.gt.f32.partialorder %v3788_v46, 29.0  ;;  %v5735_v22 = vsel %vm3790_vm8, -0.0, %v3791_v42 }
 0x700   :  { %v7096_v13 = vsel %vm5731_vm4, 4294967295, %v7095_v13  ;;  %7098 = vst [vmem:[#allocation339_spill] sm:$0xff] %v5735_v22 }
 0x701   :  { %7097 = vst [vmem:[#allocation338_spill] sm:$0xff] %v7096_v13 }
 0x702   :  { %3812 = vst [vmem:[#allocation130] sm:$0xff] %v4532_v37 }
 0x709   :  { %v3814_v55 = vld [vmem:[#allocation130 + $0x4] sm:$0x3] }
 0x70a   :  { %v3815_v35 = vunpack.c.0.f8e4m3b11 %v3814_v55 }
 0x70c   :  { %v3819_v7 = vand.u32 2147483647, %v3815_v35  ;;  %vm3821_vm0 = vcmp.ne.f32.partialorder %v3815_v35, %v3815_v35  ;;  %v3822_v62 = vmul.f32 16.0, %v3815_v35 }
 0x70e   :  { %vm5741_vm10 = vcmp.gt.f32.partialorder %v3819_v7, 29.0  ;;  %v5745_v46 = vsel %vm3821_vm0, -0.0, %v3822_v62 }
 0x70f   :  { %3843 = vst [vmem:[#allocation131] sm:$0xff] %v4534_v38 }
 0x716   :  { %v3845_v42 = vld [vmem:[#allocation131 + $0x4] sm:$0x3] }
 0x717   :  { %v3846_v36 = vunpack.c.0.f8e4m3b11 %v3845_v42 }
 0x719   :  { %v3850_v22 = vand.u32 2147483647, %v3846_v36  ;;  %vm3852_vm8 = vcmp.ne.f32.partialorder %v3846_v36, %v3846_v36  ;;  %v3853_v55 = vmul.f32 16.0, %v3846_v36 }
 0x71b   :  { %vm5751_vm4 = vcmp.gt.f32.partialorder %v3850_v22, 29.0  ;;  %v3854_v7 = vsel %vm3852_vm8, -0.0, %v3853_v55 }
 0x71c   :  { %v3855_v35 = vsel %vm5751_vm4, nan, %v3854_v7 }
 0x71d   :  { %3874 = vst [vmem:[#allocation132] sm:$0xff] %v4536_v39  ;;  %v7103_v42 = vmov 0 }
 0x724   :  { %v3876_v62 = vld [vmem:[#allocation132 + $0x4] sm:$0x3] }
 0x725   :  { %v3877_v52 = vunpack.c.0.f8e4m3b11 %v3876_v62 }
 0x727   :  { %v3881_v34 = vand.u32 2147483647, %v3877_v52  ;;  %vm3883_vm0 = vcmp.ne.f32.partialorder %v3877_v52, %v3877_v52  ;;  %v3884_v21 = vmul.f32 16.0, %v3877_v52 }
 0x729   :  { %vm5758_vm12 = vcmp.gt.f32.partialorder %v3881_v34, 29.0  ;;  %v5762_v36 = vsel %vm3883_vm0, -0.0, %v3884_v21 }
 0x72a   :  { %v7104_v42 = vsel %vm5758_vm12, 4294967295, %v7103_v42  ;;  %7106 = vst [vmem:[#allocation341_spill] sm:$0xff] %v5762_v36 }
 0x72b   :  { %7105 = vst [vmem:[#allocation340_spill] sm:$0xff] %v7104_v42 }
 0x72c   :  { %3905 = vst [vmem:[#allocation133] sm:$0xff] %v4538_v40  ;;  %v7107_v20 = vmov 0 }
 0x733   :  { %v3907_v13 = vld [vmem:[#allocation133 + $0x4] sm:$0x3] }
 0x734   :  { %v3908_v55 = vunpack.c.0.f8e4m3b11 %v3907_v13 }
 0x736   :  { %v3912_v7 = vand.u32 2147483647, %v3908_v55  ;;  %vm3914_vm4 = vcmp.ne.f32.partialorder %v3908_v55, %v3908_v55  ;;  %v3915_v62 = vmul.f32 16.0, %v3908_v55 }
 0x738   :  { %vm5768_vm8 = vcmp.gt.f32.partialorder %v3912_v7, 29.0  ;;  %v5772_v52 = vsel %vm3914_vm4, -0.0, %v3915_v62 }
 0x739   :  { %v7108_v20 = vsel %vm5768_vm8, 4294967295, %v7107_v20 }
 0x73a   :  { %7109 = vst [vmem:[#allocation342_spill] sm:$0xff] %v7108_v20 }
 0x73b   :  { %3936 = vst [vmem:[#allocation134] sm:$0xff] %v4532_v37 }
 0x742   :  { %v3938_v34 = vld [vmem:[#allocation134 + $0x6] sm:$0x3] }
 0x743   :  { %v3939_v22 = vunpack.c.0.f8e4m3b11 %v3938_v34 }
 0x745   :  { %v3943_v36 = vand.u32 2147483647, %v3939_v22  ;;  %vm3945_vm0 = vcmp.ne.f32.partialorder %v3939_v22, %v3939_v22  ;;  %v3946_v13 = vmul.f32 16.0, %v3939_v22 }
 0x747   :  { %vm5778_vm12 = vcmp.gt.f32.partialorder %v3943_v36, 29.0  ;;  %v3947_v55 = vsel %vm3945_vm0, -0.0, %v3946_v13 }
 0x748   :  { %v3948_v7 = vsel %vm5778_vm12, nan, %v3947_v55 }
 0x749   :  { %3967 = vst [vmem:[#allocation135] sm:$0xff] %v4534_v38 }
 0x750   :  { %v3969_v62 = vld [vmem:[#allocation135 + $0x6] sm:$0x3] }
 0x751   :  { %v3970_v20 = vunpack.c.0.f8e4m3b11 %v3969_v62 }
 0x753   :  { %v3974_v21 = vand.u32 2147483647, %v3970_v20  ;;  %vm3976_vm4 = vcmp.ne.f32.partialorder %v3970_v20, %v3970_v20  ;;  %v3977_v37 = vmul.f32 16.0, %v3970_v20 }
 0x755   :  { %vm5785_vm8 = vcmp.gt.f32.partialorder %v3974_v21, 29.0  ;;  %v3978_v22 = vsel %vm3976_vm4, -0.0, %v3977_v37 }
 0x756   :  { %v3979_v36 = vsel %vm5785_vm8, nan, %v3978_v22 }
 0x757   :  { %3998 = vst [vmem:[#allocation136] sm:$0xff] %v4536_v39 }
 0x75e   :  { %v4000_v13 = vld [vmem:[#allocation136 + $0x6] sm:$0x3] }
 0x75f   :  { %v4001_v42 = vunpack.c.0.f8e4m3b11 %v4000_v13 }
 0x761   :  { %v4005_v55 = vand.u32 2147483647, %v4001_v42  ;;  %vm4007_vm12 = vcmp.ne.f32.partialorder %v4001_v42, %v4001_v42  ;;  %v4008_v38 = vmul.f32 16.0, %v4001_v42 }
 0x763   :  { %vm5792_vm0 = vcmp.gt.f32.partialorder %v4005_v55, 29.0  ;;  %v5796_v20 = vsel %vm4007_vm12, -0.0, %v4008_v38 }
 0x764   :  { %v4010_v21 = vsel %vm5792_vm0, nan, %v5796_v20 }
 0x765   :  { %4029 = vst [vmem:[#allocation137] sm:$0xff] %v4538_v40  ;;  %v7118_v38 = vsel %vm5101_vm11, nan, %v5105_v41  ;;  %v7119_v40 = vsel %vm5141_vm6, nan, %v5145_v2  ;;  %v7122_v60 = vsel %vm5151_vm1, nan, %v5155_v59  ;;  %v4121_v41 = vpack.c.bf16 %v3979_v36, %v3855_v35  ;;  %v7174_v35 = vld [vmem:[#allocation194_spill] sm:$0xff]  ;;  %v7326_v20 = vld [vmem:[#allocation143_spill] sm:$0xff] }
 0x766   :  { %v7123_v48 = vsel %vm5021_vm15, nan, %v5025_v16  ;;  %v7124_v11 = vsel %vm5061_vm3, nan, %v5065_v58  ;;  %v7125_v6 = vsel %vm5661_vm2, nan, %v5665_v32  ;;  %v7127_v14 = vsel %vm5031_vm13, nan, %v5035_v17  ;;  %v7166_v32 = vld [vmem:[#allocation310_spill] sm:$0xff]  ;;  %v7332_v13 = vld [vmem:[#allocation231_spill] sm:$0xff] }
 0x767   :  { %v4084_v2 = vpack.c.bf16 %v7124_v11, %v7123_v48  ;;  %4176 = vmatpush.bf16.msra.mxu3 %v4121_v41  ;;  %v7128_v5 = vsel %vm5071_vm7, nan, %v5075_v15  ;;  %v7129_v58 = vsel %vm5671_vm9, nan, %v5675_v33  ;;  %vm7130_vm1 = vnez %v7090_v29  ;;  %v7170_v33 = vld [vmem:[#allocation318_spill] sm:$0xff]  ;;  %v7188_v41 = vld [vmem:[#allocation303_spill] sm:$0xff]  ;;  %s4430_s0 = smov [#allocation9]   ;;  %s4287_s5 = sshll.u32 %s6349_s3, 4  ;;  %s4288_s5 = int_to_ptr.hbm [resolvable:$true] %s4287_s5 }
 0x768   :  { %v4085_v16 = vpack.c.bf16 %v7128_v5, %v7127_v14  ;;  %v7131_v59 = vsel %vm7130_vm1, nan, %v5715_v31  ;;  %vm7132_vm3 = vnez %v6822_v43  ;;  %vm7136_vm7 = vnez %v7052_v18  ;;  %v7196_v14 = vld [vmem:[#allocation205_spill] sm:$0xff]  ;;  %s4285_s2 = sshll.u32 %s4430_s0, 4  ;;  %s4431_s6 = smov 256   ;;  %s4286_s2 = int_to_ptr.vmem [resolvable:$true] %s4285_s2 }
 0x769   :  { %v4117_v27 = vpack.c.bf16 %v7131_v59, %v7129_v58  ;;  %v7133_v54 = vsel %vm7132_vm3, nan, %v4945_v4  ;;  %v7137_v1 = vsel %vm7136_vm7, nan, %v5585_v44  ;;  %vm7138_vm9 = vnez %v7064_v49  ;;  %v7156_v44 = vld [vmem:[#allocation317_spill] sm:$0xff]  ;;  %v7198_v58 = vld [vmem:[#allocation296_spill] sm:$0xff]  ;;  %s4432_s7 = smov 16  }
 0x76a   :  { %v7139_v15 = vsel %vm7138_vm9, nan, %v5625_v50  ;;  %vm7140_vm11 = vnez %v6824_v51  ;;  %vm7142_vm13 = vnez %v6836_v47  ;;  %vm7144_vm15 = vnez %v7054_v23  ;;  %v7154_v23 = vld [vmem:[#allocation316_spill] sm:$0xff]  ;;  %v7158_v50 = vld [vmem:[#allocation210_spill] sm:$0xff]  ;;  %v7200_v59 = vld [vmem:[#allocation297_spill] sm:$0xff] }
 0x76b   :  { %v4112_v29 = vpack.c.bf16 %v7139_v15, %v7137_v1  ;;  %4177 = vmatpush.bf16.msra.mxu3 %v4117_v27  ;;  %v7141_v43 = vsel %vm7140_vm11, nan, %v4955_v53  ;;  %vm7146_vm2 = vnez %v7066_v25  ;;  %vm7148_vm6 = vnez %v6794_v10  ;;  %v7160_v10 = vld [vmem:[#allocation211_spill] sm:$0xff]  ;;  %v7206_v15 = vld [vmem:[#allocation178_spill] sm:$0xff] }
 0x76c   :  { %v4031_v37 = vld [vmem:[#allocation137 + $0x6] sm:$0x3]  ;;  %v7147_v49 = vsel %vm7146_vm2, nan, %v5635_v19  ;;  %v7149_v51 = vsel %vm7148_vm6, nan, %v4865_v12  ;;  %vm7155_vm12 = vnez %v7154_v23  ;;  %v7162_v19 = vld [vmem:[#allocation216_spill] sm:$0xff]  ;;  %vm7167_vm3 = vnez %v7166_v32 }
 0x76d   :  { %v4032_v34 = vunpack.c.0.f8e4m3b11 %v4031_v37  ;;  %v4088_v37 = vpack.c.bf16 %v7119_v40, %v7118_v38  ;;  %vm7163_vm1 = vnez %v7162_v19  ;;  %vm7175_vm7 = vnez %v7174_v35  ;;  %v7180_v38 = vld [vmem:[#allocation203_spill] sm:$0xff] }
 0x76e   :  { %vm7199_vm6 = vnez %v7198_v58 }
 0x76f   :  { %v4036_v39 = vand.u32 2147483647, %v4032_v34  ;;  %vm4038_vm8 = vcmp.ne.f32.partialorder %v4032_v34, %v4032_v34  ;;  %v4039_v22 = vmul.f32 16.0, %v4032_v34  ;;  %v7120_v34 = vsel %vm5741_vm10, nan, %v5745_v46  ;;  %4134 = vmatpush.bf16.msra.mxu0 %v4088_v37 }
 0x770   :  { %vm7150_vm10 = vnez %v6808_v57  ;;  %v7164_v57 = vld [vmem:[#allocation217_spill] sm:$0xff]  ;;  %v7201_v27 = vsel %vm7199_vm6, nan, %v7200_v59  ;;  %v7266_v59 = vld [vmem:[#allocation272_spill] sm:$0xff] }
 0x771   :  { %vm5802_vm4 = vcmp.gt.f32.partialorder %v4036_v39, 29.0  ;;  %v5806_v42 = vsel %vm4038_vm8, -0.0, %v4039_v22  ;;  %v4120_v39 = vpack.c.bf16 %v3948_v7, %v7120_v34  ;;  %v7121_v22 = vsel %vm5111_vm14, nan, %v5115_v3  ;;  %v7176_v7 = vld [vmem:[#allocation195_spill] sm:$0xff]  ;;  %v7182_v34 = vld [vmem:[#allocation294_spill] sm:$0xff] }
 0x772   :  { %v4089_v55 = vpack.c.bf16 %v7122_v60, %v7121_v22  ;;  %v7126_v3 = vsel %vm5701_vm5, nan, %v5705_v8  ;;  %vm7134_vm5 = vnez %v6834_v61  ;;  %v7143_v61 = vsel %vm7142_vm13, nan, %v4995_v45  ;;  %v7172_v8 = vld [vmem:[#allocation319_spill] sm:$0xff]  ;;  %v7186_v60 = vld [vmem:[#allocation302_spill] sm:$0xff] }
 0x773   :  { %4148 = vmatpush.bf16.msra.mxu1 %v4120_v39  ;;  %v4116_v0 = vpack.c.bf16 %v7126_v3, %v7125_v6  ;;  %4135 = vmatpush.bf16.msra.mxu0 %v4084_v2  ;;  %v7135_v9 = vsel %vm7134_vm5, nan, %v4985_v63  ;;  %v4081_v4 = vpack.c.bf16 %v7143_v61, %v7141_v43  ;;  %v7145_v63 = vsel %vm7144_vm15, nan, %v5595_v24  ;;  %v7184_v39 = vld [vmem:[#allocation295_spill] sm:$0xff]  ;;  %v7190_v2 = vld [vmem:[#allocation196_spill] sm:$0xff]  ;;  %v7192_v6 = vld [vmem:[#allocation197_spill] sm:$0xff] }
 0x774   :  { %4162 = vmatpush.bf16.msra.mxu2 %v4089_v55  ;;  %v4080_v17 = vpack.c.bf16 %v7135_v9, %v7133_v54  ;;  %v4113_v18 = vpack.c.bf16 %v7147_v49, %v7145_v63  ;;  %v7151_v53 = vsel %vm7150_vm10, nan, %v4905_v56  ;;  %vm7152_vm14 = vnez %v7022_v26  ;;  %v7168_v26 = vld [vmem:[#allocation311_spill] sm:$0xff]  ;;  %v7178_v55 = vld [vmem:[#allocation202_spill] sm:$0xff]  ;;  %v7202_v54 = vld [vmem:[#allocation304_spill] sm:$0xff] }
 0x775   :  { %v4076_v47 = vpack.c.bf16 %v7151_v53, %v7149_v51  ;;  %v7153_v45 = vsel %vm7152_vm14, nan, %v5505_v28  ;;  %v7157_v24 = vsel %vm7155_vm12, nan, %v7156_v44  ;;  %vm7159_vm8 = vnez %v7158_v50  ;;  %v7204_v9 = vld [vmem:[#allocation305_spill] sm:$0xff]  ;;  %v7210_v61 = vld [vmem:[#allocation186_spill] sm:$0xff]  ;;  %v7216_v51 = vld [vmem:[#allocation279_spill] sm:$0xff] }
 0x776   :  { %v4108_v25 = vpack.c.bf16 %v7157_v24, %v7153_v45  ;;  %4178 = vmatpush.bf16.msra.mxu3 %v4113_v18  ;;  %v7161_v12 = vsel %vm7159_vm8, nan, %v7160_v10  ;;  %v7165_v56 = vsel %vm7163_vm1, nan, %v7164_v57  ;;  %v7169_v28 = vsel %vm7167_vm3, nan, %v7168_v26  ;;  %v7214_v18 = vld [vmem:[#allocation278_spill] sm:$0xff]  ;;  %v7220_v45 = vld [vmem:[#allocation287_spill] sm:$0xff]  ;;  %v7222_v24 = vld [vmem:[#allocation180_spill] sm:$0xff] }
 0x777   :  { %4149 = vmatpush.bf16.msra.mxu1 %v4116_v0  ;;  %4136 = vmatpush.bf16.msra.mxu0 %v4080_v17  ;;  %v4077_v30 = vpack.c.bf16 %v7165_v56, %v7161_v12  ;;  %vm7171_vm5 = vnez %v7170_v33  ;;  %v7177_v36 = vsel %vm7175_vm7, nan, %v7176_v7  ;;  %vm7179_vm9 = vnez %v7178_v55  ;;  %v7194_v0 = vld [vmem:[#allocation204_spill] sm:$0xff]  ;;  %v7228_v12 = vld [vmem:[#allocation189_spill] sm:$0xff]  ;;  %v7242_v7 = vld [vmem:[#allocation170_spill] sm:$0xff] }
 0x778   :  { %4163 = vmatpush.bf16.msra.mxu2 %v4085_v16  ;;  %v7173_v31 = vsel %vm7171_vm5, nan, %v7172_v8  ;;  %v7181_v40 = vsel %vm7179_vm9, nan, %v7180_v38  ;;  %vm7183_vm11 = vnez %v7182_v34  ;;  %vm7187_vm13 = vnez %v7186_v60  ;;  %v7226_v10 = vld [vmem:[#allocation188_spill] sm:$0xff] }
 0x779   :  { %v4109_v46 = vpack.c.bf16 %v7173_v31, %v7169_v28  ;;  %v4072_v37 = vpack.c.bf16 %v7181_v40, %v7177_v36  ;;  %v7185_v22 = vsel %vm7183_vm11, nan, %v7184_v39  ;;  %v7189_v48 = vsel %vm7187_vm13, nan, %v7188_v41  ;;  %v7230_v56 = vld [vmem:[#allocation280_spill] sm:$0xff]  ;;  %v7236_v28 = vld [vmem:[#allocation289_spill] sm:$0xff]  ;;  %v7238_v31 = vld [vmem:[#allocation162_spill] sm:$0xff] }
 0x77a   :  { %v4104_v11 = vpack.c.bf16 %v7189_v48, %v7185_v22  ;;  %vm7191_vm15 = vnez %v7190_v2  ;;  %vm7195_vm2 = vnez %v7194_v0  ;;  %vm7203_vm10 = vnez %v7202_v54  ;;  %v7234_v26 = vld [vmem:[#allocation288_spill] sm:$0xff]  ;;  %v7244_v36 = vld [vmem:[#allocation171_spill] sm:$0xff]  ;;  %v7246_v40 = vld [vmem:[#allocation262_spill] sm:$0xff] }
 0x77b   :  { %4150 = vmatpush.bf16.msra.mxu1 %v4112_v29  ;;  %4137 = vmatpush.bf16.msra.mxu0 %v4076_v47  ;;  %v7193_v3 = vsel %vm7191_vm15, nan, %v7192_v6  ;;  %v7197_v5 = vsel %vm7195_vm2, nan, %v7196_v14  ;;  %v7205_v17 = vsel %vm7203_vm10, nan, %v7204_v9  ;;  %vm7207_vm14 = vnez %v7206_v15  ;;  %v7208_v29 = vld [vmem:[#allocation179_spill] sm:$0xff]  ;;  %v7218_v47 = vld [vmem:[#allocation286_spill] sm:$0xff]  ;;  %v7254_v48 = vld [vmem:[#allocation164_spill] sm:$0xff] }
 0x77c   :  { %4164 = vmatpush.bf16.msra.mxu2 %v4081_v4  ;;  %4179 = vmatpush.bf16.msra.mxu3 %v4109_v46  ;;  %v4073_v16 = vpack.c.bf16 %v7197_v5, %v7193_v3  ;;  %v4105_v1 = vpack.c.bf16 %v7205_v17, %v7201_v27  ;;  %v7209_v43 = vsel %vm7207_vm14, nan, %v7208_v29  ;;  %vm7211_vm12 = vnez %v7210_v61  ;;  %v7212_v4 = vld [vmem:[#allocation187_spill] sm:$0xff]  ;;  %v7250_v39 = vld [vmem:[#allocation270_spill] sm:$0xff]  ;;  %v7258_v6 = vld [vmem:[#allocation172_spill] sm:$0xff] }
 0x77d   :  { %v7213_v63 = vsel %vm7211_vm12, nan, %v7212_v4  ;;  %vm7215_vm8 = vnez %v7214_v18  ;;  %vm7219_vm1 = vnez %v7218_v47  ;;  %vm7223_vm3 = vnez %v7222_v24  ;;  %v7240_v46 = vld [vmem:[#allocation163_spill] sm:$0xff]  ;;  %v7260_v3 = vld [vmem:[#allocation173_spill] sm:$0xff]  ;;  %v7262_v5 = vld [vmem:[#allocation264_spill] sm:$0xff] }
 0x77e   :  { %v4068_v49 = vpack.c.bf16 %v7213_v63, %v7209_v43  ;;  %v7217_v53 = vsel %vm7215_vm8, nan, %v7216_v51  ;;  %v7221_v23 = vsel %vm7219_vm1, nan, %v7220_v45  ;;  %vm7227_vm5 = vnez %v7226_v10  ;;  %v7252_v22 = vld [vmem:[#allocation271_spill] sm:$0xff]  ;;  %v7268_v27 = vld [vmem:[#allocation273_spill] sm:$0xff]  ;;  %v7270_v17 = vld [vmem:[#allocation146_spill] sm:$0xff] }
 0x77f   :  { %4151 = vmatpush.bf16.msra.mxu1 %v4108_v25  ;;  %4138 = vmatpush.bf16.msra.mxu0 %v4072_v37  ;;  %v4100_v44 = vpack.c.bf16 %v7221_v23, %v7217_v53  ;;  %v7224_v25 = vld [vmem:[#allocation181_spill] sm:$0xff]  ;;  %v7229_v19 = vsel %vm7227_vm5, nan, %v7228_v12  ;;  %vm7231_vm7 = vnez %v7230_v56  ;;  %vm7235_vm9 = vnez %v7234_v26  ;;  %v7248_v37 = vld [vmem:[#allocation263_spill] sm:$0xff]  ;;  %v7274_v29 = vld [vmem:[#allocation154_spill] sm:$0xff] }
 0x780   :  { %4165 = vmatpush.bf16.msra.mxu2 %v4077_v30  ;;  %4180 = vmatpush.bf16.msra.mxu3 %v4105_v1  ;;  %v7225_v50 = vsel %vm7223_vm3, nan, %v7224_v25  ;;  %v7232_v30 = vld [vmem:[#allocation281_spill] sm:$0xff]  ;;  %v7237_v33 = vsel %vm7235_vm9, nan, %v7236_v28  ;;  %vm7239_vm11 = vnez %v7238_v31  ;;  %vm7243_vm13 = vnez %v7242_v7  ;;  %v7272_v1 = vld [vmem:[#allocation147_spill] sm:$0xff]  ;;  %v7278_v63 = vld [vmem:[#allocation246_spill] sm:$0xff] }
 0x781   :  { %v4069_v57 = vpack.c.bf16 %v7229_v19, %v7225_v50  ;;  %v7233_v32 = vsel %vm7231_vm7, nan, %v7232_v30  ;;  %v7241_v35 = vsel %vm7239_vm11, nan, %v7240_v46  ;;  %v7245_v55 = vsel %vm7243_vm13, nan, %v7244_v36  ;;  %v7276_v43 = vld [vmem:[#allocation155_spill] sm:$0xff]  ;;  %v7282_v51 = vld [vmem:[#allocation254_spill] sm:$0xff]  ;;  %v7286_v23 = vld [vmem:[#allocation148_spill] sm:$0xff] }
 0x782   :  { %v4101_v8 = vpack.c.bf16 %v7237_v33, %v7233_v32  ;;  %v4064_v38 = vpack.c.bf16 %v7245_v55, %v7241_v35  ;;  %vm7247_vm15 = vnez %v7246_v40  ;;  %vm7251_vm2 = vnez %v7250_v39  ;;  %v7284_v53 = vld [vmem:[#allocation255_spill] sm:$0xff]  ;;  %v7290_v25 = vld [vmem:[#allocation156_spill] sm:$0xff]  ;;  %v7292_v50 = vld [vmem:[#allocation157_spill] sm:$0xff] }
 0x783   :  { %4152 = vmatpush.bf16.msra.mxu1 %v4104_v11  ;;  %4139 = vmatpush.bf16.msra.mxu0 %v4068_v49  ;;  %v7249_v34 = vsel %vm7247_vm15, nan, %v7248_v37  ;;  %v7253_v60 = vsel %vm7251_vm2, nan, %v7252_v22  ;;  %vm7255_vm6 = vnez %v7254_v48  ;;  %v7256_v11 = vld [vmem:[#allocation165_spill] sm:$0xff]  ;;  %vm7259_vm10 = vnez %v7258_v6  ;;  %v7280_v49 = vld [vmem:[#allocation247_spill] sm:$0xff]  ;;  %v7294_v19 = vld [vmem:[#allocation248_spill] sm:$0xff] }
 0x784   :  { %4166 = vmatpush.bf16.msra.mxu2 %v4073_v16  ;;  %v4096_v41 = vpack.c.bf16 %v7253_v60, %v7249_v34  ;;  %4181 = vmatpush.bf16.msra.mxu3 %v4101_v8  ;;  %v7257_v2 = vsel %vm7255_vm6, nan, %v7256_v11  ;;  %v7261_v0 = vsel %vm7259_vm10, nan, %v7260_v3  ;;  %vm7263_vm14 = vnez %v7262_v5  ;;  %v7264_v16 = vld [vmem:[#allocation265_spill] sm:$0xff]  ;;  %v7298_v30 = vld [vmem:[#allocation256_spill] sm:$0xff]  ;;  %v7302_v33 = vld [vmem:[#allocation238_spill] sm:$0xff] }
 0x785   :  { %v4065_v14 = vpack.c.bf16 %v7261_v0, %v7257_v2  ;;  %v7265_v58 = vsel %vm7263_vm14, nan, %v7264_v16  ;;  %vm7267_vm12 = vnez %v7266_v59  ;;  %vm7271_vm8 = vnez %v7270_v17  ;;  %v7300_v32 = vld [vmem:[#allocation257_spill] sm:$0xff]  ;;  %v7304_v8 = vld [vmem:[#allocation239_spill] sm:$0xff]  ;;  %v7306_v46 = vld [vmem:[#allocation242_spill] sm:$0xff] }
 0x786   :  { %v7269_v54 = vsel %vm7267_vm12, nan, %v7268_v27  ;;  %v7273_v15 = vsel %vm7271_vm8, nan, %v7272_v1  ;;  %vm7275_vm1 = vnez %v7274_v29  ;;  %vm7279_vm3 = vnez %v7278_v63  ;;  %v7308_v35 = vld [vmem:[#allocation243_spill] sm:$0xff]  ;;  %v7310_v55 = vld [vmem:[#allocation340_spill] sm:$0xff]  ;;  %v7316_v39 = vld [vmem:[#allocation241_spill] sm:$0xff] }
 0x787   :  { %4153 = vmatpush.bf16.msra.mxu1 %v4100_v44  ;;  %v4097_v9 = vpack.c.bf16 %v7269_v54, %v7265_v58  ;;  %4140 = vmatpush.bf16.msra.mxu0 %v4064_v38  ;;  %v7277_v61 = vsel %vm7275_vm1, nan, %v7276_v43  ;;  %v7281_v18 = vsel %vm7279_vm3, nan, %v7280_v49  ;;  %vm7283_vm5 = vnez %v7282_v51  ;;  %v7288_v44 = vld [vmem:[#allocation149_spill] sm:$0xff]  ;;  %v7314_v34 = vld [vmem:[#allocation240_spill] sm:$0xff]  ;;  %v7322_v2 = vld [vmem:[#allocation342_spill] sm:$0xff] }
 0x788   :  { %4167 = vmatpush.bf16.msra.mxu2 %v4069_v57  ;;  %v4060_v4 = vpack.c.bf16 %v7277_v61, %v7273_v15  ;;  %v7285_v47 = vsel %vm7283_vm5, nan, %v7284_v53  ;;  %vm7287_vm7 = vnez %v7286_v23  ;;  %vm7291_vm9 = vnez %v7290_v25  ;;  %v7296_v57 = vld [vmem:[#allocation249_spill] sm:$0xff]  ;;  %v7318_v60 = vld [vmem:[#allocation244_spill] sm:$0xff]  ;;  %v7329_v5 = vld [vmem:[#allocation142_spill] sm:$0xff] }
 0x789   :  { %v4092_v45 = vpack.c.bf16 %v7285_v47, %v7281_v18  ;;  %4182 = vmatpush.bf16.msra.mxu3 %v4097_v9  ;;  %v7289_v24 = vsel %vm7287_vm7, nan, %v7288_v44  ;;  %v7293_v10 = vsel %vm7291_vm9, nan, %v7292_v50  ;;  %vm7295_vm11 = vnez %v7294_v19  ;;  %v7312_v38 = vld [vmem:[#allocation341_spill] sm:$0xff]  ;;  %v7336_v59 = vld [vmem:[#allocation235_spill] sm:$0xff]  ;;  %v7338_v9 = vld [vmem:[#allocation332_spill] sm:$0xff] }
 0x78a   :  { %v4061_v12 = vpack.c.bf16 %v7293_v10, %v7289_v24  ;;  %v7297_v56 = vsel %vm7295_vm11, nan, %v7296_v57  ;;  %vm7299_vm13 = vnez %v7298_v30  ;;  %vm7303_vm15 = vnez %v7302_v33  ;;  %v7340_v17 = vld [vmem:[#allocation333_spill] sm:$0xff]  ;;  %v7342_v15 = vld [vmem:[#allocation336_spill] sm:$0xff]  ;;  %v7356_v23 = vld [vmem:[#allocation335_spill] sm:$0xff] }
 0x78b   :  { %4154 = vmatpush.bf16.msra.mxu1 %v4096_v41  ;;  %v7301_v26 = vsel %vm7299_vm13, nan, %v7300_v32  ;;  %v7305_v31 = vsel %vm7303_vm15, nan, %v7304_v8  ;;  %vm7307_vm2 = vnez %v7306_v46  ;;  %vm7311_vm6 = vnez %v7310_v55  ;;  %v7320_v41 = vld [vmem:[#allocation245_spill] sm:$0xff]  ;;  %4141 = vmatpush.bf16.msra.mxu0 %v4060_v4  ;;  %v7346_v4 = vld [vmem:[#allocation232_spill] sm:$0xff]  ;;  %v7358_v24 = vld [vmem:[#allocation338_spill] sm:$0xff] }
 0x78c   :  { %4168 = vmatpush.bf16.msra.mxu2 %v4065_v14  ;;  %v4093_v28 = vpack.c.bf16 %v7301_v26, %v7297_v56  ;;  %v7309_v7 = vsel %vm7307_vm2, nan, %v7308_v35  ;;  %v7313_v40 = vsel %vm7311_vm6, nan, %v7312_v38  ;;  %vm7315_vm10 = vnez %v7314_v34  ;;  %v7328_v14 = vld [vmem:[#allocation144_spill] sm:$0xff]  ;;  %v7344_v29 = vld [vmem:[#allocation337_spill] sm:$0xff]  ;;  %v7360_v25 = vld [vmem:[#allocation339_spill] sm:$0xff] }
 0x78d   :  { %v4090_v36 = vpack.c.bf16 %v7309_v7, %v7305_v31  ;;  %v4122_v37 = vpack.c.bf16 %v4010_v21, %v7313_v40  ;;  %v7317_v22 = vsel %vm7315_vm10, nan, %v7316_v39  ;;  %vm7319_vm14 = vnez %v7318_v60  ;;  %v7327_v21 = vld [vmem:[#allocation145_spill] sm:$0xff]  ;;  %v7350_v18 = vld [vmem:[#allocation236_spill] sm:$0xff]  ;;  %v7364_v19 = vld [vmem:[#allocation223_spill] sm:$0xff] }
 0x78e   :  { %v7321_v48 = vsel %vm7319_vm14, nan, %v7320_v41  ;;  %vm7323_vm12 = vnez %v7322_v2  ;;  %v7325_v62 = vsel %vm5802_vm4, nan, %v5806_v42  ;;  %v6089_v0 = vor.u32 %v7327_v21, %v7326_v20  ;;  %4183 = vmatpush.bf16.msra.mxu3 %v4093_v28  ;;  %v7334_v42 = vld [vmem:[#allocation234_spill] sm:$0xff]  ;;  %v7348_v63 = vld [vmem:[#allocation233_spill] sm:$0xff]  ;;  %v7368_v30 = vld [vmem:[#allocation227_spill] sm:$0xff] }
 0x78f   :  { %v4091_v11 = vpack.c.bf16 %v7321_v48, %v7317_v22  ;;  %v7324_v6 = vsel %vm7323_vm12, nan, %v5772_v52  ;;  %4155 = vmatpush.bf16.msra.mxu1 %v4092_v45  ;;  %v6093_v16 = vor.u32 %v7329_v5, %v7328_v14  ;;  %4190 = vmatpush.bf16.msrb.mxu0 %v4090_v36  ;;  %v7330_v52 = vld [vmem:[#allocation230_spill] sm:$0xff]  ;;  %vm7335_vm4 = vnez %v7334_v42  ;;  %v7352_v51 = vld [vmem:[#allocation237_spill] sm:$0xff]  ;;  %v7370_v28 = vld [vmem:[#allocation324_spill] sm:$0xff] }
 0x790   :  { %v4123_v3 = vpack.c.bf16 %v7325_v62, %v7324_v6  ;;  %4169 = vmatpush.bf16.msra.mxu2 %v4061_v12  ;;  %vm7331_vm0 = vnez %v7330_v52  ;;  %v7337_v27 = vsel %vm7335_vm4, nan, %v7336_v59  ;;  %vm7339_vm8 = vnez %v7338_v9  ;;  %v7354_v45 = vld [vmem:[#allocation334_spill] sm:$0xff]  ;;  %4142 = vmatmul.bf16.vlgmr.msra.gmra.mxu0 %v6089_v0  ;;  %v7372_v33 = vld [vmem:[#allocation325_spill] sm:$0xff]  ;;  %v7374_v31 = vld [vmem:[#allocation328_spill] sm:$0xff] }
 0x791   :  { %v7333_v58 = vsel %vm7331_vm0, nan, %v7332_v13  ;;  %v7341_v1 = vsel %vm7339_vm8, nan, %v7340_v17  ;;  %vm7343_vm1 = vnez %v7342_v15  ;;  %vm7347_vm3 = vnez %v7346_v4  ;;  %4184 = vmatmul.bf16.vlgmr.msra.gmra.mxu3 %v6093_v16  ;;  %v7362_v12 = vld [vmem:[#allocation222_spill] sm:$0xff]  ;;  %v7376_v46 = vld [vmem:[#allocation329_spill] sm:$0xff]  ;;  %v7378_v36 = vld [vmem:[#allocation224_spill] sm:$0xff] }
 0x792   :  { %v4086_v54 = vpack.c.bf16 %v7337_v27, %v7333_v58  ;;  %v7345_v43 = vsel %vm7343_vm1, nan, %v7344_v29  ;;  %4232 = vmatpush.bf16.msrb.mxu3 %v4123_v3  ;;  %v7349_v49 = vsel %vm7347_vm3, nan, %v7348_v63  ;;  %vm7351_vm5 = vnez %v7350_v18  ;;  %4156 = vmatmul.bf16.vlgmr.msra.gmra.mxu1 %v6093_v16  ;;  %v7366_v56 = vld [vmem:[#allocation226_spill] sm:$0xff]  ;;  %v7380_v55 = vld [vmem:[#allocation225_spill] sm:$0xff]  ;;  %v7382_v40 = vld [vmem:[#allocation228_spill] sm:$0xff] }
 0x793   :  { %4204 = vmatpush.bf16.msrb.mxu1 %v4122_v37  ;;  %v4118_v61 = vpack.c.bf16 %v7345_v43, %v7341_v1  ;;  %v7353_v53 = vsel %vm7351_vm5, nan, %v7352_v51  ;;  %vm7355_vm7 = vnez %v7354_v45  ;;  %vm7359_vm9 = vnez %v7358_v24  ;;  %4170 = vmatmul.bf16.vlgmr.msra.gmra.mxu2 %v6089_v0  ;;  %v7384_v37 = vld [vmem:[#allocation229_spill] sm:$0xff]  ;;  %v7386_v22 = vld [vmem:[#allocation326_spill] sm:$0xff]  ;;  %v7388_v60 = vld [vmem:[#allocation327_spill] sm:$0xff] }
 0x794   :  { %4218 = vmatpush.bf16.msrb.mxu2 %v4091_v11  ;;  %v4087_v47 = vpack.c.bf16 %v7353_v53, %v7349_v49  ;;  %v7357_v44 = vsel %vm7355_vm7, nan, %v7356_v23  ;;  %v7361_v50 = vsel %vm7359_vm9, nan, %v7360_v25  ;;  %4191 = vmatpush.bf16.msrb.mxu0 %v4086_v54  ;;  %vm7363_vm11 = vnez %v7362_v12  ;;  %v7390_v48 = vld [vmem:[#allocation330_spill] sm:$0xff]  ;;  %v7392_v11 = vld [vmem:[#allocation331_spill] sm:$0xff]  ;;  %v7394_v62 = vld [vmem:[#allocation212_spill] sm:$0xff] }
 0x795   :  { %v4119_v10 = vpack.c.bf16 %v7361_v50, %v7357_v44  ;;  %v7365_v57 = vsel %vm7363_vm11, nan, %v7364_v19  ;;  %vm7367_vm13 = vnez %v7366_v56  ;;  %vm7371_vm15 = vnez %v7370_v28  ;;  %v7396_v3 = vld [vmem:[#allocation213_spill] sm:$0xff]  ;;  %v7398_v21 = vld [vmem:[#allocation218_spill] sm:$0xff]  ;;  %v7400_v14 = vld [vmem:[#allocation219_spill] sm:$0xff] }
 0x796   :  { %v7369_v32 = vsel %vm7367_vm13, nan, %v7368_v30  ;;  %v7373_v8 = vsel %vm7371_vm15, nan, %v7372_v33  ;;  %vm7375_vm2 = vnez %v7374_v31  ;;  %vm7379_vm6 = vnez %v7378_v36  ;;  %v7402_v13 = vld [vmem:[#allocation312_spill] sm:$0xff]  ;;  %v7404_v58 = vld [vmem:[#allocation313_spill] sm:$0xff]  ;;  %v7410_v17 = vld [vmem:[#allocation214_spill] sm:$0xff] }
 0x797   :  { %4205 = vmatpush.bf16.msrb.mxu1 %v4118_v61  ;;  %v4082_v26 = vpack.c.bf16 %v7369_v32, %v7365_v57  ;;  %v7377_v35 = vsel %vm7375_vm2, nan, %v7376_v46  ;;  %4233 = vmatpush.bf16.msrb.mxu3 %v4119_v10  ;;  %v7381_v38 = vsel %vm7379_vm6, nan, %v7380_v55  ;;  %vm7383_vm10 = vnez %v7382_v40  ;;  %v7406_v59 = vld [vmem:[#allocation320_spill] sm:$0xff]  ;;  %v7408_v27 = vld [vmem:[#allocation321_spill] sm:$0xff]  ;;  %v7412_v1 = vld [vmem:[#allocation215_spill] sm:$0xff] }
 0x798   :  { %v4114_v7 = vpack.c.bf16 %v7377_v35, %v7373_v8  ;;  %4219 = vmatpush.bf16.msrb.mxu2 %v4087_v47  ;;  %v7385_v34 = vsel %vm7383_vm10, nan, %v7384_v37  ;;  %vm7387_vm14 = vnez %v7386_v22  ;;  %vm7391_vm12 = vnez %v7390_v48  ;;  %v7414_v29 = vld [vmem:[#allocation220_spill] sm:$0xff]  ;;  %v7416_v43 = vld [vmem:[#allocation221_spill] sm:$0xff]  ;;  %v7418_v63 = vld [vmem:[#allocation314_spill] sm:$0xff] }
 0x799   :  { %v4083_v39 = vpack.c.bf16 %v7385_v34, %v7381_v38  ;;  %v7389_v41 = vsel %vm7387_vm14, nan, %v7388_v60  ;;  %v7393_v2 = vsel %vm7391_vm12, nan, %v7392_v11  ;;  %4192 = vmatpush.bf16.msrb.mxu0 %v4082_v26  ;;  %vm7395_vm0 = vnez %v7394_v62  ;;  %v7420_v49 = vld [vmem:[#allocation315_spill] sm:$0xff]  ;;  %v7422_v51 = vld [vmem:[#allocation322_spill] sm:$0xff]  ;;  %v7442_v33 = vld [vmem:[#allocation200_spill] sm:$0xff] }
 0x79a   :  { %v4115_v6 = vpack.c.bf16 %v7393_v2, %v7389_v41  ;;  %v7397_v20 = vsel %vm7395_vm0, nan, %v7396_v3  ;;  %vm7399_vm4 = vnez %v7398_v21  ;;  %vm7403_vm8 = vnez %v7402_v13  ;;  %v7424_v53 = vld [vmem:[#allocation323_spill] sm:$0xff]  ;;  %v7426_v23 = vld [vmem:[#allocation198_spill] sm:$0xff]  ;;  %v7444_v8 = vld [vmem:[#allocation201_spill] sm:$0xff] }
 0x79b   :  { %4206 = vmatpush.bf16.msrb.mxu1 %v4114_v7  ;;  %v7401_v5 = vsel %vm7399_vm4, nan, %v7400_v14  ;;  %v7405_v42 = vsel %vm7403_vm8, nan, %v7404_v58  ;;  %vm7407_vm1 = vnez %v7406_v59  ;;  %vm7411_vm3 = vnez %v7410_v17  ;;  %v7428_v44 = vld [vmem:[#allocation199_spill] sm:$0xff]  ;;  %v7430_v25 = vld [vmem:[#allocation206_spill] sm:$0xff]  ;;  %v7446_v46 = vld [vmem:[#allocation208_spill] sm:$0xff] }
 0x79c   :  { %v4078_v52 = vpack.c.bf16 %v7401_v5, %v7397_v20  ;;  %v7409_v54 = vsel %vm7407_vm1, nan, %v7408_v27  ;;  %4220 = vmatpush.bf16.msrb.mxu2 %v4083_v39  ;;  %4234 = vmatpush.bf16.msrb.mxu3 %v4115_v6  ;;  %v7413_v15 = vsel %vm7411_vm3, nan, %v7412_v1  ;;  %vm7415_vm5 = vnez %v7414_v29  ;;  %v7432_v50 = vld [vmem:[#allocation207_spill] sm:$0xff]  ;;  %v7434_v19 = vld [vmem:[#allocation298_spill] sm:$0xff]  ;;  %v7448_v35 = vld [vmem:[#allocation209_spill] sm:$0xff] }
 0x79d   :  { %v4110_v9 = vpack.c.bf16 %v7409_v54, %v7405_v42  ;;  %v7417_v61 = vsel %vm7415_vm5, nan, %v7416_v43  ;;  %vm7419_vm7 = vnez %v7418_v63  ;;  %vm7423_vm9 = vnez %v7422_v51  ;;  %v7436_v57 = vld [vmem:[#allocation299_spill] sm:$0xff]  ;;  %v7438_v30 = vld [vmem:[#allocation306_spill] sm:$0xff]  ;;  %v7450_v55 = vld [vmem:[#allocation300_spill] sm:$0xff] }
 0x79e   :  { %v4079_v4 = vpack.c.bf16 %v7417_v61, %v7413_v15  ;;  %v7421_v18 = vsel %vm7419_vm7, nan, %v7420_v49  ;;  %v7425_v47 = vsel %vm7423_vm9, nan, %v7424_v53  ;;  %4193 = vmatpush.bf16.msrb.mxu0 %v4078_v52  ;;  %vm7427_vm11 = vnez %v7426_v23  ;;  %v7440_v32 = vld [vmem:[#allocation307_spill] sm:$0xff]  ;;  %v7452_v38 = vld [vmem:[#allocation301_spill] sm:$0xff]  ;;  %v7454_v37 = vld [vmem:[#allocation308_spill] sm:$0xff] }
 0x79f   :  { %v4111_v45 = vpack.c.bf16 %v7425_v47, %v7421_v18  ;;  %4207 = vmatpush.bf16.msrb.mxu1 %v4110_v9  ;;  %v7429_v24 = vsel %vm7427_vm11, nan, %v7428_v44  ;;  %vm7431_vm13 = vnez %v7430_v25  ;;  %vm7435_vm15 = vnez %v7434_v19  ;;  %v7456_v34 = vld [vmem:[#allocation309_spill] sm:$0xff]  ;;  %v7458_v60 = vld [vmem:[#allocation182_spill] sm:$0xff]  ;;  %v7460_v41 = vld [vmem:[#allocation183_spill] sm:$0xff] }
 0x7a0   :  { %v7433_v10 = vsel %vm7431_vm13, nan, %v7432_v50  ;;  %v7437_v56 = vsel %vm7435_vm15, nan, %v7436_v57  ;;  %vm7439_vm2 = vnez %v7438_v30  ;;  %4221 = vmatpush.bf16.msrb.mxu2 %v4079_v4  ;;  %vm7443_vm6 = vnez %v7442_v33  ;;  %v7462_v11 = vld [vmem:[#allocation190_spill] sm:$0xff]  ;;  %v7464_v2 = vld [vmem:[#allocation191_spill] sm:$0xff]  ;;  %v7474_v58 = vld [vmem:[#allocation184_spill] sm:$0xff] }
 0x7a1   :  { %v4074_v12 = vpack.c.bf16 %v7433_v10, %v7429_v24  ;;  %v7441_v26 = vsel %vm7439_vm2, nan, %v7440_v32  ;;  %4235 = vmatpush.bf16.msrb.mxu3 %v4111_v45  ;;  %v7445_v31 = vsel %vm7443_vm6, nan, %v7444_v8  ;;  %vm7447_vm10 = vnez %v7446_v46  ;;  %v7466_v3 = vld [vmem:[#allocation282_spill] sm:$0xff]  ;;  %v7468_v20 = vld [vmem:[#allocation283_spill] sm:$0xff]  ;;  %v7476_v42 = vld [vmem:[#allocation185_spill] sm:$0xff] }
 0x7a2   :  { %v4106_v28 = vpack.c.bf16 %v7441_v26, %v7437_v56  ;;  %v7449_v7 = vsel %vm7447_vm10, nan, %v7448_v35  ;;  %vm7451_vm14 = vnez %v7450_v55  ;;  %vm7455_vm12 = vnez %v7454_v37  ;;  %v7470_v14 = vld [vmem:[#allocation290_spill] sm:$0xff]  ;;  %v7472_v5 = vld [vmem:[#allocation291_spill] sm:$0xff]  ;;  %v7478_v27 = vld [vmem:[#allocation192_spill] sm:$0xff] }
 0x7a3   :  { %v4075_v36 = vpack.c.bf16 %v7449_v7, %v7445_v31  ;;  %v7453_v40 = vsel %vm7451_vm14, nan, %v7452_v38  ;;  %v7457_v39 = vsel %vm7455_vm12, nan, %v7456_v34  ;;  %4194 = vmatpush.bf16.msrb.mxu0 %v4074_v12  ;;  %vm7459_vm0 = vnez %v7458_v60  ;;  %v7480_v54 = vld [vmem:[#allocation193_spill] sm:$0xff]  ;;  %v7482_v1 = vld [vmem:[#allocation284_spill] sm:$0xff]  ;;  %v7490_v49 = vld [vmem:[#allocation166_spill] sm:$0xff] }
 0x7a4   :  { %v4107_v22 = vpack.c.bf16 %v7457_v39, %v7453_v40  ;;  %4208 = vmatpush.bf16.msrb.mxu1 %v4106_v28  ;;  %v7461_v48 = vsel %vm7459_vm0, nan, %v7460_v41  ;;  %vm7463_vm4 = vnez %v7462_v11  ;;  %vm7467_vm8 = vnez %v7466_v3  ;;  %v7484_v15 = vld [vmem:[#allocation285_spill] sm:$0xff]  ;;  %v7486_v43 = vld [vmem:[#allocation292_spill] sm:$0xff]  ;;  %v7492_v18 = vld [vmem:[#allocation167_spill] sm:$0xff] }
 0x7a5   :  { %v7465_v6 = vsel %vm7463_vm4, nan, %v7464_v2  ;;  %v7469_v21 = vsel %vm7467_vm8, nan, %v7468_v20  ;;  %vm7471_vm1 = vnez %v7470_v14  ;;  %4222 = vmatpush.bf16.msrb.mxu2 %v4075_v36  ;;  %vm7475_vm3 = vnez %v7474_v58  ;;  %v7488_v61 = vld [vmem:[#allocation293_spill] sm:$0xff]  ;;  %v7494_v53 = vld [vmem:[#allocation174_spill] sm:$0xff]  ;;  %v7496_v47 = vld [vmem:[#allocation175_spill] sm:$0xff] }
 0x7a6   :  { %v4070_v62 = vpack.c.bf16 %v7465_v6, %v7461_v48  ;;  %v7473_v52 = vsel %vm7471_vm1, nan, %v7472_v5  ;;  %4236 = vmatpush.bf16.msrb.mxu3 %v4107_v22  ;;  %v7477_v59 = vsel %vm7475_vm3, nan, %v7476_v42  ;;  %vm7479_vm5 = vnez %v7478_v27  ;;  %v7498_v44 = vld [vmem:[#allocation266_spill] sm:$0xff]  ;;  %v7500_v24 = vld [vmem:[#allocation267_spill] sm:$0xff]  ;;  %v7506_v57 = vld [vmem:[#allocation168_spill] sm:$0xff] }
 0x7a7   :  { %v4102_v13 = vpack.c.bf16 %v7473_v52, %v7469_v21  ;;  %v7481_v9 = vsel %vm7479_vm5, nan, %v7480_v54  ;;  %vm7483_vm7 = vnez %v7482_v1  ;;  %vm7487_vm9 = vnez %v7486_v43  ;;  %v7502_v50 = vld [vmem:[#allocation274_spill] sm:$0xff]  ;;  %v7504_v10 = vld [vmem:[#allocation275_spill] sm:$0xff]  ;;  %v7508_v56 = vld [vmem:[#allocation169_spill] sm:$0xff] }
 0x7a8   :  { %v4071_v17 = vpack.c.bf16 %v7481_v9, %v7477_v59  ;;  %v7485_v29 = vsel %vm7483_vm7, nan, %v7484_v15  ;;  %v7489_v4 = vsel %vm7487_vm9, nan, %v7488_v61  ;;  %4195 = vmatpush.bf16.msrb.mxu0 %v4070_v62  ;;  %vm7491_vm11 = vnez %v7490_v49  ;;  %v7510_v32 = vld [vmem:[#allocation176_spill] sm:$0xff]  ;;  %v7512_v26 = vld [vmem:[#allocation177_spill] sm:$0xff]  ;;  %v7522_v38 = vld [vmem:[#allocation150_spill] sm:$0xff] }
 0x7a9   :  { %v4103_v63 = vpack.c.bf16 %v7489_v4, %v7485_v29  ;;  %4209 = vmatpush.bf16.msrb.mxu1 %v4102_v13  ;;  %v7493_v51 = vsel %vm7491_vm11, nan, %v7492_v18  ;;  %vm7495_vm13 = vnez %v7494_v53  ;;  %vm7499_vm15 = vnez %v7498_v44  ;;  %v7514_v8 = vld [vmem:[#allocation268_spill] sm:$0xff]  ;;  %v7516_v31 = vld [vmem:[#allocation269_spill] sm:$0xff]  ;;  %v7524_v40 = vld [vmem:[#allocation151_spill] sm:$0xff] }
 0x7aa   :  { %v7497_v45 = vsel %vm7495_vm13, nan, %v7496_v47  ;;  %v7501_v25 = vsel %vm7499_vm15, nan, %v7500_v24  ;;  %vm7503_vm2 = vnez %v7502_v50  ;;  %4223 = vmatpush.bf16.msrb.mxu2 %v4071_v17  ;;  %vm7507_vm6 = vnez %v7506_v57  ;;  %v7518_v35 = vld [vmem:[#allocation276_spill] sm:$0xff]  ;;  %v7520_v7 = vld [vmem:[#allocation277_spill] sm:$0xff]  ;;  %v7526_v34 = vld [vmem:[#allocation158_spill] sm:$0xff] }
 0x7ab   :  { %v4066_v23 = vpack.c.bf16 %v7497_v45, %v7493_v51  ;;  %v7505_v12 = vsel %vm7503_vm2, nan, %v7504_v10  ;;  %4237 = vmatpush.bf16.msrb.mxu3 %v4103_v63  ;;  %v7509_v30 = vsel %vm7507_vm6, nan, %v7508_v56  ;;  %vm7511_vm10 = vnez %v7510_v32  ;;  %v7528_v39 = vld [vmem:[#allocation159_spill] sm:$0xff]  ;;  %v7530_v41 = vld [vmem:[#allocation250_spill] sm:$0xff]  ;;  %v7538_v20 = vld [vmem:[#allocation152_spill] sm:$0xff] }
 0x7ac   :  { %v4098_v19 = vpack.c.bf16 %v7505_v12, %v7501_v25  ;;  %v7513_v28 = vsel %vm7511_vm10, nan, %v7512_v26  ;;  %vm7515_vm14 = vnez %v7514_v8  ;;  %vm7519_vm12 = vnez %v7518_v35  ;;  %v7532_v48 = vld [vmem:[#allocation251_spill] sm:$0xff]  ;;  %v7534_v2 = vld [vmem:[#allocation258_spill] sm:$0xff]  ;;  %v7540_v21 = vld [vmem:[#allocation153_spill] sm:$0xff] }
 0x7ad   :  { %v4067_v33 = vpack.c.bf16 %v7513_v28, %v7509_v30  ;;  %v7517_v46 = vsel %vm7515_vm14, nan, %v7516_v31  ;;  %v7521_v36 = vsel %vm7519_vm12, nan, %v7520_v7  ;;  %4196 = vmatpush.bf16.msrb.mxu0 %v4066_v23  ;;  %vm7523_vm0 = vnez %v7522_v38  ;;  %v7536_v6 = vld [vmem:[#allocation259_spill] sm:$0xff]  ;;  %v7542_v5 = vld [vmem:[#allocation160_spill] sm:$0xff]  ;;  %v7544_v52 = vld [vmem:[#allocation161_spill] sm:$0xff] }
 0x7ae   :  { %v4099_v55 = vpack.c.bf16 %v7521_v36, %v7517_v46  ;;  %4210 = vmatpush.bf16.msrb.mxu1 %v4098_v19  ;;  %v7525_v37 = vsel %vm7523_vm0, nan, %v7524_v40  ;;  %vm7527_vm4 = vnez %v7526_v34  ;;  %vm7531_vm8 = vnez %v7530_v41  ;;  %v7546_v42 = vld [vmem:[#allocation252_spill] sm:$0xff]  ;;  %v7548_v59 = vld [vmem:[#allocation253_spill] sm:$0xff] }
 0x7af   :  { %v7529_v22 = vsel %vm7527_vm4, nan, %v7528_v39  ;;  %v7533_v11 = vsel %vm7531_vm8, nan, %v7532_v48  ;;  %vm7535_vm1 = vnez %v7534_v2  ;;  %4224 = vmatpush.bf16.msrb.mxu2 %v4067_v33  ;;  %vm7539_vm3 = vnez %v7538_v20  ;;  %v7550_v54 = vld [vmem:[#allocation260_spill] sm:$0xff]  ;;  %v7552_v9 = vld [vmem:[#allocation261_spill] sm:$0xff] }
 0x7b0   :  { %v4062_v60 = vpack.c.bf16 %v7529_v22, %v7525_v37  ;;  %v7537_v62 = vsel %vm7535_vm1, nan, %v7536_v6  ;;  %4238 = vmatpush.bf16.msrb.mxu3 %v4099_v55  ;;  %v7541_v14 = vsel %vm7539_vm3, nan, %v7540_v21  ;;  %vm7543_vm5 = vnez %v7542_v5  ;;  %v7554_v63 = vld [vmem:[#allocation141_spill] sm:$0xff] }
 0x7b1   :  { %v4094_v3 = vpack.c.bf16 %v7537_v62, %v7533_v11  ;;  %v7545_v13 = vsel %vm7543_vm5, nan, %v7544_v52  ;;  %vm7547_vm7 = vnez %v7546_v42  ;;  %vm7551_vm9 = vnez %v7550_v54 }
 0x7b2   :  { %v4063_v58 = vpack.c.bf16 %v7545_v13, %v7541_v14  ;;  %v7549_v27 = vsel %vm7547_vm7, nan, %v7548_v59  ;;  %v7553_v17 = vsel %vm7551_vm9, nan, %v7552_v9  ;;  %4197 = vmatpush.bf16.msrb.mxu0 %v4062_v60  ;;  %v7555_v49 = vperm.slane %v7554_v63, 0 }
 0x7b3   :  { %v4095_v1 = vpack.c.bf16 %v7553_v17, %v7549_v27  ;;  %4211 = vmatpush.bf16.msrb.mxu1 %v4094_v3  ;;  %v7556_v53 = vperm.slane %v7554_v63, 1  ;;  %v7559_v33 = vperm.slane %v7554_v63, 2  ;;  %v7560_v46 = vperm.slane %v7554_v63, 3 }
 0x7b4   :  { %4225 = vmatpush.bf16.msrb.mxu2 %v4063_v58 }
 0x7b5   :  { %4239 = vmatpush.bf16.msrb.mxu3 %v4095_v1  ;;  %4198 = vmatmul.bf16.vlgmr.msrb.gmra.mxu0 %v6089_v0  ;;  %v7558_v12 = vmov %v7556_v53  ;;  %v7561_v39 = vmov %v7559_v33  ;;  %v7562_v60 = vmov %v7560_v46 }
 0x7b6   :  { %4212 = vmatmul.bf16.vlgmr.msrb.gmra.mxu1 %v6093_v16 }
 0x7b7   :  { %4226 = vmatmul.bf16.vlgmr.msrb.gmra.mxu2 %v6089_v0 }
 0x7b8   :  { %4240 = vmatmul.bf16.vlgmr.msrb.gmra.mxu3 %v6093_v16  ;;  %v7557_v16 = vmov %v7555_v49 }
 0x80d   :  { %v4143_v15 = vpop.f32.mrf.mxu0 }
 0x80f   :  { %v4157_v29 = vpop.f32.mrf.mxu1 }
 0x810   :  { %v4158_v43 = vadd.f32 %v4157_v29, %v4143_v15 }
 0x812   :  { %v4246_v18 = vadd.f32 %v4158_v43, %v7555_v49 }
 0x814   :  { %v4185_v4 = vpop.f32.mrf.mxu3 }
 0x815   :  { %v4145_v45 = vpop.f32.mrf.mxu0 }
 0x816   :  { %v4171_v61 = vpop.f32.mrf.mxu2 }
 0x817   :  { %v4186_v51 = vadd.f32 %v4185_v4, %v4171_v61  ;;  %v4159_v23 = vpop.f32.mrf.mxu1 }
 0x818   :  { %v4160_v24 = vadd.f32 %v4159_v23, %v4145_v45 }
 0x819   :  { %v4247_v47 = vadd.f32 %v4186_v51, %v7556_v53 }
 0x81a   :  { %v4250_v50 = vadd.f32 %v4160_v24, %v7557_v16 }
 0x81b   :  { %v4273_v44 = vpack.c.bf16 %v4247_v47, %v4246_v18 }
 0x81c   :  { %v4187_v25 = vpop.f32.mrf.mxu3 }
 0x81d   :  { %4277 = vst [vmem:[#allocation9] sm:$0xff] %v4273_v44 }
 0x81e   :  { %v4173_v0 = vpop.f32.mrf.mxu2 }
 0x81f   :  { %v4188_v10 = vadd.f32 %v4187_v25, %v4173_v0 }
 0x821   :  { %v4251_v19 = vadd.f32 %v4188_v10, %v7558_v12 }
 0x823   :  { %v4275_v57 = vpack.c.bf16 %v4251_v19, %v4250_v50 }
 0x825   :  { %4279 = vst [vmem:[#allocation9 + $0x10] sm:$0xff] %v4275_v57 }
 0x832   :  { %v4199_v56 = vpop.f32.mrf.mxu0 }
 0x833   :  { %v4213_v30 = vpop.f32.mrf.mxu1 }
 0x834   :  { %v4214_v32 = vadd.f32 %v4213_v30, %v4199_v56 }
 0x836   :  { %v4248_v8 = vadd.f32 %v4214_v32, %v7559_v33 }
 0x83a   :  { %v4227_v26 = vpop.f32.mrf.mxu2  ;;  %v4201_v7 = vpop.f32.mrf.mxu0 }
 0x83b   :  { %v4241_v28 = vpop.f32.mrf.mxu3  ;;  %v4215_v36 = vpop.f32.mrf.mxu1 }
 0x83c   :  { %v4242_v31 = vadd.f32 %v4241_v28, %v4227_v26  ;;  %v4216_v38 = vadd.f32 %v4215_v36, %v4201_v7 }
 0x83e   :  { %v4249_v35 = vadd.f32 %v4242_v31, %v7560_v46  ;;  %v4252_v22 = vadd.f32 %v4216_v38, %v7561_v39 }
 0x840   :  { %v4274_v55 = vpack.c.bf16 %v4249_v35, %v4248_v8 }
 0x842   :  { %4278 = vst [vmem:[#allocation9 + $0x8] sm:$0xff] %v4274_v55  ;;  %v4229_v40 = vpop.f32.mrf.mxu2 }
 0x843   :  { %v4243_v37 = vpop.f32.mrf.mxu3 }
 0x844   :  { %v4244_v34 = vadd.f32 %v4243_v37, %v4229_v40 }
 0x846   :  { %v4253_v41 = vadd.f32 %v4244_v34, %v7562_v60 }
 0x848   :  { %v4276_v48 = vpack.c.bf16 %v4253_v41, %v4252_v22 }
 0x84a   :  { %4280 = vst [vmem:[#allocation9 + $0x18] sm:$0xff] %v4276_v48 }
 0x84b   :  { %4293 = dma.vmem_to_hbm [thread:$0]  %s4286_s2, 512, %s4288_s5, [#allocation5], %s4431_s6, %s4431_s6, %s4432_s7  }
 0x84c   :  { %4421 = dma.done.wait [#allocation5], 512  }
 0x84d   :  { %4422 = vsyncadd [#allocation5], 4294966784 }
 0x84e   :  { %4298 = vsyncpa [#allocation4], 1 }
 0x84f   :  { %4299 = vsyncpa [#allocation7], 1 }
 0x850   :  { %4300 = vsyncpa [#allocation5], 1 }

</bundles_post_ra>
